<compile_context>
chip_gen: v6e
topology: v6e:2x2x1
jax: 0.10.0
libtpu: 0.0.40
codegen_flags: <defaults>
</compile_context>

<pallas_src>
import functools

import jax
import jax.numpy as jnp
from jax import lax
from jax.experimental import pallas as pl
from jax.experimental.pallas import tpu as pltpu


_LANE = 128
_EPS = 1e-12
_VMEM_LIMIT = 48 * 1024 * 1024  # safe on v5e/v6e (128 MiB) and v7x (64 MiB)


def _cp(parallel, n_axes=1):
    sem = ("parallel",) * n_axes if parallel else ("arbitrary",) * n_axes
    return pltpu.CompilerParams(dimension_semantics=sem,
                                vmem_limit_bytes=_VMEM_LIMIT)


def _plane_layout(total):
    # Dense 2-D layout (R, Nc) for a flattened image plane of `total` pixels:
    # prefer R % 8 == 0 and Nc a multiple of 128 (full sublanes + full lanes).
    for ncols in (1024, 512, 256, 128):
        if total % ncols == 0 and (total // ncols) % 8 == 0:
            return total // ncols, ncols
    for ncols in (128, 256, 512, 1024):
        if total % ncols == 0:
            return total // ncols, ncols
    return 1, total


def _row_tile(R, Nc, n_planes):
    # Row tile for the L-tiled kernels: keep ~n_planes streamed f32 (tr, Nc)
    # tiles per grid step under ~4 MiB so double-buffered VMEM stays small.
    if R % 8 != 0:
        return R
    budget = 4 * 1024 * 1024
    for cand in (512, 256, 128, 64, 32, 16, 8):
        if R % cand == 0 and n_planes * cand * Nc * 4 <= budget:
            return cand
    return 8


def _m_tile(M):
    for t in (2048, 1024, 512, 256, 128):
        if M % t == 0:
            return t
    return M


def _img_spec(tr, Nc):
    return pl.BlockSpec((tr, Nc), lambda i: (i, 0))


def _coil_spec(C, tr, Nc):
    return pl.BlockSpec((C, tr, Nc), lambda i: (0, i, 0))


def _scal_spec():
    # (1,1) block with a constant index: resident across the grid; used both
    # as a scalar input and as a cross-step reduction accumulator output.
    return pl.BlockSpec((1, 1), lambda i: (0, 0))


# ----------------------------- in-kernel helpers -----------------------------

def _combine_coils(gr_ref, gi_ref, cr_ref, ci_ref):
    # sum_c conj(csm_c) * g_c ; coil axis LEADING so each term is a full
    # (tr, Nc) = (sublane, lane) tile (whole-vreg VPU work).
    C = cr_ref.shape[0]
    cr, ci = cr_ref[0], ci_ref[0]
    gr, gi = gr_ref[0], gi_ref[0]
    acc_r = cr * gr + ci * gi
    acc_i = cr * gi - ci * gr
    for c in range(1, C):
        cr, ci = cr_ref[c], ci_ref[c]
        gr, gi = gr_ref[c], gi_ref[c]
        acc_r = acc_r + cr * gr + ci * gi
        acc_i = acc_i + cr * gi - ci * gr
    return acc_r, acc_i


def _expand_coils(xr, xi, cr_ref, ci_ref, oer_ref, oei_ref):
    for c in range(cr_ref.shape[0]):
        cr, ci = cr_ref[c], ci_ref[c]
        oer_ref[c] = cr * xr - ci * xi
        oei_ref[c] = cr * xi + ci * xr


def _accum_scalar(ref, part):
    # Cross-grid-step scalar reduction into a resident (1,1) output block.
    @pl.when(pl.program_id(0) == 0)
    def _():
        ref[...] = jnp.zeros_like(ref)
    ref[...] += part


# ------------------------------- Pallas kernels -------------------------------

def coil_combine_kernel(gr_ref, gi_ref, cr_ref, ci_ref, or_ref, oi_ref):
    acc_r, acc_i = _combine_coils(gr_ref, gi_ref, cr_ref, ci_ref)
    or_ref[...] = acc_r
    oi_ref[...] = acc_i


def coil_expand_kernel(xr_ref, xi_ref, cr_ref, ci_ref, oer_ref, oei_ref):
    _expand_coils(xr_ref[...], xi_ref[...], cr_ref, ci_ref, oer_ref, oei_ref)


def cg_init_zero_kernel(ar_ref, ai_ref, br_ref, bi_ref, cr_ref, ci_ref,
                        orr_ref, ori_ref, opr_ref, opi_ref,
                        oer_ref, oei_ref, ors_ref, *, ca, cb):
    # x0 == 0  =>  r0 = rhs = ca*a + cb*b ; p0 = r0 ; also emit csm * p0.
    rr = ca * ar_ref[...] + cb * br_ref[...]
    ri = ca * ai_ref[...] + cb * bi_ref[...]
    orr_ref[...] = rr
    ori_ref[...] = ri
    opr_ref[...] = rr
    opi_ref[...] = ri
    _expand_coils(rr, ri, cr_ref, ci_ref, oer_ref, oei_ref)
    _accum_scalar(ors_ref, jnp.sum(rr * rr + ri * ri, keepdims=True))


def cg_init_kernel(gr_ref, gi_ref, cr_ref, ci_ref, xr_ref, xi_ref,
                   ar_ref, ai_ref, br_ref, bi_ref,
                   orr_ref, ori_ref, opr_ref, opi_ref,
                   oer_ref, oei_ref, ors_ref, *, lam, ca, cb):
    # r0 = (ca*a + cb*b) - ((A^H A)(x0) + lam*x0) ; p0 = r0 ; emit csm * p0.
    acc_r, acc_i = _combine_coils(gr_ref, gi_ref, cr_ref, ci_ref)
    rr = ca * ar_ref[...] + cb * br_ref[...] - (acc_r + lam * xr_ref[...])
    ri = ca * ai_ref[...] + cb * bi_ref[...] - (acc_i + lam * xi_ref[...])
    orr_ref[...] = rr
    ori_ref[...] = ri
    opr_ref[...] = rr
    opi_ref[...] = ri
    _expand_coils(rr, ri, cr_ref, ci_ref, oer_ref, oei_ref)
    _accum_scalar(ors_ref, jnp.sum(rr * rr + ri * ri, keepdims=True))


def cg_ap_kernel(gr_ref, gi_ref, cr_ref, ci_ref, pr_ref, pi_ref,
                 oar_ref, oai_ref, opap_ref, *, lam):
    # Ap = A^H A p + lam*p  and  pAp accumulated across the row-tile grid.
    pr, pi = pr_ref[...], pi_ref[...]
    acc_r, acc_i = _combine_coils(gr_ref, gi_ref, cr_ref, ci_ref)
    apr = acc_r + lam * pr
    api = acc_i + lam * pi
    oar_ref[...] = apr
    oai_ref[...] = api
    _accum_scalar(opap_ref, jnp.sum(pr * apr + pi * api, keepdims=True))


def cg_xr_kernel(xr_ref, xi_ref, rr_ref, ri_ref, pr_ref, pi_ref,
                 apr_ref, api_ref, rs_ref, pap_ref,
                 oxr_ref, oxi_ref, orr_ref, ori_ref, ors_ref):
    # alpha = rsold / pAp ; x += alpha p ; r -= alpha Ap ; rsnew accumulated.
    alpha = rs_ref[...] / (pap_ref[...] + jnp.float32(_EPS))   # (1,1) broadcast
    oxr_ref[...] = xr_ref[...] + alpha * pr_ref[...]
    oxi_ref[...] = xi_ref[...] + alpha * pi_ref[...]
    rr = rr_ref[...] - alpha * apr_ref[...]
    ri = ri_ref[...] - alpha * api_ref[...]
    orr_ref[...] = rr
    ori_ref[...] = ri
    _accum_scalar(ors_ref, jnp.sum(rr * rr + ri * ri, keepdims=True))


def cg_pe_kernel(rr_ref, ri_ref, pr_ref, pi_ref, cr_ref, ci_ref,
                 rsold_ref, rsnew_ref, opr_ref, opi_ref, oer_ref, oei_ref):
    # beta = rsnew / rsold ; p = r + beta p ; emit csm * p for the next FFT.
    beta = rsnew_ref[...] / (rsold_ref[...] + jnp.float32(_EPS))
    npr = rr_ref[...] + beta * pr_ref[...]
    npi = ri_ref[...] + beta * pi_ref[...]
    opr_ref[...] = npr
    opi_ref[...] = npi
    _expand_coils(npr, npi, cr_ref, ci_ref, oer_ref, oei_ref)


def rel_err_kernel(xr_ref, xi_ref, yr_ref, yi_ref, num_ref, den_ref):
    dr = xr_ref[...] - yr_ref[...]
    di = xi_ref[...] - yi_ref[...]
    pn = jnp.sum(dr * dr + di * di, keepdims=True)
    pd = jnp.sum(yr_ref[...] * yr_ref[...] + yi_ref[...] * yi_ref[...],
                 keepdims=True)
    @pl.when(pl.program_id(0) == 0)
    def _():
        num_ref[...] = jnp.zeros_like(num_ref)
        den_ref[...] = jnp.zeros_like(den_ref)
    num_ref[...] += pn
    den_ref[...] += pd


def conv_matmul_relu_kernel(a_ref, w_ref, b_ref, o_ref):
    # bf16 operands, f32 accumulate, fused bias + relu, bf16 store.
    acc = jnp.dot(a_ref[...], w_ref[...], preferred_element_type=jnp.float32)
    acc = jnp.maximum(acc + b_ref[...], 0.0)
    o_ref[...] = acc.astype(o_ref.dtype)


def conv_matmul_residual_kernel(a_ref, w_ref, b_ref, x_ref, o_ref):
    # bf16 operands, f32 accumulate; fuse residual add and emit only the
    # valid output columns (no 128-lane padded writeback).
    acc = jnp.dot(a_ref[...], w_ref[...], preferred_element_type=jnp.float32)
    acc = acc + b_ref[...]
    o_ref[...] = x_ref[...] + acc[:, : o_ref.shape[1]]


# ------------------------------- kernel wrappers ------------------------------

def coil_combine(gr, gi, cr, ci):
    C, R, Nc = cr.shape
    tr = _row_tile(R, Nc, 4 * C + 2)
    img = jax.ShapeDtypeStruct((R, Nc), jnp.float32)
    return pl.pallas_call(
        coil_combine_kernel,
        grid=(R // tr,),
        in_specs=[_coil_spec(C, tr, Nc)] * 4,
        out_specs=(_img_spec(tr, Nc), _img_spec(tr, Nc)),
        out_shape=(img, img),
        compiler_params=_cp(True),
    )(gr, gi, cr, ci)


def coil_expand(xr, xi, cr, ci):
    C, R, Nc = cr.shape
    tr = _row_tile(R, Nc, 4 * C + 2)
    coil = jax.ShapeDtypeStruct((C, R, Nc), jnp.float32)
    return pl.pallas_call(
        coil_expand_kernel,
        grid=(R // tr,),
        in_specs=[_img_spec(tr, Nc)] * 2 + [_coil_spec(C, tr, Nc)] * 2,
        out_specs=(_coil_spec(C, tr, Nc),) * 2,
        out_shape=(coil, coil),
        compiler_params=_cp(True),
    )(xr, xi, cr, ci)


def cg_init_zero(ar, ai, br_, bi_, cr, ci, ca, cb):
    C, R, Nc = cr.shape
    tr = _row_tile(R, Nc, 4 * C + 8)
    img = jax.ShapeDtypeStruct((R, Nc), jnp.float32)
    coil = jax.ShapeDtypeStruct((C, R, Nc), jnp.float32)
    scl = jax.ShapeDtypeStruct((1, 1), jnp.float32)
    return pl.pallas_call(
        functools.partial(cg_init_zero_kernel, ca=float(ca), cb=float(cb)),
        grid=(R // tr,),
        in_specs=[_img_spec(tr, Nc)] * 4 + [_coil_spec(C, tr, Nc)] * 2,
        out_specs=(_img_spec(tr, Nc),) * 4 + (_coil_spec(C, tr, Nc),) * 2
                  + (_scal_spec(),),
        out_shape=(img, img, img, img, coil, coil, scl),
        compiler_params=_cp(False),   # scalar reduction across the grid
    )(ar, ai, br_, bi_, cr, ci)


def cg_init(gr, gi, cr, ci, xr, xi, ar, ai, br_, bi_, lam, ca, cb):
    C, R, Nc = cr.shape
    tr = _row_tile(R, Nc, 6 * C + 12)
    img = jax.ShapeDtypeStruct((R, Nc), jnp.float32)
    coil = jax.ShapeDtypeStruct((C, R, Nc), jnp.float32)
    scl = jax.ShapeDtypeStruct((1, 1), jnp.float32)
    return pl.pallas_call(
        functools.partial(cg_init_kernel, lam=float(lam),
                          ca=float(ca), cb=float(cb)),
        grid=(R // tr,),
        in_specs=[_coil_spec(C, tr, Nc)] * 4 + [_img_spec(tr, Nc)] * 6,
        out_specs=(_img_spec(tr, Nc),) * 4 + (_coil_spec(C, tr, Nc),) * 2
                  + (_scal_spec(),),
        out_shape=(img, img, img, img, coil, coil, scl),
        compiler_params=_cp(False),
    )(gr, gi, cr, ci, xr, xi, ar, ai, br_, bi_)


def cg_ap(gr, gi, cr, ci, pr, pi, lam):
    C, R, Nc = cr.shape
    tr = _row_tile(R, Nc, 4 * C + 4)
    img = jax.ShapeDtypeStruct((R, Nc), jnp.float32)
    scl = jax.ShapeDtypeStruct((1, 1), jnp.float32)
    return pl.pallas_call(
        functools.partial(cg_ap_kernel, lam=float(lam)),
        grid=(R // tr,),
        in_specs=[_coil_spec(C, tr, Nc)] * 4 + [_img_spec(tr, Nc)] * 2,
        out_specs=(_img_spec(tr, Nc), _img_spec(tr, Nc), _scal_spec()),
        out_shape=(img, img, scl),
        compiler_params=_cp(False),
    )(gr, gi, cr, ci, pr, pi)


def cg_xr(xr, xi, rr, ri, pr, pi, apr, api, rs, pap):
    R, Nc = xr.shape
    tr = _row_tile(R, Nc, 13)
    img = jax.ShapeDtypeStruct((R, Nc), jnp.float32)
    scl = jax.ShapeDtypeStruct((1, 1), jnp.float32)
    return pl.pallas_call(
        cg_xr_kernel,
        grid=(R // tr,),
        in_specs=[_img_spec(tr, Nc)] * 8 + [_scal_spec()] * 2,
        out_specs=(_img_spec(tr, Nc),) * 4 + (_scal_spec(),),
        out_shape=(img, img, img, img, scl),
        compiler_params=_cp(False),
    )(xr, xi, rr, ri, pr, pi, apr, api, rs, pap)


def cg_pe(rr, ri, pr, pi, cr, ci, rs_old, rs_new):
    C, R, Nc = cr.shape
    tr = _row_tile(R, Nc, 4 * C + 6)
    img = jax.ShapeDtypeStruct((R, Nc), jnp.float32)
    coil = jax.ShapeDtypeStruct((C, R, Nc), jnp.float32)
    return pl.pallas_call(
        cg_pe_kernel,
        grid=(R // tr,),
        in_specs=[_img_spec(tr, Nc)] * 4 + [_coil_spec(C, tr, Nc)] * 2
                 + [_scal_spec()] * 2,
        out_specs=(_img_spec(tr, Nc),) * 2 + (_coil_spec(C, tr, Nc),) * 2,
        out_shape=(img, img, coil, coil),
        compiler_params=_cp(True),   # no cross-step reduction -> megacore OK
    )(rr, ri, pr, pi, cr, ci, rs_old, rs_new)


def rel_err(xr, xi, yr, yi):
    R, Nc = xr.shape
    tr = _row_tile(R, Nc, 4)
    scl = jax.ShapeDtypeStruct((1, 1), jnp.float32)
    num, den = pl.pallas_call(
        rel_err_kernel,
        grid=(R // tr,),
        in_specs=[_img_spec(tr, Nc)] * 4,
        out_specs=(_scal_spec(), _scal_spec()),
        out_shape=(scl, scl),
        compiler_params=_cp(False),
    )(xr, xi, yr, yi)
    return jnp.sqrt(num[0, 0] / (den[0, 0] + _EPS))


def conv_matmul_relu(a, w, bias):
    M, Kd = a.shape
    _, N = w.shape
    tm = _m_tile(M)
    return pl.pallas_call(
        conv_matmul_relu_kernel,
        grid=(M // tm,),
        in_specs=[pl.BlockSpec((tm, Kd), lambda i: (i, 0)),
                  pl.BlockSpec((Kd, N), lambda i: (0, 0)),
                  pl.BlockSpec((1, N), lambda i: (0, 0))],
        out_specs=pl.BlockSpec((tm, N), lambda i: (i, 0)),
        out_shape=jax.ShapeDtypeStruct((M, N), jnp.bfloat16),
        compiler_params=_cp(True),
    )(a, w, bias)


def conv_matmul_residual(a, w, bias, x2):
    M, Kd = a.shape
    _, N = w.shape
    no = x2.shape[1]
    tm = _m_tile(M)
    return pl.pallas_call(
        conv_matmul_residual_kernel,
        grid=(M // tm,),
        in_specs=[pl.BlockSpec((tm, Kd), lambda i: (i, 0)),
                  pl.BlockSpec((Kd, N), lambda i: (0, 0)),
                  pl.BlockSpec((1, N), lambda i: (0, 0)),
                  pl.BlockSpec((tm, no), lambda i: (i, 0))],
        out_specs=pl.BlockSpec((tm, no), lambda i: (i, 0)),
        out_shape=jax.ShapeDtypeStruct((M, no), jnp.float32),
        compiler_params=_cp(True),
    )(a, w, bias, x2)


# ---------------------------------- JAX glue ----------------------------------

def _fft2(yr, yi, B, H, W, inverse):
    # TODO(synk): 2-D FFT/IFFT has no Pallas TPU equivalent; stays in XLA.
    C = yr.shape[0]
    z = (yr + 1j * yi).astype(jnp.complex64).reshape(C, B, H, W)
    z = jnp.fft.ifft2(z, norm="ortho") if inverse else jnp.fft.fft2(z, norm="ortho")
    z = z.reshape(yr.shape)
    return jnp.real(z).astype(jnp.float32), jnp.imag(z).astype(jnp.float32)


def _masked_kspace_roundtrip(er, ei, mask2, B, H, W):
    # FFT -> sampling mask (folded into XLA FFT glue) -> IFFT, per coil image.
    kr, ki = _fft2(er, ei, B, H, W, inverse=False)
    kr = kr * mask2[None]
    ki = ki * mask2[None]
    return _fft2(kr, ki, B, H, W, inverse=True)


def cg_solve(ar, ai, br_, bi_, ca, cb, x0, cr, ci, mask2, lam, B, H, W, niter):
    """CG solve of (A^H A + lam I) x = ca*a + cb*b, starting from x0 (None -> 0)."""
    C, R, Nc = cr.shape
    if x0 is None:
        xr = jnp.zeros((R, Nc), jnp.float32)
        xi = jnp.zeros((R, Nc), jnp.float32)
        rr, ri, pr, pi, er, ei, rs = cg_init_zero(ar, ai, br_, bi_, cr, ci, ca, cb)
    else:
        xr, xi = x0
        yr, yi = coil_expand(xr, xi, cr, ci)
        gr, gi = _masked_kspace_roundtrip(yr, yi, mask2, B, H, W)
        rr, ri, pr, pi, er, ei, rs = cg_init(gr, gi, cr, ci, xr, xi,
                                             ar, ai, br_, bi_, lam, ca, cb)

    def body(_, state):
        xr, xi, rr, ri, pr, pi, er, ei, rs = state
        gr, gi = _masked_kspace_roundtrip(er, ei, mask2, B, H, W)
        apr, api, pap = cg_ap(gr, gi, cr, ci, pr, pi, lam)
        xr, xi, rr, ri, rs_new = cg_xr(xr, xi, rr, ri, pr, pi, apr, api, rs, pap)
        pr, pi, er, ei = cg_pe(rr, ri, pr, pi, cr, ci, rs, rs_new)
        return xr, xi, rr, ri, pr, pi, er, ei, rs_new

    state = lax.fori_loop(0, niter, body, (xr, xi, rr, ri, pr, pi, er, ei, rs))
    return state[0], state[1]


def _im2col3x3(x):
    # x: (B, Cin, H, W) NCHW -> (B*H*W, Cin*9); 3x3 patches, zero padding = 1.
    # TODO(synk): replace im2col + transposes with a fused Pallas shifted-matmul
    # conv (pltpu.roll) so the 9x patch matrix never round-trips HBM.
    B, Cin, H, W = x.shape
    xp = jnp.pad(x, ((0, 0), (0, 0), (1, 1), (1, 1)))
    cols = [xp[:, :, dy:dy + H, dx:dx + W] for dy in range(3) for dx in range(3)]
    p = jnp.stack(cols, axis=2)                           # (B, Cin, 9, H, W)
    return p.transpose(0, 3, 4, 1, 2).reshape(B * H * W, Cin * 9)


def prepare_denoiser_params(params):
    # Pad the output-channel (lane) dim of both conv matmuls to a multiple of
    # 128 (unmasked MXU lanes); cast weights to bf16 for native MXU rate.
    def pad_cols(a):
        n = a.shape[1]
        return jnp.pad(a, ((0, 0), (0, (-n) % _LANE)))
    return {
        "w1": pad_cols(params["w1"]).astype(jnp.bfloat16),
        "b1": pad_cols(params["b1"]).astype(jnp.float32),
        "w2": pad_cols(params["w2"]).astype(jnp.bfloat16),
        "b2": pad_cols(params["b2"]).astype(jnp.float32),
        "hid": params["w1"].shape[1],
    }


def denoiser(xr, xi, pp, B, H, W):
    # residual CNN denoiser: conv3x3(2->hid) + relu -> conv3x3(hid->2); x + d
    hid = pp["hid"]
    M = B * H * W
    x = jnp.stack([xr.reshape(B, H, W), xi.reshape(B, H, W)], axis=1)  # NCHW
    p1 = _im2col3x3(x).astype(jnp.bfloat16)                       # (M, 18) bf16
    h = conv_matmul_relu(p1, pp["w1"], pp["b1"])[:, :hid]         # (M, hid) bf16
    hmap = h.reshape(B, H, W, hid).transpose(0, 3, 1, 2)          # (B, hid, H, W)
    p2 = _im2col3x3(hmap)                                         # (M, hid*9) bf16
    xs = jnp.stack([xr.reshape(M), xi.reshape(M)], axis=1)        # (M, 2) f32
    z = conv_matmul_residual(p2, pp["w2"], pp["b2"], xs)          # (M, 2) = x + d
    zr = z[:, 0].reshape(xr.shape)
    zi = z[:, 1].reshape(xi.shape)
    return zr, zi


# -------------------------------- DEQ.forward ---------------------------------

def deq_forward(br, bi, cr, ci, mask, params, *, K, H, W, cg_iters, lam,
                lam_init, tol):
    del tol  # TODO(synk): data-dependent early exit is host-side control flow;
    #          the jitted forward runs all K blocks.
    C, B, L = cr.shape
    assert L == H * W
    total = B * L
    R, Nc = _plane_layout(total)

    # Sublane/lane-dense layouts: images (R, Nc), coil tensors (C, R, Nc).
    cr2 = cr.reshape(C, R, Nc)
    ci2 = ci.reshape(C, R, Nc)
    br2 = br.reshape(C, R, Nc)
    bi2 = bi.reshape(C, R, Nc)
    mask2 = mask.reshape(R, Nc)

    # Atb = f.A.adjoint(b, csm) = sum_c conj(csm_c) * IFFT2(b_c)
    gr, gi = _fft2(br2, bi2, B, H, W, inverse=True)
    Atb_r, Atb_i = coil_combine(gr, gi, cr2, ci2)

    # sense_out = A_init.inv(zero, lam_init * Atb, lam_init, csm, mask)
    #   -> CG solve (A^H A + lam_init I) x = lam_init * Atb, x0 = 0
    sense_r, sense_i = cg_solve(Atb_r, Atb_i, Atb_r, Atb_i, 0.0, lam_init,
                                None, cr2, ci2, mask2, lam_init, B, H, W,
                                cg_iters)

    pp = prepare_denoiser_params(params)

    def f_block(xr, xi):
        # f(x, Atb, csm, mask): z = denoiser(x);
        # solve (A^H A + lam I) x = Atb + lam z  starting from x.
        zr, zi = denoiser(xr, xi, pp, B, H, W)
        return cg_solve(Atb_r, Atb_i, zr, zi, 1.0, lam, (xr, xi),
                        cr2, ci2, mask2, lam, B, H, W, cg_iters)

    x_r, x_i = sense_r, sense_i
    xold_r, xold_i = x_r, x_i
    for _ in range(K):
        xold_r, xold_i = x_r, x_i
        x_r, x_i = f_block(x_r, x_i)

    err = rel_err(x_r, x_i, xold_r, xold_i)

    # z = self.f(x, Atb, csm, mask)  -- the value DEQ.forward returns.
    # TODO(synk): the autograd backward_hook (implicit-gradient path) is
    # training-only and not part of the forward Pallas implementation.
    z_r, z_i = f_block(x_r, x_i)

    blk = K - 1
    out = lambda a: a.reshape(B, L)
    return (out(z_r), out(z_i)), (out(sense_r), out(sense_i)), err, blk


# ------------------------------------ main ------------------------------------

if __name__ == "__main__":
    B, C, H, W = 2, 4, 16, 16
    L = H * W
    HID = 16
    K = 3
    CG_ITERS = 5
    LAM = 1.0
    LAM_INIT = 0.5
    TOL = 0.05

    key = jax.random.PRNGKey(0)
    kb, kc, km, kw1, kw2 = jax.random.split(key, 5)

    # coil sensitivities, layout (C, B, L), unit-normalized per pixel
    cs = jax.random.normal(kc, (2, C, B, L), jnp.float32)
    cr, ci = cs[0], cs[1]
    nrm = jnp.sqrt(jnp.sum(cr ** 2 + ci ** 2, axis=0, keepdims=True)) + 1e-6
    cr, ci = cr / nrm, ci / nrm

    # k-space sampling mask and (masked) measured k-space data
    mask = (jax.random.uniform(km, (B, L)) < 0.4).astype(jnp.float32)
    bk = jax.random.normal(kb, (2, C, B, L), jnp.float32)
    br = bk[0] * mask[None]
    bi = bk[1] * mask[None]

    # deterministic denoiser parameters (conv weights flattened (Cin*9, Cout))
    params = {
        "w1": 0.1 * jax.random.normal(kw1, (2 * 9, HID), jnp.float32),
        "b1": jnp.zeros((1, HID), jnp.float32),
        "w2": 0.1 * jax.random.normal(kw2, (HID * 9, 2), jnp.float32),
        "b2": jnp.zeros((1, 2), jnp.float32),
    }

    fwd = jax.jit(functools.partial(deq_forward, K=K, H=H, W=W,
                                    cg_iters=CG_ITERS, lam=LAM,
                                    lam_init=LAM_INIT, tol=TOL))
    (z_r, z_i), (s_r, s_i), err, blk = fwd(br, bi, cr, ci, mask, params)
    jax.block_until_ready((z_r, z_i, s_r, s_i, err))

    assert z_r.shape == (B, L) and z_i.shape == (B, L)
    assert s_r.shape == (B, L) and s_i.shape == (B, L)
    assert bool(jnp.isfinite(err))
    assert bool(jnp.all(jnp.isfinite(z_r))) and bool(jnp.all(jnp.isfinite(z_i)))
    print("KERNEL_OK")
</pallas_src>

<mosaic_0001>
module attributes {stable_mosaic.version = 11 : i64} {
  func.func @coil_combine_kernel(%arg0: i32, %arg1: memref<4x4x128xf32, #tpu.memory_space<vmem>>, %arg2: memref<4x4x128xf32, #tpu.memory_space<vmem>>, %arg3: memref<4x4x128xf32, #tpu.memory_space<vmem>>, %arg4: memref<4x4x128xf32, #tpu.memory_space<vmem>>, %arg5: memref<4x128xf32, #tpu.memory_space<vmem>>, %arg6: memref<4x128xf32, #tpu.memory_space<vmem>>) attributes {dimension_semantics = [#tpu.dimension_semantics<parallel>], iteration_bounds = array<i64: 1>, scalar_prefetch = 0 : i64, scratch_operands = 0 : i64, tpu.core_type = #tpu.core_type<tc>, window_params = [{transform_indices = @transform_0, window_bounds = array<i64: 4, 4, 128>}, {transform_indices = @transform_1, window_bounds = array<i64: 4, 4, 128>}, {transform_indices = @transform_2, window_bounds = array<i64: 4, 4, 128>}, {transform_indices = @transform_3, window_bounds = array<i64: 4, 4, 128>}, {transform_indices = @transform_4, window_bounds = array<i64: 4, 128>}, {transform_indices = @transform_5, window_bounds = array<i64: 4, 128>}]} {
    %c0 = arith.constant 0 : index
    %c0_0 = arith.constant 0 : index
    %c0_1 = arith.constant 0 : index
    %0 = vector.load %arg3[%c0, %c0_0, %c0_1] : memref<4x4x128xf32, #tpu.memory_space<vmem>>, vector<1x4x128xf32>
    %1 = vector.shape_cast %0 : vector<1x4x128xf32> to vector<4x128xf32>
    %c0_2 = arith.constant 0 : index
    %c0_3 = arith.constant 0 : index
    %c0_4 = arith.constant 0 : index
    %2 = vector.load %arg4[%c0_2, %c0_3, %c0_4] : memref<4x4x128xf32, #tpu.memory_space<vmem>>, vector<1x4x128xf32>
    %3 = vector.shape_cast %2 : vector<1x4x128xf32> to vector<4x128xf32>
    %c0_5 = arith.constant 0 : index
    %c0_6 = arith.constant 0 : index
    %c0_7 = arith.constant 0 : index
    %4 = vector.load %arg1[%c0_5, %c0_6, %c0_7] : memref<4x4x128xf32, #tpu.memory_space<vmem>>, vector<1x4x128xf32>
    %5 = vector.shape_cast %4 : vector<1x4x128xf32> to vector<4x128xf32>
    %c0_8 = arith.constant 0 : index
    %c0_9 = arith.constant 0 : index
    %c0_10 = arith.constant 0 : index
    %6 = vector.load %arg2[%c0_8, %c0_9, %c0_10] : memref<4x4x128xf32, #tpu.memory_space<vmem>>, vector<1x4x128xf32>
    %7 = vector.shape_cast %6 : vector<1x4x128xf32> to vector<4x128xf32>
    %8 = arith.mulf %1, %5 : vector<4x128xf32>
    %9 = arith.mulf %3, %7 : vector<4x128xf32>
    %10 = arith.addf %8, %9 : vector<4x128xf32>
    %11 = arith.mulf %1, %7 : vector<4x128xf32>
    %12 = arith.mulf %3, %5 : vector<4x128xf32>
    %13 = arith.subf %11, %12 : vector<4x128xf32>
    %c1 = arith.constant 1 : index
    %c0_11 = arith.constant 0 : index
    %c0_12 = arith.constant 0 : index
    %14 = vector.load %arg3[%c1, %c0_11, %c0_12] : memref<4x4x128xf32, #tpu.memory_space<vmem>>, vector<1x4x128xf32>
    %15 = vector.shape_cast %14 : vector<1x4x128xf32> to vector<4x128xf32>
    %c1_13 = arith.constant 1 : index
    %c0_14 = arith.constant 0 : index
    %c0_15 = arith.constant 0 : index
    %16 = vector.load %arg4[%c1_13, %c0_14, %c0_15] : memref<4x4x128xf32, #tpu.memory_space<vmem>>, vector<1x4x128xf32>
    %17 = vector.shape_cast %16 : vector<1x4x128xf32> to vector<4x128xf32>
    %c1_16 = arith.constant 1 : index
    %c0_17 = arith.constant 0 : index
    %c0_18 = arith.constant 0 : index
    %18 = vector.load %arg1[%c1_16, %c0_17, %c0_18] : memref<4x4x128xf32, #tpu.memory_space<vmem>>, vector<1x4x128xf32>
    %19 = vector.shape_cast %18 : vector<1x4x128xf32> to vector<4x128xf32>
    %c1_19 = arith.constant 1 : index
    %c0_20 = arith.constant 0 : index
    %c0_21 = arith.constant 0 : index
    %20 = vector.load %arg2[%c1_19, %c0_20, %c0_21] : memref<4x4x128xf32, #tpu.memory_space<vmem>>, vector<1x4x128xf32>
    %21 = vector.shape_cast %20 : vector<1x4x128xf32> to vector<4x128xf32>
    %22 = arith.mulf %15, %19 : vector<4x128xf32>
    %23 = arith.addf %10, %22 : vector<4x128xf32>
    %24 = arith.mulf %17, %21 : vector<4x128xf32>
    %25 = arith.addf %23, %24 : vector<4x128xf32>
    %26 = arith.mulf %15, %21 : vector<4x128xf32>
    %27 = arith.addf %13, %26 : vector<4x128xf32>
    %28 = arith.mulf %17, %19 : vector<4x128xf32>
    %29 = arith.subf %27, %28 : vector<4x128xf32>
    %c2 = arith.constant 2 : index
    %c0_22 = arith.constant 0 : index
    %c0_23 = arith.constant 0 : index
    %30 = vector.load %arg3[%c2, %c0_22, %c0_23] : memref<4x4x128xf32, #tpu.memory_space<vmem>>, vector<1x4x128xf32>
    %31 = vector.shape_cast %30 : vector<1x4x128xf32> to vector<4x128xf32>
    %c2_24 = arith.constant 2 : index
    %c0_25 = arith.constant 0 : index
    %c0_26 = arith.constant 0 : index
    %32 = vector.load %arg4[%c2_24, %c0_25, %c0_26] : memref<4x4x128xf32, #tpu.memory_space<vmem>>, vector<1x4x128xf32>
    %33 = vector.shape_cast %32 : vector<1x4x128xf32> to vector<4x128xf32>
    %c2_27 = arith.constant 2 : index
    %c0_28 = arith.constant 0 : index
    %c0_29 = arith.constant 0 : index
    %34 = vector.load %arg1[%c2_27, %c0_28, %c0_29] : memref<4x4x128xf32, #tpu.memory_space<vmem>>, vector<1x4x128xf32>
    %35 = vector.shape_cast %34 : vector<1x4x128xf32> to vector<4x128xf32>
    %c2_30 = arith.constant 2 : index
    %c0_31 = arith.constant 0 : index
    %c0_32 = arith.constant 0 : index
    %36 = vector.load %arg2[%c2_30, %c0_31, %c0_32] : memref<4x4x128xf32, #tpu.memory_space<vmem>>, vector<1x4x128xf32>
    %37 = vector.shape_cast %36 : vector<1x4x128xf32> to vector<4x128xf32>
    %38 = arith.mulf %31, %35 : vector<4x128xf32>
    %39 = arith.addf %25, %38 : vector<4x128xf32>
    %40 = arith.mulf %33, %37 : vector<4x128xf32>
    %41 = arith.addf %39, %40 : vector<4x128xf32>
    %42 = arith.mulf %31, %37 : vector<4x128xf32>
    %43 = arith.addf %29, %42 : vector<4x128xf32>
    %44 = arith.mulf %33, %35 : vector<4x128xf32>
    %45 = arith.subf %43, %44 : vector<4x128xf32>
    %c3 = arith.constant 3 : index
    %c0_33 = arith.constant 0 : index
    %c0_34 = arith.constant 0 : index
    %46 = vector.load %arg3[%c3, %c0_33, %c0_34] : memref<4x4x128xf32, #tpu.memory_space<vmem>>, vector<1x4x128xf32>
    %47 = vector.shape_cast %46 : vector<1x4x128xf32> to vector<4x128xf32>
    %c3_35 = arith.constant 3 : index
    %c0_36 = arith.constant 0 : index
    %c0_37 = arith.constant 0 : index
    %48 = vector.load %arg4[%c3_35, %c0_36, %c0_37] : memref<4x4x128xf32, #tpu.memory_space<vmem>>, vector<1x4x128xf32>
    %49 = vector.shape_cast %48 : vector<1x4x128xf32> to vector<4x128xf32>
    %c3_38 = arith.constant 3 : index
    %c0_39 = arith.constant 0 : index
    %c0_40 = arith.constant 0 : index
    %50 = vector.load %arg1[%c3_38, %c0_39, %c0_40] : memref<4x4x128xf32, #tpu.memory_space<vmem>>, vector<1x4x128xf32>
    %51 = vector.shape_cast %50 : vector<1x4x128xf32> to vector<4x128xf32>
    %c3_41 = arith.constant 3 : index
    %c0_42 = arith.constant 0 : index
    %c0_43 = arith.constant 0 : index
    %52 = vector.load %arg2[%c3_41, %c0_42, %c0_43] : memref<4x4x128xf32, #tpu.memory_space<vmem>>, vector<1x4x128xf32>
    %53 = vector.shape_cast %52 : vector<1x4x128xf32> to vector<4x128xf32>
    %54 = arith.mulf %47, %51 : vector<4x128xf32>
    %55 = arith.addf %41, %54 : vector<4x128xf32>
    %56 = arith.mulf %49, %53 : vector<4x128xf32>
    %57 = arith.addf %55, %56 : vector<4x128xf32>
    %58 = arith.mulf %47, %53 : vector<4x128xf32>
    %59 = arith.addf %45, %58 : vector<4x128xf32>
    %60 = arith.mulf %49, %51 : vector<4x128xf32>
    %61 = arith.subf %59, %60 : vector<4x128xf32>
    %c0_44 = arith.constant 0 : index
    %c0_45 = arith.constant 0 : index
    %62 = vector.load %arg5[%c0_44, %c0_45] : memref<4x128xf32, #tpu.memory_space<vmem>>, vector<4x128xf32>
    tpu.vector_store %arg5[%c0_44, %c0_45], %57 {strides = array<i32>} : memref<4x128xf32, #tpu.memory_space<vmem>>, vector<4x128xf32>,
    %c0_46 = arith.constant 0 : index
    %c0_47 = arith.constant 0 : index
    %63 = vector.load %arg6[%c0_46, %c0_47] : memref<4x128xf32, #tpu.memory_space<vmem>>, vector<4x128xf32>
    tpu.vector_store %arg6[%c0_46, %c0_47], %61 {strides = array<i32>} : memref<4x128xf32, #tpu.memory_space<vmem>>, vector<4x128xf32>,
    return
  }
  func.func @transform_0(%arg0: i32) -> (i32, i32, i32) {
    %c0_i32 = arith.constant 0 : i32
    %c0_i32_0 = arith.constant 0 : i32
    %c0_i32_1 = arith.constant 0 : i32
    return %c0_i32, %arg0, %c0_i32_0 : i32, i32, i32
  }
  func.func @transform_1(%arg0: i32) -> (i32, i32, i32) {
    %c0_i32 = arith.constant 0 : i32
    %c0_i32_0 = arith.constant 0 : i32
    %c0_i32_1 = arith.constant 0 : i32
    return %c0_i32, %arg0, %c0_i32_0 : i32, i32, i32
  }
  func.func @transform_2(%arg0: i32) -> (i32, i32, i32) {
    %c0_i32 = arith.constant 0 : i32
    %c0_i32_0 = arith.constant 0 : i32
    %c0_i32_1 = arith.constant 0 : i32
    return %c0_i32, %arg0, %c0_i32_0 : i32, i32, i32
  }
  func.func @transform_3(%arg0: i32) -> (i32, i32, i32) {
    %c0_i32 = arith.constant 0 : i32
    %c0_i32_0 = arith.constant 0 : i32
    %c0_i32_1 = arith.constant 0 : i32
    return %c0_i32, %arg0, %c0_i32_0 : i32, i32, i32
  }
  func.func @transform_4(%arg0: i32) -> (i32, i32) {
    %c0_i32 = arith.constant 0 : i32
    %c0_i32_0 = arith.constant 0 : i32
    return %arg0, %c0_i32 : i32, i32
  }
  func.func @transform_5(%arg0: i32) -> (i32, i32) {
    %c0_i32 = arith.constant 0 : i32
    %c0_i32_0 = arith.constant 0 : i32
    return %arg0, %c0_i32 : i32, i32
  }
}

module attributes {stable_mosaic.version = 11 : i64} {
  func.func @cg_init_zero_kernel(%arg0: i32, %arg1: memref<4x128xf32, #tpu.memory_space<vmem>>, %arg2: memref<4x128xf32, #tpu.memory_space<vmem>>, %arg3: memref<4x128xf32, #tpu.memory_space<vmem>>, %arg4: memref<4x128xf32, #tpu.memory_space<vmem>>, %arg5: memref<4x4x128xf32, #tpu.memory_space<vmem>>, %arg6: memref<4x4x128xf32, #tpu.memory_space<vmem>>, %arg7: memref<4x128xf32, #tpu.memory_space<vmem>>, %arg8: memref<4x128xf32, #tpu.memory_space<vmem>>, %arg9: memref<4x128xf32, #tpu.memory_space<vmem>>, %arg10: memref<4x128xf32, #tpu.memory_space<vmem>>, %arg11: memref<4x4x128xf32, #tpu.memory_space<vmem>>, %arg12: memref<4x4x128xf32, #tpu.memory_space<vmem>>, %arg13: memref<1x1xf32, #tpu.memory_space<vmem>>) attributes {dimension_semantics = [#tpu.dimension_semantics<arbitrary>], iteration_bounds = array<i64: 1>, scalar_prefetch = 0 : i64, scratch_operands = 0 : i64, tpu.core_type = #tpu.core_type<tc>, window_params = [{transform_indices = @transform_0, window_bounds = array<i64: 4, 128>}, {transform_indices = @transform_1, window_bounds = array<i64: 4, 128>}, {transform_indices = @transform_2, window_bounds = array<i64: 4, 128>}, {transform_indices = @transform_3, window_bounds = array<i64: 4, 128>}, {transform_indices = @transform_4, window_bounds = array<i64: 4, 4, 128>}, {transform_indices = @transform_5, window_bounds = array<i64: 4, 4, 128>}, {transform_indices = @transform_6, window_bounds = array<i64: 4, 128>}, {transform_indices = @transform_7, window_bounds = array<i64: 4, 128>}, {transform_indices = @transform_8, window_bounds = array<i64: 4, 128>}, {transform_indices = @transform_9, window_bounds = array<i64: 4, 128>}, {transform_indices = @transform_10, window_bounds = array<i64: 4, 4, 128>}, {transform_indices = @transform_11, window_bounds = array<i64: 4, 4, 128>}, {pipeline_mode = #tpu.pipeline_mode<synchronous>, transform_indices = @transform_12, window_bounds = array<i64: 1, 1>}]} {
    %c0 = arith.constant 0 : index
    %c0_0 = arith.constant 0 : index
    %0 = vector.load %arg1[%c0, %c0_0] : memref<4x128xf32, #tpu.memory_space<vmem>>, vector<4x128xf32>
    %cst = arith.constant 0.000000e+00 : f32
    %1 = vector.broadcast %cst : f32 to vector<4x128xf32>
    %2 = arith.mulf %1, %0 : vector<4x128xf32>
    %c0_1 = arith.constant 0 : index
    %c0_2 = arith.constant 0 : index
    %3 = vector.load %arg3[%c0_1, %c0_2] : memref<4x128xf32, #tpu.memory_space<vmem>>, vector<4x128xf32>
    %cst_3 = arith.constant 5.000000e-01 : f32
    %4 = vector.broadcast %cst_3 : f32 to vector<4x128xf32>
    %5 = arith.mulf %4, %3 : vector<4x128xf32>
    %6 = arith.addf %2, %5 : vector<4x128xf32>
    %c0_4 = arith.constant 0 : index
    %c0_5 = arith.constant 0 : index
    %7 = vector.load %arg2[%c0_4, %c0_5] : memref<4x128xf32, #tpu.memory_space<vmem>>, vector<4x128xf32>
    %cst_6 = arith.constant 0.000000e+00 : f32
    %8 = vector.broadcast %cst_6 : f32 to vector<4x128xf32>
    %9 = arith.mulf %8, %7 : vector<4x128xf32>
    %c0_7 = arith.constant 0 : index
    %c0_8 = arith.constant 0 : index
    %10 = vector.load %arg4[%c0_7, %c0_8] : memref<4x128xf32, #tpu.memory_space<vmem>>, vector<4x128xf32>
    %cst_9 = arith.constant 5.000000e-01 : f32
    %11 = vector.broadcast %cst_9 : f32 to vector<4x128xf32>
    %12 = arith.mulf %11, %10 : vector<4x128xf32>
    %13 = arith.addf %9, %12 : vector<4x128xf32>
    %c0_10 = arith.constant 0 : index
    %c0_11 = arith.constant 0 : index
    %14 = vector.load %arg7[%c0_10, %c0_11] : memref<4x128xf32, #tpu.memory_space<vmem>>, vector<4x128xf32>
    tpu.vector_store %arg7[%c0_10, %c0_11], %6 {strides = array<i32>} : memref<4x128xf32, #tpu.memory_space<vmem>>, vector<4x128xf32>,
    %c0_12 = arith.constant 0 : index
    %c0_13 = arith.constant 0 : index
    %15 = vector.load %arg8[%c0_12, %c0_13] : memref<4x128xf32, #tpu.memory_space<vmem>>, vector<4x128xf32>
    tpu.vector_store %arg8[%c0_12, %c0_13], %13 {strides = array<i32>} : memref<4x128xf32, #tpu.memory_space<vmem>>, vector<4x128xf32>,
    %c0_14 = arith.constant 0 : index
    %c0_15 = arith.constant 0 : index
    %16 = vector.load %arg9[%c0_14, %c0_15] : memref<4x128xf32, #tpu.memory_space<vmem>>, vector<4x128xf32>
    tpu.vector_store %arg9[%c0_14, %c0_15], %6 {strides = array<i32>} : memref<4x128xf32, #tpu.memory_space<vmem>>, vector<4x128xf32>,
    %c0_16 = arith.constant 0 : index
    %c0_17 = arith.constant 0 : index
    %17 = vector.load %arg10[%c0_16, %c0_17] : memref<4x128xf32, #tpu.memory_space<vmem>>, vector<4x128xf32>
    tpu.vector_store %arg10[%c0_16, %c0_17], %13 {strides = array<i32>} : memref<4x128xf32, #tpu.memory_space<vmem>>, vector<4x128xf32>,
    %c0_18 = arith.constant 0 : index
    %c0_19 = arith.constant 0 : index
    %c0_20 = arith.constant 0 : index
    %18 = vector.load %arg5[%c0_18, %c0_19, %c0_20] : memref<4x4x128xf32, #tpu.memory_space<vmem>>, vector<1x4x128xf32>
    %19 = vector.shape_cast %18 : vector<1x4x128xf32> to vector<4x128xf32>
    %c0_21 = arith.constant 0 : index
    %c0_22 = arith.constant 0 : index
    %c0_23 = arith.constant 0 : index
    %20 = vector.load %arg6[%c0_21, %c0_22, %c0_23] : memref<4x4x128xf32, #tpu.memory_space<vmem>>, vector<1x4x128xf32>
    %21 = vector.shape_cast %20 : vector<1x4x128xf32> to vector<4x128xf32>
    %22 = arith.mulf %19, %6 : vector<4x128xf32>
    %23 = arith.mulf %21, %13 : vector<4x128xf32>
    %24 = arith.subf %22, %23 : vector<4x128xf32>
    %c0_24 = arith.constant 0 : index
    %c0_25 = arith.constant 0 : index
    %c0_26 = arith.constant 0 : index
    %25 = vector.load %arg11[%c0_24, %c0_25, %c0_26] : memref<4x4x128xf32, #tpu.memory_space<vmem>>, vector<1x4x128xf32>
    %26 = vector.shape_cast %25 : vector<1x4x128xf32> to vector<4x128xf32>
    %27 = vector.shape_cast %24 : vector<4x128xf32> to vector<1x4x128xf32>
    tpu.vector_store %arg11[%c0_24, %c0_25, %c0_26], %27 {strides = array<i32>} : memref<4x4x128xf32, #tpu.memory_space<vmem>>, vector<1x4x128xf32>,
    %28 = arith.mulf %19, %13 : vector<4x128xf32>
    %29 = arith.mulf %21, %6 : vector<4x128xf32>
    %30 = arith.addf %28, %29 : vector<4x128xf32>
    %c0_27 = arith.constant 0 : index
    %c0_28 = arith.constant 0 : index
    %c0_29 = arith.constant 0 : index
    %31 = vector.load %arg12[%c0_27, %c0_28, %c0_29] : memref<4x4x128xf32, #tpu.memory_space<vmem>>, vector<1x4x128xf32>
    %32 = vector.shape_cast %31 : vector<1x4x128xf32> to vector<4x128xf32>
    %33 = vector.shape_cast %30 : vector<4x128xf32> to vector<1x4x128xf32>
    tpu.vector_store %arg12[%c0_27, %c0_28, %c0_29], %33 {strides = array<i32>} : memref<4x4x128xf32, #tpu.memory_space<vmem>>, vector<1x4x128xf32>,
    %c1 = arith.constant 1 : index
    %c0_30 = arith.constant 0 : index
    %c0_31 = arith.constant 0 : index
    %34 = vector.load %arg5[%c1, %c0_30, %c0_31] : memref<4x4x128xf32, #tpu.memory_space<vmem>>, vector<1x4x128xf32>
    %35 = vector.shape_cast %34 : vector<1x4x128xf32> to vector<4x128xf32>
    %c1_32 = arith.constant 1 : index
    %c0_33 = arith.constant 0 : index
    %c0_34 = arith.constant 0 : index
    %36 = vector.load %arg6[%c1_32, %c0_33, %c0_34] : memref<4x4x128xf32, #tpu.memory_space<vmem>>, vector<1x4x128xf32>
    %37 = vector.shape_cast %36 : vector<1x4x128xf32> to vector<4x128xf32>
    %38 = arith.mulf %35, %6 : vector<4x128xf32>
    %39 = arith.mulf %37, %13 : vector<4x128xf32>
    %40 = arith.subf %38, %39 : vector<4x128xf32>
    %c1_35 = arith.constant 1 : index
    %c0_36 = arith.constant 0 : index
    %c0_37 = arith.constant 0 : index
    %41 = vector.load %arg11[%c1_35, %c0_36, %c0_37] : memref<4x4x128xf32, #tpu.memory_space<vmem>>, vector<1x4x128xf32>
    %42 = vector.shape_cast %41 : vector<1x4x128xf32> to vector<4x128xf32>
    %43 = vector.shape_cast %40 : vector<4x128xf32> to vector<1x4x128xf32>
    tpu.vector_store %arg11[%c1_35, %c0_36, %c0_37], %43 {strides = array<i32>} : memref<4x4x128xf32, #tpu.memory_space<vmem>>, vector<1x4x128xf32>,
    %44 = arith.mulf %35, %13 : vector<4x128xf32>
    %45 = arith.mulf %37, %6 : vector<4x128xf32>
    %46 = arith.addf %44, %45 : vector<4x128xf32>
    %c1_38 = arith.constant 1 : index
    %c0_39 = arith.constant 0 : index
    %c0_40 = arith.constant 0 : index
    %47 = vector.load %arg12[%c1_38, %c0_39, %c0_40] : memref<4x4x128xf32, #tpu.memory_space<vmem>>, vector<1x4x128xf32>
    %48 = vector.shape_cast %47 : vector<1x4x128xf32> to vector<4x128xf32>
    %49 = vector.shape_cast %46 : vector<4x128xf32> to vector<1x4x128xf32>
    tpu.vector_store %arg12[%c1_38, %c0_39, %c0_40], %49 {strides = array<i32>} : memref<4x4x128xf32, #tpu.memory_space<vmem>>, vector<1x4x128xf32>,
    %c2 = arith.constant 2 : index
    %c0_41 = arith.constant 0 : index
    %c0_42 = arith.constant 0 : index
    %50 = vector.load %arg5[%c2, %c0_41, %c0_42] : memref<4x4x128xf32, #tpu.memory_space<vmem>>, vector<1x4x128xf32>
    %51 = vector.shape_cast %50 : vector<1x4x128xf32> to vector<4x128xf32>
    %c2_43 = arith.constant 2 : index
    %c0_44 = arith.constant 0 : index
    %c0_45 = arith.constant 0 : index
    %52 = vector.load %arg6[%c2_43, %c0_44, %c0_45] : memref<4x4x128xf32, #tpu.memory_space<vmem>>, vector<1x4x128xf32>
    %53 = vector.shape_cast %52 : vector<1x4x128xf32> to vector<4x128xf32>
    %54 = arith.mulf %51, %6 : vector<4x128xf32>
    %55 = arith.mulf %53, %13 : vector<4x128xf32>
    %56 = arith.subf %54, %55 : vector<4x128xf32>
    %c2_46 = arith.constant 2 : index
    %c0_47 = arith.constant 0 : index
    %c0_48 = arith.constant 0 : index
    %57 = vector.load %arg11[%c2_46, %c0_47, %c0_48] : memref<4x4x128xf32, #tpu.memory_space<vmem>>, vector<1x4x128xf32>
    %58 = vector.shape_cast %57 : vector<1x4x128xf32> to vector<4x128xf32>
    %59 = vector.shape_cast %56 : vector<4x128xf32> to vector<1x4x128xf32>
    tpu.vector_store %arg11[%c2_46, %c0_47, %c0_48], %59 {strides = array<i32>} : memref<4x4x128xf32, #tpu.memory_space<vmem>>, vector<1x4x128xf32>,
    %60 = arith.mulf %51, %13 : vector<4x128xf32>
    %61 = arith.mulf %53, %6 : vector<4x128xf32>
    %62 = arith.addf %60, %61 : vector<4x128xf32>
    %c2_49 = arith.constant 2 : index
    %c0_50 = arith.constant 0 : index
    %c0_51 = arith.constant 0 : index
    %63 = vector.load %arg12[%c2_49, %c0_50, %c0_51] : memref<4x4x128xf32, #tpu.memory_space<vmem>>, vector<1x4x128xf32>
    %64 = vector.shape_cast %63 : vector<1x4x128xf32> to vector<4x128xf32>
    %65 = vector.shape_cast %62 : vector<4x128xf32> to vector<1x4x128xf32>
    tpu.vector_store %arg12[%c2_49, %c0_50, %c0_51], %65 {strides = array<i32>} : memref<4x4x128xf32, #tpu.memory_space<vmem>>, vector<1x4x128xf32>,
    %c3 = arith.constant 3 : index
    %c0_52 = arith.constant 0 : index
    %c0_53 = arith.constant 0 : index
    %66 = vector.load %arg5[%c3, %c0_52, %c0_53] : memref<4x4x128xf32, #tpu.memory_space<vmem>>, vector<1x4x128xf32>
    %67 = vector.shape_cast %66 : vector<1x4x128xf32> to vector<4x128xf32>
    %c3_54 = arith.constant 3 : index
    %c0_55 = arith.constant 0 : index
    %c0_56 = arith.constant 0 : index
    %68 = vector.load %arg6[%c3_54, %c0_55, %c0_56] : memref<4x4x128xf32, #tpu.memory_space<vmem>>, vector<1x4x128xf32>
    %69 = vector.shape_cast %68 : vector<1x4x128xf32> to vector<4x128xf32>
    %70 = arith.mulf %67, %6 : vector<4x128xf32>
    %71 = arith.mulf %69, %13 : vector<4x128xf32>
    %72 = arith.subf %70, %71 : vector<4x128xf32>
    %c3_57 = arith.constant 3 : index
    %c0_58 = arith.constant 0 : index
    %c0_59 = arith.constant 0 : index
    %73 = vector.load %arg11[%c3_57, %c0_58, %c0_59] : memref<4x4x128xf32, #tpu.memory_space<vmem>>, vector<1x4x128xf32>
    %74 = vector.shape_cast %73 : vector<1x4x128xf32> to vector<4x128xf32>
    %75 = vector.shape_cast %72 : vector<4x128xf32> to vector<1x4x128xf32>
    tpu.vector_store %arg11[%c3_57, %c0_58, %c0_59], %75 {strides = array<i32>} : memref<4x4x128xf32, #tpu.memory_space<vmem>>, vector<1x4x128xf32>,
    %76 = arith.mulf %67, %13 : vector<4x128xf32>
    %77 = arith.mulf %69, %6 : vector<4x128xf32>
    %78 = arith.addf %76, %77 : vector<4x128xf32>
    %c3_60 = arith.constant 3 : index
    %c0_61 = arith.constant 0 : index
    %c0_62 = arith.constant 0 : index
    %79 = vector.load %arg12[%c3_60, %c0_61, %c0_62] : memref<4x4x128xf32, #tpu.memory_space<vmem>>, vector<1x4x128xf32>
    %80 = vector.shape_cast %79 : vector<1x4x128xf32> to vector<4x128xf32>
    %81 = vector.shape_cast %78 : vector<4x128xf32> to vector<1x4x128xf32>
    tpu.vector_store %arg12[%c3_60, %c0_61, %c0_62], %81 {strides = array<i32>} : memref<4x4x128xf32, #tpu.memory_space<vmem>>, vector<1x4x128xf32>,
    %82 = arith.mulf %6, %6 : vector<4x128xf32>
    %83 = arith.mulf %13, %13 : vector<4x128xf32>
    %84 = arith.addf %82, %83 : vector<4x128xf32>
    %85 = vector.shape_cast %84 : vector<4x128xf32> to vector<1x4x128xf32>
    %cst_63 = arith.constant dense<0.000000e+00> : vector<1xf32>
    %86 = vector.multi_reduction <add>, %85, %cst_63 [1, 2] : vector<1x4x128xf32> to vector<1xf32>
    %87 = vector.shape_cast %86 : vector<1xf32> to vector<1x1x1xf32>
    %88 = vector.extract %87[0, 0, 0] : f32 from vector<1x1x1xf32>
    %89 = vector.broadcast %88 : f32 to vector<1x1xf32>
    %c0_i32 = arith.constant 0 : i32
    %90 = arith.cmpi eq, %arg0, %c0_i32 : i32
    %91 = arith.extui %90 : i1 to i32
    %c0_i32_64 = arith.constant 0 : i32
    %92 = arith.cmpi ne, %91, %c0_i32_64 : i32
    scf.if %92 {
      %cst_69 = arith.constant 0.000000e+00 : f32
      %96 = vector.broadcast %cst_69 : f32 to vector<1x1xf32>
      %c0_70 = arith.constant 0 : index
      %c0_71 = arith.constant 0 : index
      %97 = vector.load %arg13[%c0_70, %c0_71] : memref<1x1xf32, #tpu.memory_space<vmem>>, vector<1x1xf32>
      tpu.vector_store %arg13[%c0_70, %c0_71], %96 {strides = array<i32>} : memref<1x1xf32, #tpu.memory_space<vmem>>, vector<1x1xf32>,
    } else {
    }
    %c0_65 = arith.constant 0 : index
    %c0_66 = arith.constant 0 : index
    %93 = vector.load %arg13[%c0_65, %c0_66] : memref<1x1xf32, #tpu.memory_space<vmem>>, vector<1x1xf32>
    %94 = arith.addf %93, %89 : vector<1x1xf32>
    %c0_67 = arith.constant 0 : index
    %c0_68 = arith.constant 0 : index
    %95 = vector.load %arg13[%c0_67, %c0_68] : memref<1x1xf32, #tpu.memory_space<vmem>>, vector<1x1xf32>
    tpu.vector_store %arg13[%c0_67, %c0_68], %94 {strides = array<i32>} : memref<1x1xf32, #tpu.memory_space<vmem>>, vector<1x1xf32>,
    return
  }
  func.func @transform_0(%arg0: i32) -> (i32, i32) {
    %c0_i32 = arith.constant 0 : i32
    %c0_i32_0 = arith.constant 0 : i32
    return %arg0, %c0_i32 : i32, i32
  }
  func.func @transform_1(%arg0: i32) -> (i32, i32) {
    %c0_i32 = arith.constant 0 : i32
    %c0_i32_0 = arith.constant 0 : i32
    return %arg0, %c0_i32 : i32, i32
  }
  func.func @transform_2(%arg0: i32) -> (i32, i32) {
    %c0_i32 = arith.constant 0 : i32
    %c0_i32_0 = arith.constant 0 : i32
    return %arg0, %c0_i32 : i32, i32
  }
  func.func @transform_3(%arg0: i32) -> (i32, i32) {
    %c0_i32 = arith.constant 0 : i32
    %c0_i32_0 = arith.constant 0 : i32
    return %arg0, %c0_i32 : i32, i32
  }
  func.func @transform_4(%arg0: i32) -> (i32, i32, i32) {
    %c0_i32 = arith.constant 0 : i32
    %c0_i32_0 = arith.constant 0 : i32
    %c0_i32_1 = arith.constant 0 : i32
    return %c0_i32, %arg0, %c0_i32_0 : i32, i32, i32
  }
  func.func @transform_5(%arg0: i32) -> (i32, i32, i32) {
    %c0_i32 = arith.constant 0 : i32
    %c0_i32_0 = arith.constant 0 : i32
    %c0_i32_1 = arith.constant 0 : i32
    return %c0_i32, %arg0, %c0_i32_0 : i32, i32, i32
  }
  func.func @transform_6(%arg0: i32) -> (i32, i32) {
    %c0_i32 = arith.constant 0 : i32
    %c0_i32_0 = arith.constant 0 : i32
    return %arg0, %c0_i32 : i32, i32
  }
  func.func @transform_7(%arg0: i32) -> (i32, i32) {
    %c0_i32 = arith.constant 0 : i32
    %c0_i32_0 = arith.constant 0 : i32
    return %arg0, %c0_i32 : i32, i32
  }
  func.func @transform_8(%arg0: i32) -> (i32, i32) {
    %c0_i32 = arith.constant 0 : i32
    %c0_i32_0 = arith.constant 0 : i32
    return %arg0, %c0_i32 : i32, i32
  }
  func.func @transform_9(%arg0: i32) -> (i32, i32) {
    %c0_i32 = arith.constant 0 : i32
    %c0_i32_0 = arith.constant 0 : i32
    return %arg0, %c0_i32 : i32, i32
  }
  func.func @transform_10(%arg0: i32) -> (i32, i32, i32) {
    %c0_i32 = arith.constant 0 : i32
    %c0_i32_0 = arith.constant 0 : i32
    %c0_i32_1 = arith.constant 0 : i32
    return %c0_i32, %arg0, %c0_i32_0 : i32, i32, i32
  }
  func.func @transform_11(%arg0: i32) -> (i32, i32, i32) {
    %c0_i32 = arith.constant 0 : i32
    %c0_i32_0 = arith.constant 0 : i32
    %c0_i32_1 = arith.constant 0 : i32
    return %c0_i32, %arg0, %c0_i32_0 : i32, i32, i32
  }
  func.func @transform_12(%arg0: i32) -> (i32, i32) {
    %c0_i32 = arith.constant 0 : i32
    %c0_i32_0 = arith.constant 0 : i32
    %c0_i32_1 = arith.constant 0 : i32
    return %c0_i32, %c0_i32_0 : i32, i32
  }
}

module attributes {stable_mosaic.version = 11 : i64} {
  func.func @cg_ap_kernel(%arg0: i32, %arg1: memref<4x4x128xf32, #tpu.memory_space<vmem>>, %arg2: memref<4x4x128xf32, #tpu.memory_space<vmem>>, %arg3: memref<4x4x128xf32, #tpu.memory_space<vmem>>, %arg4: memref<4x4x128xf32, #tpu.memory_space<vmem>>, %arg5: memref<4x128xf32, #tpu.memory_space<vmem>>, %arg6: memref<4x128xf32, #tpu.memory_space<vmem>>, %arg7: memref<4x128xf32, #tpu.memory_space<vmem>>, %arg8: memref<4x128xf32, #tpu.memory_space<vmem>>, %arg9: memref<1x1xf32, #tpu.memory_space<vmem>>) attributes {dimension_semantics = [#tpu.dimension_semantics<arbitrary>], iteration_bounds = array<i64: 1>, scalar_prefetch = 0 : i64, scratch_operands = 0 : i64, tpu.core_type = #tpu.core_type<tc>, window_params = [{transform_indices = @transform_0, window_bounds = array<i64: 4, 4, 128>}, {transform_indices = @transform_1, window_bounds = array<i64: 4, 4, 128>}, {transform_indices = @transform_2, window_bounds = array<i64: 4, 4, 128>}, {transform_indices = @transform_3, window_bounds = array<i64: 4, 4, 128>}, {transform_indices = @transform_4, window_bounds = array<i64: 4, 128>}, {transform_indices = @transform_5, window_bounds = array<i64: 4, 128>}, {transform_indices = @transform_6, window_bounds = array<i64: 4, 128>}, {transform_indices = @transform_7, window_bounds = array<i64: 4, 128>}, {pipeline_mode = #tpu.pipeline_mode<synchronous>, transform_indices = @transform_8, window_bounds = array<i64: 1, 1>}]} {
    %c0 = arith.constant 0 : index
    %c0_0 = arith.constant 0 : index
    %0 = vector.load %arg5[%c0, %c0_0] : memref<4x128xf32, #tpu.memory_space<vmem>>, vector<4x128xf32>
    %c0_1 = arith.constant 0 : index
    %c0_2 = arith.constant 0 : index
    %1 = vector.load %arg6[%c0_1, %c0_2] : memref<4x128xf32, #tpu.memory_space<vmem>>, vector<4x128xf32>
    %c0_3 = arith.constant 0 : index
    %c0_4 = arith.constant 0 : index
    %c0_5 = arith.constant 0 : index
    %2 = vector.load %arg3[%c0_3, %c0_4, %c0_5] : memref<4x4x128xf32, #tpu.memory_space<vmem>>, vector<1x4x128xf32>
    %3 = vector.shape_cast %2 : vector<1x4x128xf32> to vector<4x128xf32>
    %c0_6 = arith.constant 0 : index
    %c0_7 = arith.constant 0 : index
    %c0_8 = arith.constant 0 : index
    %4 = vector.load %arg4[%c0_6, %c0_7, %c0_8] : memref<4x4x128xf32, #tpu.memory_space<vmem>>, vector<1x4x128xf32>
    %5 = vector.shape_cast %4 : vector<1x4x128xf32> to vector<4x128xf32>
    %c0_9 = arith.constant 0 : index
    %c0_10 = arith.constant 0 : index
    %c0_11 = arith.constant 0 : index
    %6 = vector.load %arg1[%c0_9, %c0_10, %c0_11] : memref<4x4x128xf32, #tpu.memory_space<vmem>>, vector<1x4x128xf32>
    %7 = vector.shape_cast %6 : vector<1x4x128xf32> to vector<4x128xf32>
    %c0_12 = arith.constant 0 : index
    %c0_13 = arith.constant 0 : index
    %c0_14 = arith.constant 0 : index
    %8 = vector.load %arg2[%c0_12, %c0_13, %c0_14] : memref<4x4x128xf32, #tpu.memory_space<vmem>>, vector<1x4x128xf32>
    %9 = vector.shape_cast %8 : vector<1x4x128xf32> to vector<4x128xf32>
    %10 = arith.mulf %3, %7 : vector<4x128xf32>
    %11 = arith.mulf %5, %9 : vector<4x128xf32>
    %12 = arith.addf %10, %11 : vector<4x128xf32>
    %13 = arith.mulf %3, %9 : vector<4x128xf32>
    %14 = arith.mulf %5, %7 : vector<4x128xf32>
    %15 = arith.subf %13, %14 : vector<4x128xf32>
    %c1 = arith.constant 1 : index
    %c0_15 = arith.constant 0 : index
    %c0_16 = arith.constant 0 : index
    %16 = vector.load %arg3[%c1, %c0_15, %c0_16] : memref<4x4x128xf32, #tpu.memory_space<vmem>>, vector<1x4x128xf32>
    %17 = vector.shape_cast %16 : vector<1x4x128xf32> to vector<4x128xf32>
    %c1_17 = arith.constant 1 : index
    %c0_18 = arith.constant 0 : index
    %c0_19 = arith.constant 0 : index
    %18 = vector.load %arg4[%c1_17, %c0_18, %c0_19] : memref<4x4x128xf32, #tpu.memory_space<vmem>>, vector<1x4x128xf32>
    %19 = vector.shape_cast %18 : vector<1x4x128xf32> to vector<4x128xf32>
    %c1_20 = arith.constant 1 : index
    %c0_21 = arith.constant 0 : index
    %c0_22 = arith.constant 0 : index
    %20 = vector.load %arg1[%c1_20, %c0_21, %c0_22] : memref<4x4x128xf32, #tpu.memory_space<vmem>>, vector<1x4x128xf32>
    %21 = vector.shape_cast %20 : vector<1x4x128xf32> to vector<4x128xf32>
    %c1_23 = arith.constant 1 : index
    %c0_24 = arith.constant 0 : index
    %c0_25 = arith.constant 0 : index
    %22 = vector.load %arg2[%c1_23, %c0_24, %c0_25] : memref<4x4x128xf32, #tpu.memory_space<vmem>>, vector<1x4x128xf32>
    %23 = vector.shape_cast %22 : vector<1x4x128xf32> to vector<4x128xf32>
    %24 = arith.mulf %17, %21 : vector<4x128xf32>
    %25 = arith.addf %12, %24 : vector<4x128xf32>
    %26 = arith.mulf %19, %23 : vector<4x128xf32>
    %27 = arith.addf %25, %26 : vector<4x128xf32>
    %28 = arith.mulf %17, %23 : vector<4x128xf32>
    %29 = arith.addf %15, %28 : vector<4x128xf32>
    %30 = arith.mulf %19, %21 : vector<4x128xf32>
    %31 = arith.subf %29, %30 : vector<4x128xf32>
    %c2 = arith.constant 2 : index
    %c0_26 = arith.constant 0 : index
    %c0_27 = arith.constant 0 : index
    %32 = vector.load %arg3[%c2, %c0_26, %c0_27] : memref<4x4x128xf32, #tpu.memory_space<vmem>>, vector<1x4x128xf32>
    %33 = vector.shape_cast %32 : vector<1x4x128xf32> to vector<4x128xf32>
    %c2_28 = arith.constant 2 : index
    %c0_29 = arith.constant 0 : index
    %c0_30 = arith.constant 0 : index
    %34 = vector.load %arg4[%c2_28, %c0_29, %c0_30] : memref<4x4x128xf32, #tpu.memory_space<vmem>>, vector<1x4x128xf32>
    %35 = vector.shape_cast %34 : vector<1x4x128xf32> to vector<4x128xf32>
    %c2_31 = arith.constant 2 : index
    %c0_32 = arith.constant 0 : index
    %c0_33 = arith.constant 0 : index
    %36 = vector.load %arg1[%c2_31, %c0_32, %c0_33] : memref<4x4x128xf32, #tpu.memory_space<vmem>>, vector<1x4x128xf32>
    %37 = vector.shape_cast %36 : vector<1x4x128xf32> to vector<4x128xf32>
    %c2_34 = arith.constant 2 : index
    %c0_35 = arith.constant 0 : index
    %c0_36 = arith.constant 0 : index
    %38 = vector.load %arg2[%c2_34, %c0_35, %c0_36] : memref<4x4x128xf32, #tpu.memory_space<vmem>>, vector<1x4x128xf32>
    %39 = vector.shape_cast %38 : vector<1x4x128xf32> to vector<4x128xf32>
    %40 = arith.mulf %33, %37 : vector<4x128xf32>
    %41 = arith.addf %27, %40 : vector<4x128xf32>
    %42 = arith.mulf %35, %39 : vector<4x128xf32>
    %43 = arith.addf %41, %42 : vector<4x128xf32>
    %44 = arith.mulf %33, %39 : vector<4x128xf32>
    %45 = arith.addf %31, %44 : vector<4x128xf32>
    %46 = arith.mulf %35, %37 : vector<4x128xf32>
    %47 = arith.subf %45, %46 : vector<4x128xf32>
    %c3 = arith.constant 3 : index
    %c0_37 = arith.constant 0 : index
    %c0_38 = arith.constant 0 : index
    %48 = vector.load %arg3[%c3, %c0_37, %c0_38] : memref<4x4x128xf32, #tpu.memory_space<vmem>>, vector<1x4x128xf32>
    %49 = vector.shape_cast %48 : vector<1x4x128xf32> to vector<4x128xf32>
    %c3_39 = arith.constant 3 : index
    %c0_40 = arith.constant 0 : index
    %c0_41 = arith.constant 0 : index
    %50 = vector.load %arg4[%c3_39, %c0_40, %c0_41] : memref<4x4x128xf32, #tpu.memory_space<vmem>>, vector<1x4x128xf32>
    %51 = vector.shape_cast %50 : vector<1x4x128xf32> to vector<4x128xf32>
    %c3_42 = arith.constant 3 : index
    %c0_43 = arith.constant 0 : index
    %c0_44 = arith.constant 0 : index
    %52 = vector.load %arg1[%c3_42, %c0_43, %c0_44] : memref<4x4x128xf32, #tpu.memory_space<vmem>>, vector<1x4x128xf32>
    %53 = vector.shape_cast %52 : vector<1x4x128xf32> to vector<4x128xf32>
    %c3_45 = arith.constant 3 : index
    %c0_46 = arith.constant 0 : index
    %c0_47 = arith.constant 0 : index
    %54 = vector.load %arg2[%c3_45, %c0_46, %c0_47] : memref<4x4x128xf32, #tpu.memory_space<vmem>>, vector<1x4x128xf32>
    %55 = vector.shape_cast %54 : vector<1x4x128xf32> to vector<4x128xf32>
    %56 = arith.mulf %49, %53 : vector<4x128xf32>
    %57 = arith.addf %43, %56 : vector<4x128xf32>
    %58 = arith.mulf %51, %55 : vector<4x128xf32>
    %59 = arith.addf %57, %58 : vector<4x128xf32>
    %60 = arith.mulf %49, %55 : vector<4x128xf32>
    %61 = arith.addf %47, %60 : vector<4x128xf32>
    %62 = arith.mulf %51, %53 : vector<4x128xf32>
    %63 = arith.subf %61, %62 : vector<4x128xf32>
    %cst = arith.constant 5.000000e-01 : f32
    %64 = vector.broadcast %cst : f32 to vector<4x128xf32>
    %65 = arith.mulf %64, %0 : vector<4x128xf32>
    %66 = arith.addf %59, %65 : vector<4x128xf32>
    %cst_48 = arith.constant 5.000000e-01 : f32
    %67 = vector.broadcast %cst_48 : f32 to vector<4x128xf32>
    %68 = arith.mulf %67, %1 : vector<4x128xf32>
    %69 = arith.addf %63, %68 : vector<4x128xf32>
    %c0_49 = arith.constant 0 : index
    %c0_50 = arith.constant 0 : index
    %70 = vector.load %arg7[%c0_49, %c0_50] : memref<4x128xf32, #tpu.memory_space<vmem>>, vector<4x128xf32>
    tpu.vector_store %arg7[%c0_49, %c0_50], %66 {strides = array<i32>} : memref<4x128xf32, #tpu.memory_space<vmem>>, vector<4x128xf32>,
    %c0_51 = arith.constant 0 : index
    %c0_52 = arith.constant 0 : index
    %71 = vector.load %arg8[%c0_51, %c0_52] : memref<4x128xf32, #tpu.memory_space<vmem>>, vector<4x128xf32>
    tpu.vector_store %arg8[%c0_51, %c0_52], %69 {strides = array<i32>} : memref<4x128xf32, #tpu.memory_space<vmem>>, vector<4x128xf32>,
    %72 = arith.mulf %0, %66 : vector<4x128xf32>
    %73 = arith.mulf %1, %69 : vector<4x128xf32>
    %74 = arith.addf %72, %73 : vector<4x128xf32>
    %75 = vector.shape_cast %74 : vector<4x128xf32> to vector<1x4x128xf32>
    %cst_53 = arith.constant dense<0.000000e+00> : vector<1xf32>
    %76 = vector.multi_reduction <add>, %75, %cst_53 [1, 2] : vector<1x4x128xf32> to vector<1xf32>
    %77 = vector.shape_cast %76 : vector<1xf32> to vector<1x1x1xf32>
    %78 = vector.extract %77[0, 0, 0] : f32 from vector<1x1x1xf32>
    %79 = vector.broadcast %78 : f32 to vector<1x1xf32>
    %c0_i32 = arith.constant 0 : i32
    %80 = arith.cmpi eq, %arg0, %c0_i32 : i32
    %81 = arith.extui %80 : i1 to i32
    %c0_i32_54 = arith.constant 0 : i32
    %82 = arith.cmpi ne, %81, %c0_i32_54 : i32
    scf.if %82 {
      %cst_59 = arith.constant 0.000000e+00 : f32
      %86 = vector.broadcast %cst_59 : f32 to vector<1x1xf32>
      %c0_60 = arith.constant 0 : index
      %c0_61 = arith.constant 0 : index
      %87 = vector.load %arg9[%c0_60, %c0_61] : memref<1x1xf32, #tpu.memory_space<vmem>>, vector<1x1xf32>
      tpu.vector_store %arg9[%c0_60, %c0_61], %86 {strides = array<i32>} : memref<1x1xf32, #tpu.memory_space<vmem>>, vector<1x1xf32>,
    } else {
    }
    %c0_55 = arith.constant 0 : index
    %c0_56 = arith.constant 0 : index
    %83 = vector.load %arg9[%c0_55, %c0_56] : memref<1x1xf32, #tpu.memory_space<vmem>>, vector<1x1xf32>
    %84 = arith.addf %83, %79 : vector<1x1xf32>
    %c0_57 = arith.constant 0 : index
    %c0_58 = arith.constant 0 : index
    %85 = vector.load %arg9[%c0_57, %c0_58] : memref<1x1xf32, #tpu.memory_space<vmem>>, vector<1x1xf32>
    tpu.vector_store %arg9[%c0_57, %c0_58], %84 {strides = array<i32>} : memref<1x1xf32, #tpu.memory_space<vmem>>, vector<1x1xf32>,
    return
  }
  func.func @transform_0(%arg0: i32) -> (i32, i32, i32) {
    %c0_i32 = arith.constant 0 : i32
    %c0_i32_0 = arith.constant 0 : i32
    %c0_i32_1 = arith.constant 0 : i32
    return %c0_i32, %arg0, %c0_i32_0 : i32, i32, i32
  }
  func.func @transform_1(%arg0: i32) -> (i32, i32, i32) {
    %c0_i32 = arith.constant 0 : i32
    %c0_i32_0 = arith.constant 0 : i32
    %c0_i32_1 = arith.constant 0 : i32
    return %c0_i32, %arg0, %c0_i32_0 : i32, i32, i32
  }
  func.func @transform_2(%arg0: i32) -> (i32, i32, i32) {
    %c0_i32 = arith.constant 0 : i32
    %c0_i32_0 = arith.constant 0 : i32
    %c0_i32_1 = arith.constant 0 : i32
    return %c0_i32, %arg0, %c0_i32_0 : i32, i32, i32
  }
  func.func @transform_3(%arg0: i32) -> (i32, i32, i32) {
    %c0_i32 = arith.constant 0 : i32
    %c0_i32_0 = arith.constant 0 : i32
    %c0_i32_1 = arith.constant 0 : i32
    return %c0_i32, %arg0, %c0_i32_0 : i32, i32, i32
  }
  func.func @transform_4(%arg0: i32) -> (i32, i32) {
    %c0_i32 = arith.constant 0 : i32
    %c0_i32_0 = arith.constant 0 : i32
    return %arg0, %c0_i32 : i32, i32
  }
  func.func @transform_5(%arg0: i32) -> (i32, i32) {
    %c0_i32 = arith.constant 0 : i32
    %c0_i32_0 = arith.constant 0 : i32
    return %arg0, %c0_i32 : i32, i32
  }
  func.func @transform_6(%arg0: i32) -> (i32, i32) {
    %c0_i32 = arith.constant 0 : i32
    %c0_i32_0 = arith.constant 0 : i32
    return %arg0, %c0_i32 : i32, i32
  }
  func.func @transform_7(%arg0: i32) -> (i32, i32) {
    %c0_i32 = arith.constant 0 : i32
    %c0_i32_0 = arith.constant 0 : i32
    return %arg0, %c0_i32 : i32, i32
  }
  func.func @transform_8(%arg0: i32) -> (i32, i32) {
    %c0_i32 = arith.constant 0 : i32
    %c0_i32_0 = arith.constant 0 : i32
    %c0_i32_1 = arith.constant 0 : i32
    return %c0_i32, %c0_i32_0 : i32, i32
  }
}

module attributes {stable_mosaic.version = 11 : i64} {
  func.func @cg_xr_kernel(%arg0: i32, %arg1: memref<4x128xf32, #tpu.memory_space<vmem>>, %arg2: memref<4x128xf32, #tpu.memory_space<vmem>>, %arg3: memref<4x128xf32, #tpu.memory_space<vmem>>, %arg4: memref<4x128xf32, #tpu.memory_space<vmem>>, %arg5: memref<4x128xf32, #tpu.memory_space<vmem>>, %arg6: memref<4x128xf32, #tpu.memory_space<vmem>>, %arg7: memref<4x128xf32, #tpu.memory_space<vmem>>, %arg8: memref<4x128xf32, #tpu.memory_space<vmem>>, %arg9: memref<1x1xf32, #tpu.memory_space<vmem>>, %arg10: memref<1x1xf32, #tpu.memory_space<vmem>>, %arg11: memref<4x128xf32, #tpu.memory_space<vmem>>, %arg12: memref<4x128xf32, #tpu.memory_space<vmem>>, %arg13: memref<4x128xf32, #tpu.memory_space<vmem>>, %arg14: memref<4x128xf32, #tpu.memory_space<vmem>>, %arg15: memref<1x1xf32, #tpu.memory_space<vmem>>) attributes {dimension_semantics = [#tpu.dimension_semantics<arbitrary>], iteration_bounds = array<i64: 1>, scalar_prefetch = 0 : i64, scratch_operands = 0 : i64, tpu.core_type = #tpu.core_type<tc>, window_params = [{transform_indices = @transform_0, window_bounds = array<i64: 4, 128>}, {transform_indices = @transform_1, window_bounds = array<i64: 4, 128>}, {transform_indices = @transform_2, window_bounds = array<i64: 4, 128>}, {transform_indices = @transform_3, window_bounds = array<i64: 4, 128>}, {transform_indices = @transform_4, window_bounds = array<i64: 4, 128>}, {transform_indices = @transform_5, window_bounds = array<i64: 4, 128>}, {transform_indices = @transform_6, window_bounds = array<i64: 4, 128>}, {transform_indices = @transform_7, window_bounds = array<i64: 4, 128>}, {pipeline_mode = #tpu.pipeline_mode<synchronous>, transform_indices = @transform_8, window_bounds = array<i64: 1, 1>}, {pipeline_mode = #tpu.pipeline_mode<synchronous>, transform_indices = @transform_9, window_bounds = array<i64: 1, 1>}, {transform_indices = @transform_10, window_bounds = array<i64: 4, 128>}, {transform_indices = @transform_11, window_bounds = array<i64: 4, 128>}, {transform_indices = @transform_12, window_bounds = array<i64: 4, 128>}, {transform_indices = @transform_13, window_bounds = array<i64: 4, 128>}, {pipeline_mode = #tpu.pipeline_mode<synchronous>, transform_indices = @transform_14, window_bounds = array<i64: 1, 1>}]} {
    %c0 = arith.constant 0 : index
    %c0_0 = arith.constant 0 : index
    %0 = vector.load %arg9[%c0, %c0_0] : memref<1x1xf32, #tpu.memory_space<vmem>>, vector<1x1xf32>
    %c0_1 = arith.constant 0 : index
    %c0_2 = arith.constant 0 : index
    %1 = vector.load %arg10[%c0_1, %c0_2] : memref<1x1xf32, #tpu.memory_space<vmem>>, vector<1x1xf32>
    %cst = arith.constant 9.99999996E-13 : f32
    %2 = vector.broadcast %cst : f32 to vector<1x1xf32>
    %3 = arith.addf %1, %2 : vector<1x1xf32>
    %4 = arith.divf %0, %3 : vector<1x1xf32>
    %c0_3 = arith.constant 0 : index
    %c0_4 = arith.constant 0 : index
    %5 = vector.load %arg1[%c0_3, %c0_4] : memref<4x128xf32, #tpu.memory_space<vmem>>, vector<4x128xf32>
    %c0_5 = arith.constant 0 : index
    %c0_6 = arith.constant 0 : index
    %6 = vector.load %arg5[%c0_5, %c0_6] : memref<4x128xf32, #tpu.memory_space<vmem>>, vector<4x128xf32>
    %7 = vector.broadcast %4 : vector<1x1xf32> to vector<4x128xf32>
    %8 = arith.mulf %7, %6 : vector<4x128xf32>
    %9 = arith.addf %5, %8 : vector<4x128xf32>
    %c0_7 = arith.constant 0 : index
    %c0_8 = arith.constant 0 : index
    %10 = vector.load %arg11[%c0_7, %c0_8] : memref<4x128xf32, #tpu.memory_space<vmem>>, vector<4x128xf32>
    tpu.vector_store %arg11[%c0_7, %c0_8], %9 {strides = array<i32>} : memref<4x128xf32, #tpu.memory_space<vmem>>, vector<4x128xf32>,
    %c0_9 = arith.constant 0 : index
    %c0_10 = arith.constant 0 : index
    %11 = vector.load %arg2[%c0_9, %c0_10] : memref<4x128xf32, #tpu.memory_space<vmem>>, vector<4x128xf32>
    %c0_11 = arith.constant 0 : index
    %c0_12 = arith.constant 0 : index
    %12 = vector.load %arg6[%c0_11, %c0_12] : memref<4x128xf32, #tpu.memory_space<vmem>>, vector<4x128xf32>
    %13 = vector.broadcast %4 : vector<1x1xf32> to vector<4x128xf32>
    %14 = arith.mulf %13, %12 : vector<4x128xf32>
    %15 = arith.addf %11, %14 : vector<4x128xf32>
    %c0_13 = arith.constant 0 : index
    %c0_14 = arith.constant 0 : index
    %16 = vector.load %arg12[%c0_13, %c0_14] : memref<4x128xf32, #tpu.memory_space<vmem>>, vector<4x128xf32>
    tpu.vector_store %arg12[%c0_13, %c0_14], %15 {strides = array<i32>} : memref<4x128xf32, #tpu.memory_space<vmem>>, vector<4x128xf32>,
    %c0_15 = arith.constant 0 : index
    %c0_16 = arith.constant 0 : index
    %17 = vector.load %arg3[%c0_15, %c0_16] : memref<4x128xf32, #tpu.memory_space<vmem>>, vector<4x128xf32>
    %c0_17 = arith.constant 0 : index
    %c0_18 = arith.constant 0 : index
    %18 = vector.load %arg7[%c0_17, %c0_18] : memref<4x128xf32, #tpu.memory_space<vmem>>, vector<4x128xf32>
    %19 = vector.broadcast %4 : vector<1x1xf32> to vector<4x128xf32>
    %20 = arith.mulf %19, %18 : vector<4x128xf32>
    %21 = arith.subf %17, %20 : vector<4x128xf32>
    %c0_19 = arith.constant 0 : index
    %c0_20 = arith.constant 0 : index
    %22 = vector.load %arg4[%c0_19, %c0_20] : memref<4x128xf32, #tpu.memory_space<vmem>>, vector<4x128xf32>
    %c0_21 = arith.constant 0 : index
    %c0_22 = arith.constant 0 : index
    %23 = vector.load %arg8[%c0_21, %c0_22] : memref<4x128xf32, #tpu.memory_space<vmem>>, vector<4x128xf32>
    %24 = vector.broadcast %4 : vector<1x1xf32> to vector<4x128xf32>
    %25 = arith.mulf %24, %23 : vector<4x128xf32>
    %26 = arith.subf %22, %25 : vector<4x128xf32>
    %c0_23 = arith.constant 0 : index
    %c0_24 = arith.constant 0 : index
    %27 = vector.load %arg13[%c0_23, %c0_24] : memref<4x128xf32, #tpu.memory_space<vmem>>, vector<4x128xf32>
    tpu.vector_store %arg13[%c0_23, %c0_24], %21 {strides = array<i32>} : memref<4x128xf32, #tpu.memory_space<vmem>>, vector<4x128xf32>,
    %c0_25 = arith.constant 0 : index
    %c0_26 = arith.constant 0 : index
    %28 = vector.load %arg14[%c0_25, %c0_26] : memref<4x128xf32, #tpu.memory_space<vmem>>, vector<4x128xf32>
    tpu.vector_store %arg14[%c0_25, %c0_26], %26 {strides = array<i32>} : memref<4x128xf32, #tpu.memory_space<vmem>>, vector<4x128xf32>,
    %29 = arith.mulf %21, %21 : vector<4x128xf32>
    %30 = arith.mulf %26, %26 : vector<4x128xf32>
    %31 = arith.addf %29, %30 : vector<4x128xf32>
    %32 = vector.shape_cast %31 : vector<4x128xf32> to vector<1x4x128xf32>
    %cst_27 = arith.constant dense<0.000000e+00> : vector<1xf32>
    %33 = vector.multi_reduction <add>, %32, %cst_27 [1, 2] : vector<1x4x128xf32> to vector<1xf32>
    %34 = vector.shape_cast %33 : vector<1xf32> to vector<1x1x1xf32>
    %35 = vector.extract %34[0, 0, 0] : f32 from vector<1x1x1xf32>
    %36 = vector.broadcast %35 : f32 to vector<1x1xf32>
    %c0_i32 = arith.constant 0 : i32
    %37 = arith.cmpi eq, %arg0, %c0_i32 : i32
    %38 = arith.extui %37 : i1 to i32
    %c0_i32_28 = arith.constant 0 : i32
    %39 = arith.cmpi ne, %38, %c0_i32_28 : i32
    scf.if %39 {
      %cst_33 = arith.constant 0.000000e+00 : f32
      %43 = vector.broadcast %cst_33 : f32 to vector<1x1xf32>
      %c0_34 = arith.constant 0 : index
      %c0_35 = arith.constant 0 : index
      %44 = vector.load %arg15[%c0_34, %c0_35] : memref<1x1xf32, #tpu.memory_space<vmem>>, vector<1x1xf32>
      tpu.vector_store %arg15[%c0_34, %c0_35], %43 {strides = array<i32>} : memref<1x1xf32, #tpu.memory_space<vmem>>, vector<1x1xf32>,
    } else {
    }
    %c0_29 = arith.constant 0 : index
    %c0_30 = arith.constant 0 : index
    %40 = vector.load %arg15[%c0_29, %c0_30] : memref<1x1xf32, #tpu.memory_space<vmem>>, vector<1x1xf32>
    %41 = arith.addf %40, %36 : vector<1x1xf32>
    %c0_31 = arith.constant 0 : index
    %c0_32 = arith.constant 0 : index
    %42 = vector.load %arg15[%c0_31, %c0_32] : memref<1x1xf32, #tpu.memory_space<vmem>>, vector<1x1xf32>
    tpu.vector_store %arg15[%c0_31, %c0_32], %41 {strides = array<i32>} : memref<1x1xf32, #tpu.memory_space<vmem>>, vector<1x1xf32>,
    return
  }
  func.func @transform_0(%arg0: i32) -> (i32, i32) {
    %c0_i32 = arith.constant 0 : i32
    %c0_i32_0 = arith.constant 0 : i32
    return %arg0, %c0_i32 : i32, i32
  }
  func.func @transform_1(%arg0: i32) -> (i32, i32) {
    %c0_i32 = arith.constant 0 : i32
    %c0_i32_0 = arith.constant 0 : i32
    return %arg0, %c0_i32 : i32, i32
  }
  func.func @transform_2(%arg0: i32) -> (i32, i32) {
    %c0_i32 = arith.constant 0 : i32
    %c0_i32_0 = arith.constant 0 : i32
    return %arg0, %c0_i32 : i32, i32
  }
  func.func @transform_3(%arg0: i32) -> (i32, i32) {
    %c0_i32 = arith.constant 0 : i32
    %c0_i32_0 = arith.constant 0 : i32
    return %arg0, %c0_i32 : i32, i32
  }
  func.func @transform_4(%arg0: i32) -> (i32, i32) {
    %c0_i32 = arith.constant 0 : i32
    %c0_i32_0 = arith.constant 0 : i32
    return %arg0, %c0_i32 : i32, i32
  }
  func.func @transform_5(%arg0: i32) -> (i32, i32) {
    %c0_i32 = arith.constant 0 : i32
    %c0_i32_0 = arith.constant 0 : i32
    return %arg0, %c0_i32 : i32, i32
  }
  func.func @transform_6(%arg0: i32) -> (i32, i32) {
    %c0_i32 = arith.constant 0 : i32
    %c0_i32_0 = arith.constant 0 : i32
    return %arg0, %c0_i32 : i32, i32
  }
  func.func @transform_7(%arg0: i32) -> (i32, i32) {
    %c0_i32 = arith.constant 0 : i32
    %c0_i32_0 = arith.constant 0 : i32
    return %arg0, %c0_i32 : i32, i32
  }
  func.func @transform_8(%arg0: i32) -> (i32, i32) {
    %c0_i32 = arith.constant 0 : i32
    %c0_i32_0 = arith.constant 0 : i32
    %c0_i32_1 = arith.constant 0 : i32
    return %c0_i32, %c0_i32_0 : i32, i32
  }
  func.func @transform_9(%arg0: i32) -> (i32, i32) {
    %c0_i32 = arith.constant 0 : i32
    %c0_i32_0 = arith.constant 0 : i32
    %c0_i32_1 = arith.constant 0 : i32
    return %c0_i32, %c0_i32_0 : i32, i32
  }
  func.func @transform_10(%arg0: i32) -> (i32, i32) {
    %c0_i32 = arith.constant 0 : i32
    %c0_i32_0 = arith.constant 0 : i32
    return %arg0, %c0_i32 : i32, i32
  }
  func.func @transform_11(%arg0: i32) -> (i32, i32) {
    %c0_i32 = arith.constant 0 : i32
    %c0_i32_0 = arith.constant 0 : i32
    return %arg0, %c0_i32 : i32, i32
  }
  func.func @transform_12(%arg0: i32) -> (i32, i32) {
    %c0_i32 = arith.constant 0 : i32
    %c0_i32_0 = arith.constant 0 : i32
    return %arg0, %c0_i32 : i32, i32
  }
  func.func @transform_13(%arg0: i32) -> (i32, i32) {
    %c0_i32 = arith.constant 0 : i32
    %c0_i32_0 = arith.constant 0 : i32
    return %arg0, %c0_i32 : i32, i32
  }
  func.func @transform_14(%arg0: i32) -> (i32, i32) {
    %c0_i32 = arith.constant 0 : i32
    %c0_i32_0 = arith.constant 0 : i32
    %c0_i32_1 = arith.constant 0 : i32
    return %c0_i32, %c0_i32_0 : i32, i32
  }
}

module attributes {stable_mosaic.version = 11 : i64} {
  func.func @cg_pe_kernel(%arg0: i32, %arg1: memref<4x128xf32, #tpu.memory_space<vmem>>, %arg2: memref<4x128xf32, #tpu.memory_space<vmem>>, %arg3: memref<4x128xf32, #tpu.memory_space<vmem>>, %arg4: memref<4x128xf32, #tpu.memory_space<vmem>>, %arg5: memref<4x4x128xf32, #tpu.memory_space<vmem>>, %arg6: memref<4x4x128xf32, #tpu.memory_space<vmem>>, %arg7: memref<1x1xf32, #tpu.memory_space<vmem>>, %arg8: memref<1x1xf32, #tpu.memory_space<vmem>>, %arg9: memref<4x128xf32, #tpu.memory_space<vmem>>, %arg10: memref<4x128xf32, #tpu.memory_space<vmem>>, %arg11: memref<4x4x128xf32, #tpu.memory_space<vmem>>, %arg12: memref<4x4x128xf32, #tpu.memory_space<vmem>>) attributes {dimension_semantics = [#tpu.dimension_semantics<parallel>], iteration_bounds = array<i64: 1>, scalar_prefetch = 0 : i64, scratch_operands = 0 : i64, tpu.core_type = #tpu.core_type<tc>, window_params = [{transform_indices = @transform_0, window_bounds = array<i64: 4, 128>}, {transform_indices = @transform_1, window_bounds = array<i64: 4, 128>}, {transform_indices = @transform_2, window_bounds = array<i64: 4, 128>}, {transform_indices = @transform_3, window_bounds = array<i64: 4, 128>}, {transform_indices = @transform_4, window_bounds = array<i64: 4, 4, 128>}, {transform_indices = @transform_5, window_bounds = array<i64: 4, 4, 128>}, {pipeline_mode = #tpu.pipeline_mode<synchronous>, transform_indices = @transform_6, window_bounds = array<i64: 1, 1>}, {pipeline_mode = #tpu.pipeline_mode<synchronous>, transform_indices = @transform_7, window_bounds = array<i64: 1, 1>}, {transform_indices = @transform_8, window_bounds = array<i64: 4, 128>}, {transform_indices = @transform_9, window_bounds = array<i64: 4, 128>}, {transform_indices = @transform_10, window_bounds = array<i64: 4, 4, 128>}, {transform_indices = @transform_11, window_bounds = array<i64: 4, 4, 128>}]} {
    %c0 = arith.constant 0 : index
    %c0_0 = arith.constant 0 : index
    %0 = vector.load %arg8[%c0, %c0_0] : memref<1x1xf32, #tpu.memory_space<vmem>>, vector<1x1xf32>
    %c0_1 = arith.constant 0 : index
    %c0_2 = arith.constant 0 : index
    %1 = vector.load %arg7[%c0_1, %c0_2] : memref<1x1xf32, #tpu.memory_space<vmem>>, vector<1x1xf32>
    %cst = arith.constant 9.99999996E-13 : f32
    %2 = vector.broadcast %cst : f32 to vector<1x1xf32>
    %3 = arith.addf %1, %2 : vector<1x1xf32>
    %4 = arith.divf %0, %3 : vector<1x1xf32>
    %c0_3 = arith.constant 0 : index
    %c0_4 = arith.constant 0 : index
    %5 = vector.load %arg1[%c0_3, %c0_4] : memref<4x128xf32, #tpu.memory_space<vmem>>, vector<4x128xf32>
    %c0_5 = arith.constant 0 : index
    %c0_6 = arith.constant 0 : index
    %6 = vector.load %arg3[%c0_5, %c0_6] : memref<4x128xf32, #tpu.memory_space<vmem>>, vector<4x128xf32>
    %7 = vector.broadcast %4 : vector<1x1xf32> to vector<4x128xf32>
    %8 = arith.mulf %7, %6 : vector<4x128xf32>
    %9 = arith.addf %5, %8 : vector<4x128xf32>
    %c0_7 = arith.constant 0 : index
    %c0_8 = arith.constant 0 : index
    %10 = vector.load %arg2[%c0_7, %c0_8] : memref<4x128xf32, #tpu.memory_space<vmem>>, vector<4x128xf32>
    %c0_9 = arith.constant 0 : index
    %c0_10 = arith.constant 0 : index
    %11 = vector.load %arg4[%c0_9, %c0_10] : memref<4x128xf32, #tpu.memory_space<vmem>>, vector<4x128xf32>
    %12 = vector.broadcast %4 : vector<1x1xf32> to vector<4x128xf32>
    %13 = arith.mulf %12, %11 : vector<4x128xf32>
    %14 = arith.addf %10, %13 : vector<4x128xf32>
    %c0_11 = arith.constant 0 : index
    %c0_12 = arith.constant 0 : index
    %15 = vector.load %arg9[%c0_11, %c0_12] : memref<4x128xf32, #tpu.memory_space<vmem>>, vector<4x128xf32>
    tpu.vector_store %arg9[%c0_11, %c0_12], %9 {strides = array<i32>} : memref<4x128xf32, #tpu.memory_space<vmem>>, vector<4x128xf32>,
    %c0_13 = arith.constant 0 : index
    %c0_14 = arith.constant 0 : index
    %16 = vector.load %arg10[%c0_13, %c0_14] : memref<4x128xf32, #tpu.memory_space<vmem>>, vector<4x128xf32>
    tpu.vector_store %arg10[%c0_13, %c0_14], %14 {strides = array<i32>} : memref<4x128xf32, #tpu.memory_space<vmem>>, vector<4x128xf32>,
    %c0_15 = arith.constant 0 : index
    %c0_16 = arith.constant 0 : index
    %c0_17 = arith.constant 0 : index
    %17 = vector.load %arg5[%c0_15, %c0_16, %c0_17] : memref<4x4x128xf32, #tpu.memory_space<vmem>>, vector<1x4x128xf32>
    %18 = vector.shape_cast %17 : vector<1x4x128xf32> to vector<4x128xf32>
    %c0_18 = arith.constant 0 : index
    %c0_19 = arith.constant 0 : index
    %c0_20 = arith.constant 0 : index
    %19 = vector.load %arg6[%c0_18, %c0_19, %c0_20] : memref<4x4x128xf32, #tpu.memory_space<vmem>>, vector<1x4x128xf32>
    %20 = vector.shape_cast %19 : vector<1x4x128xf32> to vector<4x128xf32>
    %21 = arith.mulf %18, %9 : vector<4x128xf32>
    %22 = arith.mulf %20, %14 : vector<4x128xf32>
    %23 = arith.subf %21, %22 : vector<4x128xf32>
    %c0_21 = arith.constant 0 : index
    %c0_22 = arith.constant 0 : index
    %c0_23 = arith.constant 0 : index
    %24 = vector.load %arg11[%c0_21, %c0_22, %c0_23] : memref<4x4x128xf32, #tpu.memory_space<vmem>>, vector<1x4x128xf32>
    %25 = vector.shape_cast %24 : vector<1x4x128xf32> to vector<4x128xf32>
    %26 = vector.shape_cast %23 : vector<4x128xf32> to vector<1x4x128xf32>
    tpu.vector_store %arg11[%c0_21, %c0_22, %c0_23], %26 {strides = array<i32>} : memref<4x4x128xf32, #tpu.memory_space<vmem>>, vector<1x4x128xf32>,
    %27 = arith.mulf %18, %14 : vector<4x128xf32>
    %28 = arith.mulf %20, %9 : vector<4x128xf32>
    %29 = arith.addf %27, %28 : vector<4x128xf32>
    %c0_24 = arith.constant 0 : index
    %c0_25 = arith.constant 0 : index
    %c0_26 = arith.constant 0 : index
    %30 = vector.load %arg12[%c0_24, %c0_25, %c0_26] : memref<4x4x128xf32, #tpu.memory_space<vmem>>, vector<1x4x128xf32>
    %31 = vector.shape_cast %30 : vector<1x4x128xf32> to vector<4x128xf32>
    %32 = vector.shape_cast %29 : vector<4x128xf32> to vector<1x4x128xf32>
    tpu.vector_store %arg12[%c0_24, %c0_25, %c0_26], %32 {strides = array<i32>} : memref<4x4x128xf32, #tpu.memory_space<vmem>>, vector<1x4x128xf32>,
    %c1 = arith.constant 1 : index
    %c0_27 = arith.constant 0 : index
    %c0_28 = arith.constant 0 : index
    %33 = vector.load %arg5[%c1, %c0_27, %c0_28] : memref<4x4x128xf32, #tpu.memory_space<vmem>>, vector<1x4x128xf32>
    %34 = vector.shape_cast %33 : vector<1x4x128xf32> to vector<4x128xf32>
    %c1_29 = arith.constant 1 : index
    %c0_30 = arith.constant 0 : index
    %c0_31 = arith.constant 0 : index
    %35 = vector.load %arg6[%c1_29, %c0_30, %c0_31] : memref<4x4x128xf32, #tpu.memory_space<vmem>>, vector<1x4x128xf32>
    %36 = vector.shape_cast %35 : vector<1x4x128xf32> to vector<4x128xf32>
    %37 = arith.mulf %34, %9 : vector<4x128xf32>
    %38 = arith.mulf %36, %14 : vector<4x128xf32>
    %39 = arith.subf %37, %38 : vector<4x128xf32>
    %c1_32 = arith.constant 1 : index
    %c0_33 = arith.constant 0 : index
    %c0_34 = arith.constant 0 : index
    %40 = vector.load %arg11[%c1_32, %c0_33, %c0_34] : memref<4x4x128xf32, #tpu.memory_space<vmem>>, vector<1x4x128xf32>
    %41 = vector.shape_cast %40 : vector<1x4x128xf32> to vector<4x128xf32>
    %42 = vector.shape_cast %39 : vector<4x128xf32> to vector<1x4x128xf32>
    tpu.vector_store %arg11[%c1_32, %c0_33, %c0_34], %42 {strides = array<i32>} : memref<4x4x128xf32, #tpu.memory_space<vmem>>, vector<1x4x128xf32>,
    %43 = arith.mulf %34, %14 : vector<4x128xf32>
    %44 = arith.mulf %36, %9 : vector<4x128xf32>
    %45 = arith.addf %43, %44 : vector<4x128xf32>
    %c1_35 = arith.constant 1 : index
    %c0_36 = arith.constant 0 : index
    %c0_37 = arith.constant 0 : index
    %46 = vector.load %arg12[%c1_35, %c0_36, %c0_37] : memref<4x4x128xf32, #tpu.memory_space<vmem>>, vector<1x4x128xf32>
    %47 = vector.shape_cast %46 : vector<1x4x128xf32> to vector<4x128xf32>
    %48 = vector.shape_cast %45 : vector<4x128xf32> to vector<1x4x128xf32>
    tpu.vector_store %arg12[%c1_35, %c0_36, %c0_37], %48 {strides = array<i32>} : memref<4x4x128xf32, #tpu.memory_space<vmem>>, vector<1x4x128xf32>,
    %c2 = arith.constant 2 : index
    %c0_38 = arith.constant 0 : index
    %c0_39 = arith.constant 0 : index
    %49 = vector.load %arg5[%c2, %c0_38, %c0_39] : memref<4x4x128xf32, #tpu.memory_space<vmem>>, vector<1x4x128xf32>
    %50 = vector.shape_cast %49 : vector<1x4x128xf32> to vector<4x128xf32>
    %c2_40 = arith.constant 2 : index
    %c0_41 = arith.constant 0 : index
    %c0_42 = arith.constant 0 : index
    %51 = vector.load %arg6[%c2_40, %c0_41, %c0_42] : memref<4x4x128xf32, #tpu.memory_space<vmem>>, vector<1x4x128xf32>
    %52 = vector.shape_cast %51 : vector<1x4x128xf32> to vector<4x128xf32>
    %53 = arith.mulf %50, %9 : vector<4x128xf32>
    %54 = arith.mulf %52, %14 : vector<4x128xf32>
    %55 = arith.subf %53, %54 : vector<4x128xf32>
    %c2_43 = arith.constant 2 : index
    %c0_44 = arith.constant 0 : index
    %c0_45 = arith.constant 0 : index
    %56 = vector.load %arg11[%c2_43, %c0_44, %c0_45] : memref<4x4x128xf32, #tpu.memory_space<vmem>>, vector<1x4x128xf32>
    %57 = vector.shape_cast %56 : vector<1x4x128xf32> to vector<4x128xf32>
    %58 = vector.shape_cast %55 : vector<4x128xf32> to vector<1x4x128xf32>
    tpu.vector_store %arg11[%c2_43, %c0_44, %c0_45], %58 {strides = array<i32>} : memref<4x4x128xf32, #tpu.memory_space<vmem>>, vector<1x4x128xf32>,
    %59 = arith.mulf %50, %14 : vector<4x128xf32>
    %60 = arith.mulf %52, %9 : vector<4x128xf32>
    %61 = arith.addf %59, %60 : vector<4x128xf32>
    %c2_46 = arith.constant 2 : index
    %c0_47 = arith.constant 0 : index
    %c0_48 = arith.constant 0 : index
    %62 = vector.load %arg12[%c2_46, %c0_47, %c0_48] : memref<4x4x128xf32, #tpu.memory_space<vmem>>, vector<1x4x128xf32>
    %63 = vector.shape_cast %62 : vector<1x4x128xf32> to vector<4x128xf32>
    %64 = vector.shape_cast %61 : vector<4x128xf32> to vector<1x4x128xf32>
    tpu.vector_store %arg12[%c2_46, %c0_47, %c0_48], %64 {strides = array<i32>} : memref<4x4x128xf32, #tpu.memory_space<vmem>>, vector<1x4x128xf32>,
    %c3 = arith.constant 3 : index
    %c0_49 = arith.constant 0 : index
    %c0_50 = arith.constant 0 : index
    %65 = vector.load %arg5[%c3, %c0_49, %c0_50] : memref<4x4x128xf32, #tpu.memory_space<vmem>>, vector<1x4x128xf32>
    %66 = vector.shape_cast %65 : vector<1x4x128xf32> to vector<4x128xf32>
    %c3_51 = arith.constant 3 : index
    %c0_52 = arith.constant 0 : index
    %c0_53 = arith.constant 0 : index
    %67 = vector.load %arg6[%c3_51, %c0_52, %c0_53] : memref<4x4x128xf32, #tpu.memory_space<vmem>>, vector<1x4x128xf32>
    %68 = vector.shape_cast %67 : vector<1x4x128xf32> to vector<4x128xf32>
    %69 = arith.mulf %66, %9 : vector<4x128xf32>
    %70 = arith.mulf %68, %14 : vector<4x128xf32>
    %71 = arith.subf %69, %70 : vector<4x128xf32>
    %c3_54 = arith.constant 3 : index
    %c0_55 = arith.constant 0 : index
    %c0_56 = arith.constant 0 : index
    %72 = vector.load %arg11[%c3_54, %c0_55, %c0_56] : memref<4x4x128xf32, #tpu.memory_space<vmem>>, vector<1x4x128xf32>
    %73 = vector.shape_cast %72 : vector<1x4x128xf32> to vector<4x128xf32>
    %74 = vector.shape_cast %71 : vector<4x128xf32> to vector<1x4x128xf32>
    tpu.vector_store %arg11[%c3_54, %c0_55, %c0_56], %74 {strides = array<i32>} : memref<4x4x128xf32, #tpu.memory_space<vmem>>, vector<1x4x128xf32>,
    %75 = arith.mulf %66, %14 : vector<4x128xf32>
    %76 = arith.mulf %68, %9 : vector<4x128xf32>
    %77 = arith.addf %75, %76 : vector<4x128xf32>
    %c3_57 = arith.constant 3 : index
    %c0_58 = arith.constant 0 : index
    %c0_59 = arith.constant 0 : index
    %78 = vector.load %arg12[%c3_57, %c0_58, %c0_59] : memref<4x4x128xf32, #tpu.memory_space<vmem>>, vector<1x4x128xf32>
    %79 = vector.shape_cast %78 : vector<1x4x128xf32> to vector<4x128xf32>
    %80 = vector.shape_cast %77 : vector<4x128xf32> to vector<1x4x128xf32>
    tpu.vector_store %arg12[%c3_57, %c0_58, %c0_59], %80 {strides = array<i32>} : memref<4x4x128xf32, #tpu.memory_space<vmem>>, vector<1x4x128xf32>,
    return
  }
  func.func @transform_0(%arg0: i32) -> (i32, i32) {
    %c0_i32 = arith.constant 0 : i32
    %c0_i32_0 = arith.constant 0 : i32
    return %arg0, %c0_i32 : i32, i32
  }
  func.func @transform_1(%arg0: i32) -> (i32, i32) {
    %c0_i32 = arith.constant 0 : i32
    %c0_i32_0 = arith.constant 0 : i32
    return %arg0, %c0_i32 : i32, i32
  }
  func.func @transform_2(%arg0: i32) -> (i32, i32) {
    %c0_i32 = arith.constant 0 : i32
    %c0_i32_0 = arith.constant 0 : i32
    return %arg0, %c0_i32 : i32, i32
  }
  func.func @transform_3(%arg0: i32) -> (i32, i32) {
    %c0_i32 = arith.constant 0 : i32
    %c0_i32_0 = arith.constant 0 : i32
    return %arg0, %c0_i32 : i32, i32
  }
  func.func @transform_4(%arg0: i32) -> (i32, i32, i32) {
    %c0_i32 = arith.constant 0 : i32
    %c0_i32_0 = arith.constant 0 : i32
    %c0_i32_1 = arith.constant 0 : i32
    return %c0_i32, %arg0, %c0_i32_0 : i32, i32, i32
  }
  func.func @transform_5(%arg0: i32) -> (i32, i32, i32) {
    %c0_i32 = arith.constant 0 : i32
    %c0_i32_0 = arith.constant 0 : i32
    %c0_i32_1 = arith.constant 0 : i32
    return %c0_i32, %arg0, %c0_i32_0 : i32, i32, i32
  }
  func.func @transform_6(%arg0: i32) -> (i32, i32) {
    %c0_i32 = arith.constant 0 : i32
    %c0_i32_0 = arith.constant 0 : i32
    %c0_i32_1 = arith.constant 0 : i32
    return %c0_i32, %c0_i32_0 : i32, i32
  }
  func.func @transform_7(%arg0: i32) -> (i32, i32) {
    %c0_i32 = arith.constant 0 : i32
    %c0_i32_0 = arith.constant 0 : i32
    %c0_i32_1 = arith.constant 0 : i32
    return %c0_i32, %c0_i32_0 : i32, i32
  }
  func.func @transform_8(%arg0: i32) -> (i32, i32) {
    %c0_i32 = arith.constant 0 : i32
    %c0_i32_0 = arith.constant 0 : i32
    return %arg0, %c0_i32 : i32, i32
  }
  func.func @transform_9(%arg0: i32) -> (i32, i32) {
    %c0_i32 = arith.constant 0 : i32
    %c0_i32_0 = arith.constant 0 : i32
    return %arg0, %c0_i32 : i32, i32
  }
  func.func @transform_10(%arg0: i32) -> (i32, i32, i32) {
    %c0_i32 = arith.constant 0 : i32
    %c0_i32_0 = arith.constant 0 : i32
    %c0_i32_1 = arith.constant 0 : i32
    return %c0_i32, %arg0, %c0_i32_0 : i32, i32, i32
  }
  func.func @transform_11(%arg0: i32) -> (i32, i32, i32) {
    %c0_i32 = arith.constant 0 : i32
    %c0_i32_0 = arith.constant 0 : i32
    %c0_i32_1 = arith.constant 0 : i32
    return %c0_i32, %arg0, %c0_i32_0 : i32, i32, i32
  }
}

module attributes {stable_mosaic.version = 11 : i64} {
  func.func @coil_expand_kernel(%arg0: i32, %arg1: memref<4x128xf32, #tpu.memory_space<vmem>>, %arg2: memref<4x128xf32, #tpu.memory_space<vmem>>, %arg3: memref<4x4x128xf32, #tpu.memory_space<vmem>>, %arg4: memref<4x4x128xf32, #tpu.memory_space<vmem>>, %arg5: memref<4x4x128xf32, #tpu.memory_space<vmem>>, %arg6: memref<4x4x128xf32, #tpu.memory_space<vmem>>) attributes {dimension_semantics = [#tpu.dimension_semantics<parallel>], iteration_bounds = array<i64: 1>, scalar_prefetch = 0 : i64, scratch_operands = 0 : i64, tpu.core_type = #tpu.core_type<tc>, window_params = [{transform_indices = @transform_0, window_bounds = array<i64: 4, 128>}, {transform_indices = @transform_1, window_bounds = array<i64: 4, 128>}, {transform_indices = @transform_2, window_bounds = array<i64: 4, 4, 128>}, {transform_indices = @transform_3, window_bounds = array<i64: 4, 4, 128>}, {transform_indices = @transform_4, window_bounds = array<i64: 4, 4, 128>}, {transform_indices = @transform_5, window_bounds = array<i64: 4, 4, 128>}]} {
    %c0 = arith.constant 0 : index
    %c0_0 = arith.constant 0 : index
    %0 = vector.load %arg1[%c0, %c0_0] : memref<4x128xf32, #tpu.memory_space<vmem>>, vector<4x128xf32>
    %c0_1 = arith.constant 0 : index
    %c0_2 = arith.constant 0 : index
    %1 = vector.load %arg2[%c0_1, %c0_2] : memref<4x128xf32, #tpu.memory_space<vmem>>, vector<4x128xf32>
    %c0_3 = arith.constant 0 : index
    %c0_4 = arith.constant 0 : index
    %c0_5 = arith.constant 0 : index
    %2 = vector.load %arg3[%c0_3, %c0_4, %c0_5] : memref<4x4x128xf32, #tpu.memory_space<vmem>>, vector<1x4x128xf32>
    %3 = vector.shape_cast %2 : vector<1x4x128xf32> to vector<4x128xf32>
    %c0_6 = arith.constant 0 : index
    %c0_7 = arith.constant 0 : index
    %c0_8 = arith.constant 0 : index
    %4 = vector.load %arg4[%c0_6, %c0_7, %c0_8] : memref<4x4x128xf32, #tpu.memory_space<vmem>>, vector<1x4x128xf32>
    %5 = vector.shape_cast %4 : vector<1x4x128xf32> to vector<4x128xf32>
    %6 = arith.mulf %3, %0 : vector<4x128xf32>
    %7 = arith.mulf %5, %1 : vector<4x128xf32>
    %8 = arith.subf %6, %7 : vector<4x128xf32>
    %c0_9 = arith.constant 0 : index
    %c0_10 = arith.constant 0 : index
    %c0_11 = arith.constant 0 : index
    %9 = vector.load %arg5[%c0_9, %c0_10, %c0_11] : memref<4x4x128xf32, #tpu.memory_space<vmem>>, vector<1x4x128xf32>
    %10 = vector.shape_cast %9 : vector<1x4x128xf32> to vector<4x128xf32>
    %11 = vector.shape_cast %8 : vector<4x128xf32> to vector<1x4x128xf32>
    tpu.vector_store %arg5[%c0_9, %c0_10, %c0_11], %11 {strides = array<i32>} : memref<4x4x128xf32, #tpu.memory_space<vmem>>, vector<1x4x128xf32>,
    %12 = arith.mulf %3, %1 : vector<4x128xf32>
    %13 = arith.mulf %5, %0 : vector<4x128xf32>
    %14 = arith.addf %12, %13 : vector<4x128xf32>
    %c0_12 = arith.constant 0 : index
    %c0_13 = arith.constant 0 : index
    %c0_14 = arith.constant 0 : index
    %15 = vector.load %arg6[%c0_12, %c0_13, %c0_14] : memref<4x4x128xf32, #tpu.memory_space<vmem>>, vector<1x4x128xf32>
    %16 = vector.shape_cast %15 : vector<1x4x128xf32> to vector<4x128xf32>
    %17 = vector.shape_cast %14 : vector<4x128xf32> to vector<1x4x128xf32>
    tpu.vector_store %arg6[%c0_12, %c0_13, %c0_14], %17 {strides = array<i32>} : memref<4x4x128xf32, #tpu.memory_space<vmem>>, vector<1x4x128xf32>,
    %c1 = arith.constant 1 : index
    %c0_15 = arith.constant 0 : index
    %c0_16 = arith.constant 0 : index
    %18 = vector.load %arg3[%c1, %c0_15, %c0_16] : memref<4x4x128xf32, #tpu.memory_space<vmem>>, vector<1x4x128xf32>
    %19 = vector.shape_cast %18 : vector<1x4x128xf32> to vector<4x128xf32>
    %c1_17 = arith.constant 1 : index
    %c0_18 = arith.constant 0 : index
    %c0_19 = arith.constant 0 : index
    %20 = vector.load %arg4[%c1_17, %c0_18, %c0_19] : memref<4x4x128xf32, #tpu.memory_space<vmem>>, vector<1x4x128xf32>
    %21 = vector.shape_cast %20 : vector<1x4x128xf32> to vector<4x128xf32>
    %22 = arith.mulf %19, %0 : vector<4x128xf32>
    %23 = arith.mulf %21, %1 : vector<4x128xf32>
    %24 = arith.subf %22, %23 : vector<4x128xf32>
    %c1_20 = arith.constant 1 : index
    %c0_21 = arith.constant 0 : index
    %c0_22 = arith.constant 0 : index
    %25 = vector.load %arg5[%c1_20, %c0_21, %c0_22] : memref<4x4x128xf32, #tpu.memory_space<vmem>>, vector<1x4x128xf32>
    %26 = vector.shape_cast %25 : vector<1x4x128xf32> to vector<4x128xf32>
    %27 = vector.shape_cast %24 : vector<4x128xf32> to vector<1x4x128xf32>
    tpu.vector_store %arg5[%c1_20, %c0_21, %c0_22], %27 {strides = array<i32>} : memref<4x4x128xf32, #tpu.memory_space<vmem>>, vector<1x4x128xf32>,
    %28 = arith.mulf %19, %1 : vector<4x128xf32>
    %29 = arith.mulf %21, %0 : vector<4x128xf32>
    %30 = arith.addf %28, %29 : vector<4x128xf32>
    %c1_23 = arith.constant 1 : index
    %c0_24 = arith.constant 0 : index
    %c0_25 = arith.constant 0 : index
    %31 = vector.load %arg6[%c1_23, %c0_24, %c0_25] : memref<4x4x128xf32, #tpu.memory_space<vmem>>, vector<1x4x128xf32>
    %32 = vector.shape_cast %31 : vector<1x4x128xf32> to vector<4x128xf32>
    %33 = vector.shape_cast %30 : vector<4x128xf32> to vector<1x4x128xf32>
    tpu.vector_store %arg6[%c1_23, %c0_24, %c0_25], %33 {strides = array<i32>} : memref<4x4x128xf32, #tpu.memory_space<vmem>>, vector<1x4x128xf32>,
    %c2 = arith.constant 2 : index
    %c0_26 = arith.constant 0 : index
    %c0_27 = arith.constant 0 : index
    %34 = vector.load %arg3[%c2, %c0_26, %c0_27] : memref<4x4x128xf32, #tpu.memory_space<vmem>>, vector<1x4x128xf32>
    %35 = vector.shape_cast %34 : vector<1x4x128xf32> to vector<4x128xf32>
    %c2_28 = arith.constant 2 : index
    %c0_29 = arith.constant 0 : index
    %c0_30 = arith.constant 0 : index
    %36 = vector.load %arg4[%c2_28, %c0_29, %c0_30] : memref<4x4x128xf32, #tpu.memory_space<vmem>>, vector<1x4x128xf32>
    %37 = vector.shape_cast %36 : vector<1x4x128xf32> to vector<4x128xf32>
    %38 = arith.mulf %35, %0 : vector<4x128xf32>
    %39 = arith.mulf %37, %1 : vector<4x128xf32>
    %40 = arith.subf %38, %39 : vector<4x128xf32>
    %c2_31 = arith.constant 2 : index
    %c0_32 = arith.constant 0 : index
    %c0_33 = arith.constant 0 : index
    %41 = vector.load %arg5[%c2_31, %c0_32, %c0_33] : memref<4x4x128xf32, #tpu.memory_space<vmem>>, vector<1x4x128xf32>
    %42 = vector.shape_cast %41 : vector<1x4x128xf32> to vector<4x128xf32>
    %43 = vector.shape_cast %40 : vector<4x128xf32> to vector<1x4x128xf32>
    tpu.vector_store %arg5[%c2_31, %c0_32, %c0_33], %43 {strides = array<i32>} : memref<4x4x128xf32, #tpu.memory_space<vmem>>, vector<1x4x128xf32>,
    %44 = arith.mulf %35, %1 : vector<4x128xf32>
    %45 = arith.mulf %37, %0 : vector<4x128xf32>
    %46 = arith.addf %44, %45 : vector<4x128xf32>
    %c2_34 = arith.constant 2 : index
    %c0_35 = arith.constant 0 : index
    %c0_36 = arith.constant 0 : index
    %47 = vector.load %arg6[%c2_34, %c0_35, %c0_36] : memref<4x4x128xf32, #tpu.memory_space<vmem>>, vector<1x4x128xf32>
    %48 = vector.shape_cast %47 : vector<1x4x128xf32> to vector<4x128xf32>
    %49 = vector.shape_cast %46 : vector<4x128xf32> to vector<1x4x128xf32>
    tpu.vector_store %arg6[%c2_34, %c0_35, %c0_36], %49 {strides = array<i32>} : memref<4x4x128xf32, #tpu.memory_space<vmem>>, vector<1x4x128xf32>,
    %c3 = arith.constant 3 : index
    %c0_37 = arith.constant 0 : index
    %c0_38 = arith.constant 0 : index
    %50 = vector.load %arg3[%c3, %c0_37, %c0_38] : memref<4x4x128xf32, #tpu.memory_space<vmem>>, vector<1x4x128xf32>
    %51 = vector.shape_cast %50 : vector<1x4x128xf32> to vector<4x128xf32>
    %c3_39 = arith.constant 3 : index
    %c0_40 = arith.constant 0 : index
    %c0_41 = arith.constant 0 : index
    %52 = vector.load %arg4[%c3_39, %c0_40, %c0_41] : memref<4x4x128xf32, #tpu.memory_space<vmem>>, vector<1x4x128xf32>
    %53 = vector.shape_cast %52 : vector<1x4x128xf32> to vector<4x128xf32>
    %54 = arith.mulf %51, %0 : vector<4x128xf32>
    %55 = arith.mulf %53, %1 : vector<4x128xf32>
    %56 = arith.subf %54, %55 : vector<4x128xf32>
    %c3_42 = arith.constant 3 : index
    %c0_43 = arith.constant 0 : index
    %c0_44 = arith.constant 0 : index
    %57 = vector.load %arg5[%c3_42, %c0_43, %c0_44] : memref<4x4x128xf32, #tpu.memory_space<vmem>>, vector<1x4x128xf32>
    %58 = vector.shape_cast %57 : vector<1x4x128xf32> to vector<4x128xf32>
    %59 = vector.shape_cast %56 : vector<4x128xf32> to vector<1x4x128xf32>
    tpu.vector_store %arg5[%c3_42, %c0_43, %c0_44], %59 {strides = array<i32>} : memref<4x4x128xf32, #tpu.memory_space<vmem>>, vector<1x4x128xf32>,
    %60 = arith.mulf %51, %1 : vector<4x128xf32>
    %61 = arith.mulf %53, %0 : vector<4x128xf32>
    %62 = arith.addf %60, %61 : vector<4x128xf32>
    %c3_45 = arith.constant 3 : index
    %c0_46 = arith.constant 0 : index
    %c0_47 = arith.constant 0 : index
    %63 = vector.load %arg6[%c3_45, %c0_46, %c0_47] : memref<4x4x128xf32, #tpu.memory_space<vmem>>, vector<1x4x128xf32>
    %64 = vector.shape_cast %63 : vector<1x4x128xf32> to vector<4x128xf32>
    %65 = vector.shape_cast %62 : vector<4x128xf32> to vector<1x4x128xf32>
    tpu.vector_store %arg6[%c3_45, %c0_46, %c0_47], %65 {strides = array<i32>} : memref<4x4x128xf32, #tpu.memory_space<vmem>>, vector<1x4x128xf32>,
    return
  }
  func.func @transform_0(%arg0: i32) -> (i32, i32) {
    %c0_i32 = arith.constant 0 : i32
    %c0_i32_0 = arith.constant 0 : i32
    return %arg0, %c0_i32 : i32, i32
  }
  func.func @transform_1(%arg0: i32) -> (i32, i32) {
    %c0_i32 = arith.constant 0 : i32
    %c0_i32_0 = arith.constant 0 : i32
    return %arg0, %c0_i32 : i32, i32
  }
  func.func @transform_2(%arg0: i32) -> (i32, i32, i32) {
    %c0_i32 = arith.constant 0 : i32
    %c0_i32_0 = arith.constant 0 : i32
    %c0_i32_1 = arith.constant 0 : i32
    return %c0_i32, %arg0, %c0_i32_0 : i32, i32, i32
  }
  func.func @transform_3(%arg0: i32) -> (i32, i32, i32) {
    %c0_i32 = arith.constant 0 : i32
    %c0_i32_0 = arith.constant 0 : i32
    %c0_i32_1 = arith.constant 0 : i32
    return %c0_i32, %arg0, %c0_i32_0 : i32, i32, i32
  }
  func.func @transform_4(%arg0: i32) -> (i32, i32, i32) {
    %c0_i32 = arith.constant 0 : i32
    %c0_i32_0 = arith.constant 0 : i32
    %c0_i32_1 = arith.constant 0 : i32
    return %c0_i32, %arg0, %c0_i32_0 : i32, i32, i32
  }
  func.func @transform_5(%arg0: i32) -> (i32, i32, i32) {
    %c0_i32 = arith.constant 0 : i32
    %c0_i32_0 = arith.constant 0 : i32
    %c0_i32_1 = arith.constant 0 : i32
    return %c0_i32, %arg0, %c0_i32_0 : i32, i32, i32
  }
}

module attributes {stable_mosaic.version = 11 : i64} {
  func.func @conv_matmul_relu_kernel(%arg0: i32, %arg1: memref<512x18xbf16, #tpu.memory_space<vmem>>, %arg2: memref<18x128xbf16, #tpu.memory_space<vmem>>, %arg3: memref<1x128xf32, #tpu.memory_space<vmem>>, %arg4: memref<512x128xbf16, #tpu.memory_space<vmem>>) attributes {dimension_semantics = [#tpu.dimension_semantics<parallel>], iteration_bounds = array<i64: 1>, scalar_prefetch = 0 : i64, scratch_operands = 0 : i64, tpu.core_type = #tpu.core_type<tc>, window_params = [{transform_indices = @transform_0, window_bounds = array<i64: 512, 18>}, {pipeline_mode = #tpu.pipeline_mode<synchronous>, transform_indices = @transform_1, window_bounds = array<i64: 18, 128>}, {pipeline_mode = #tpu.pipeline_mode<synchronous>, transform_indices = @transform_2, window_bounds = array<i64: 1, 128>}, {transform_indices = @transform_3, window_bounds = array<i64: 512, 128>}]} {
    %c0 = arith.constant 0 : index
    %c0_0 = arith.constant 0 : index
    %0 = vector.load %arg1[%c0, %c0_0] : memref<512x18xbf16, #tpu.memory_space<vmem>>, vector<512x18xbf16>
    %c0_1 = arith.constant 0 : index
    %c0_2 = arith.constant 0 : index
    %1 = vector.load %arg2[%c0_1, %c0_2] : memref<18x128xbf16, #tpu.memory_space<vmem>>, vector<18x128xbf16>
    %cst = arith.constant dense<0.000000e+00> : vector<512x128xf32>
    %2 = tpu.matmul %0, %1, %cst {dimension_numbers = #tpu.dot_dimension_numbers<[1], [0], [0], [1], [0, 0, 1, 1], [], []>} : vector<512x18xbf16>, vector<18x128xbf16>, vector<512x128xf32> -> vector<512x128xf32>
    %c0_3 = arith.constant 0 : index
    %c0_4 = arith.constant 0 : index
    %3 = vector.load %arg3[%c0_3, %c0_4] : memref<1x128xf32, #tpu.memory_space<vmem>>, vector<1x128xf32>
    %4 = vector.broadcast %3 : vector<1x128xf32> to vector<512x128xf32>
    %5 = arith.addf %2, %4 : vector<512x128xf32>
    %cst_5 = arith.constant 0.000000e+00 : f32
    %6 = vector.broadcast %cst_5 : f32 to vector<512x128xf32>
    %7 = arith.maximumf %5, %6 : vector<512x128xf32>
    %8 = arith.truncf %7 : vector<512x128xf32> to vector<512x128xbf16>
    %c0_6 = arith.constant 0 : index
    %c0_7 = arith.constant 0 : index
    %9 = vector.load %arg4[%c0_6, %c0_7] : memref<512x128xbf16, #tpu.memory_space<vmem>>, vector<512x128xbf16>
    tpu.vector_store %arg4[%c0_6, %c0_7], %8 {strides = array<i32>} : memref<512x128xbf16, #tpu.memory_space<vmem>>, vector<512x128xbf16>,
    return
  }
  func.func @transform_0(%arg0: i32) -> (i32, i32) {
    %c0_i32 = arith.constant 0 : i32
    %c0_i32_0 = arith.constant 0 : i32
    return %arg0, %c0_i32 : i32, i32
  }
  func.func @transform_1(%arg0: i32) -> (i32, i32) {
    %c0_i32 = arith.constant 0 : i32
    %c0_i32_0 = arith.constant 0 : i32
    %c0_i32_1 = arith.constant 0 : i32
    return %c0_i32, %c0_i32_0 : i32, i32
  }
  func.func @transform_2(%arg0: i32) -> (i32, i32) {
    %c0_i32 = arith.constant 0 : i32
    %c0_i32_0 = arith.constant 0 : i32
    %c0_i32_1 = arith.constant 0 : i32
    return %c0_i32, %c0_i32_0 : i32, i32
  }
  func.func @transform_3(%arg0: i32) -> (i32, i32) {
    %c0_i32 = arith.constant 0 : i32
    %c0_i32_0 = arith.constant 0 : i32
    return %arg0, %c0_i32 : i32, i32
  }
}

module attributes {stable_mosaic.version = 11 : i64} {
  func.func @conv_matmul_residual_kernel(%arg0: i32, %arg1: memref<512x144xbf16, #tpu.memory_space<vmem>>, %arg2: memref<144x128xbf16, #tpu.memory_space<vmem>>, %arg3: memref<1x128xf32, #tpu.memory_space<vmem>>, %arg4: memref<512x2xf32, #tpu.memory_space<vmem>>, %arg5: memref<512x2xf32, #tpu.memory_space<vmem>>) attributes {dimension_semantics = [#tpu.dimension_semantics<parallel>], iteration_bounds = array<i64: 1>, scalar_prefetch = 0 : i64, scratch_operands = 0 : i64, tpu.core_type = #tpu.core_type<tc>, window_params = [{transform_indices = @transform_0, window_bounds = array<i64: 512, 144>}, {pipeline_mode = #tpu.pipeline_mode<synchronous>, transform_indices = @transform_1, window_bounds = array<i64: 144, 128>}, {pipeline_mode = #tpu.pipeline_mode<synchronous>, transform_indices = @transform_2, window_bounds = array<i64: 1, 128>}, {transform_indices = @transform_3, window_bounds = array<i64: 512, 2>}, {transform_indices = @transform_4, window_bounds = array<i64: 512, 2>}]} {
    %c0 = arith.constant 0 : index
    %c0_0 = arith.constant 0 : index
    %0 = vector.load %arg1[%c0, %c0_0] : memref<512x144xbf16, #tpu.memory_space<vmem>>, vector<512x144xbf16>
    %c0_1 = arith.constant 0 : index
    %c0_2 = arith.constant 0 : index
    %1 = vector.load %arg2[%c0_1, %c0_2] : memref<144x128xbf16, #tpu.memory_space<vmem>>, vector<144x128xbf16>
    %cst = arith.constant dense<0.000000e+00> : vector<512x128xf32>
    %2 = tpu.matmul %0, %1, %cst {dimension_numbers = #tpu.dot_dimension_numbers<[1], [0], [0], [1], [0, 0, 1, 1], [], []>} : vector<512x144xbf16>, vector<144x128xbf16>, vector<512x128xf32> -> vector<512x128xf32>
    %c0_3 = arith.constant 0 : index
    %c0_4 = arith.constant 0 : index
    %3 = vector.load %arg3[%c0_3, %c0_4] : memref<1x128xf32, #tpu.memory_space<vmem>>, vector<1x128xf32>
    %4 = vector.broadcast %3 : vector<1x128xf32> to vector<512x128xf32>
    %5 = arith.addf %2, %4 : vector<512x128xf32>
    %c0_5 = arith.constant 0 : index
    %c0_6 = arith.constant 0 : index
    %6 = vector.load %arg4[%c0_5, %c0_6] : memref<512x2xf32, #tpu.memory_space<vmem>>, vector<512x2xf32>
    %7 = vector.extract_strided_slice %5 {offsets = [0, 0], sizes = [512, 2], strides = [1, 1]} : vector<512x128xf32> to vector<512x2xf32>
    %8 = arith.addf %6, %7 : vector<512x2xf32>
    %c0_7 = arith.constant 0 : index
    %c0_8 = arith.constant 0 : index
    %9 = vector.load %arg5[%c0_7, %c0_8] : memref<512x2xf32, #tpu.memory_space<vmem>>, vector<512x2xf32>
    tpu.vector_store %arg5[%c0_7, %c0_8], %8 {strides = array<i32>} : memref<512x2xf32, #tpu.memory_space<vmem>>, vector<512x2xf32>,
    return
  }
  func.func @transform_0(%arg0: i32) -> (i32, i32) {
    %c0_i32 = arith.constant 0 : i32
    %c0_i32_0 = arith.constant 0 : i32
    return %arg0, %c0_i32 : i32, i32
  }
  func.func @transform_1(%arg0: i32) -> (i32, i32) {
    %c0_i32 = arith.constant 0 : i32
    %c0_i32_0 = arith.constant 0 : i32
    %c0_i32_1 = arith.constant 0 : i32
    return %c0_i32, %c0_i32_0 : i32, i32
  }
  func.func @transform_2(%arg0: i32) -> (i32, i32) {
    %c0_i32 = arith.constant 0 : i32
    %c0_i32_0 = arith.constant 0 : i32
    %c0_i32_1 = arith.constant 0 : i32
    return %c0_i32, %c0_i32_0 : i32, i32
  }
  func.func @transform_3(%arg0: i32) -> (i32, i32) {
    %c0_i32 = arith.constant 0 : i32
    %c0_i32_0 = arith.constant 0 : i32
    return %arg0, %c0_i32 : i32, i32
  }
  func.func @transform_4(%arg0: i32) -> (i32, i32) {
    %c0_i32 = arith.constant 0 : i32
    %c0_i32_0 = arith.constant 0 : i32
    return %arg0, %c0_i32 : i32, i32
  }
}

module attributes {stable_mosaic.version = 11 : i64} {
  func.func @cg_init_kernel(%arg0: i32, %arg1: memref<4x4x128xf32, #tpu.memory_space<vmem>>, %arg2: memref<4x4x128xf32, #tpu.memory_space<vmem>>, %arg3: memref<4x4x128xf32, #tpu.memory_space<vmem>>, %arg4: memref<4x4x128xf32, #tpu.memory_space<vmem>>, %arg5: memref<4x128xf32, #tpu.memory_space<vmem>>, %arg6: memref<4x128xf32, #tpu.memory_space<vmem>>, %arg7: memref<4x128xf32, #tpu.memory_space<vmem>>, %arg8: memref<4x128xf32, #tpu.memory_space<vmem>>, %arg9: memref<4x128xf32, #tpu.memory_space<vmem>>, %arg10: memref<4x128xf32, #tpu.memory_space<vmem>>, %arg11: memref<4x128xf32, #tpu.memory_space<vmem>>, %arg12: memref<4x128xf32, #tpu.memory_space<vmem>>, %arg13: memref<4x128xf32, #tpu.memory_space<vmem>>, %arg14: memref<4x128xf32, #tpu.memory_space<vmem>>, %arg15: memref<4x4x128xf32, #tpu.memory_space<vmem>>, %arg16: memref<4x4x128xf32, #tpu.memory_space<vmem>>, %arg17: memref<1x1xf32, #tpu.memory_space<vmem>>) attributes {dimension_semantics = [#tpu.dimension_semantics<arbitrary>], iteration_bounds = array<i64: 1>, scalar_prefetch = 0 : i64, scratch_operands = 0 : i64, tpu.core_type = #tpu.core_type<tc>, window_params = [{transform_indices = @transform_0, window_bounds = array<i64: 4, 4, 128>}, {transform_indices = @transform_1, window_bounds = array<i64: 4, 4, 128>}, {transform_indices = @transform_2, window_bounds = array<i64: 4, 4, 128>}, {transform_indices = @transform_3, window_bounds = array<i64: 4, 4, 128>}, {transform_indices = @transform_4, window_bounds = array<i64: 4, 128>}, {transform_indices = @transform_5, window_bounds = array<i64: 4, 128>}, {transform_indices = @transform_6, window_bounds = array<i64: 4, 128>}, {transform_indices = @transform_7, window_bounds = array<i64: 4, 128>}, {transform_indices = @transform_8, window_bounds = array<i64: 4, 128>}, {transform_indices = @transform_9, window_bounds = array<i64: 4, 128>}, {transform_indices = @transform_10, window_bounds = array<i64: 4, 128>}, {transform_indices = @transform_11, window_bounds = array<i64: 4, 128>}, {transform_indices = @transform_12, window_bounds = array<i64: 4, 128>}, {transform_indices = @transform_13, window_bounds = array<i64: 4, 128>}, {transform_indices = @transform_14, window_bounds = array<i64: 4, 4, 128>}, {transform_indices = @transform_15, window_bounds = array<i64: 4, 4, 128>}, {pipeline_mode = #tpu.pipeline_mode<synchronous>, transform_indices = @transform_16, window_bounds = array<i64: 1, 1>}]} {
    %c0 = arith.constant 0 : index
    %c0_0 = arith.constant 0 : index
    %c0_1 = arith.constant 0 : index
    %0 = vector.load %arg3[%c0, %c0_0, %c0_1] : memref<4x4x128xf32, #tpu.memory_space<vmem>>, vector<1x4x128xf32>
    %1 = vector.shape_cast %0 : vector<1x4x128xf32> to vector<4x128xf32>
    %c0_2 = arith.constant 0 : index
    %c0_3 = arith.constant 0 : index
    %c0_4 = arith.constant 0 : index
    %2 = vector.load %arg4[%c0_2, %c0_3, %c0_4] : memref<4x4x128xf32, #tpu.memory_space<vmem>>, vector<1x4x128xf32>
    %3 = vector.shape_cast %2 : vector<1x4x128xf32> to vector<4x128xf32>
    %c0_5 = arith.constant 0 : index
    %c0_6 = arith.constant 0 : index
    %c0_7 = arith.constant 0 : index
    %4 = vector.load %arg1[%c0_5, %c0_6, %c0_7] : memref<4x4x128xf32, #tpu.memory_space<vmem>>, vector<1x4x128xf32>
    %5 = vector.shape_cast %4 : vector<1x4x128xf32> to vector<4x128xf32>
    %c0_8 = arith.constant 0 : index
    %c0_9 = arith.constant 0 : index
    %c0_10 = arith.constant 0 : index
    %6 = vector.load %arg2[%c0_8, %c0_9, %c0_10] : memref<4x4x128xf32, #tpu.memory_space<vmem>>, vector<1x4x128xf32>
    %7 = vector.shape_cast %6 : vector<1x4x128xf32> to vector<4x128xf32>
    %8 = arith.mulf %1, %5 : vector<4x128xf32>
    %9 = arith.mulf %3, %7 : vector<4x128xf32>
    %10 = arith.addf %8, %9 : vector<4x128xf32>
    %11 = arith.mulf %1, %7 : vector<4x128xf32>
    %12 = arith.mulf %3, %5 : vector<4x128xf32>
    %13 = arith.subf %11, %12 : vector<4x128xf32>
    %c1 = arith.constant 1 : index
    %c0_11 = arith.constant 0 : index
    %c0_12 = arith.constant 0 : index
    %14 = vector.load %arg3[%c1, %c0_11, %c0_12] : memref<4x4x128xf32, #tpu.memory_space<vmem>>, vector<1x4x128xf32>
    %15 = vector.shape_cast %14 : vector<1x4x128xf32> to vector<4x128xf32>
    %c1_13 = arith.constant 1 : index
    %c0_14 = arith.constant 0 : index
    %c0_15 = arith.constant 0 : index
    %16 = vector.load %arg4[%c1_13, %c0_14, %c0_15] : memref<4x4x128xf32, #tpu.memory_space<vmem>>, vector<1x4x128xf32>
    %17 = vector.shape_cast %16 : vector<1x4x128xf32> to vector<4x128xf32>
    %c1_16 = arith.constant 1 : index
    %c0_17 = arith.constant 0 : index
    %c0_18 = arith.constant 0 : index
    %18 = vector.load %arg1[%c1_16, %c0_17, %c0_18] : memref<4x4x128xf32, #tpu.memory_space<vmem>>, vector<1x4x128xf32>
    %19 = vector.shape_cast %18 : vector<1x4x128xf32> to vector<4x128xf32>
    %c1_19 = arith.constant 1 : index
    %c0_20 = arith.constant 0 : index
    %c0_21 = arith.constant 0 : index
    %20 = vector.load %arg2[%c1_19, %c0_20, %c0_21] : memref<4x4x128xf32, #tpu.memory_space<vmem>>, vector<1x4x128xf32>
    %21 = vector.shape_cast %20 : vector<1x4x128xf32> to vector<4x128xf32>
    %22 = arith.mulf %15, %19 : vector<4x128xf32>
    %23 = arith.addf %10, %22 : vector<4x128xf32>
    %24 = arith.mulf %17, %21 : vector<4x128xf32>
    %25 = arith.addf %23, %24 : vector<4x128xf32>
    %26 = arith.mulf %15, %21 : vector<4x128xf32>
    %27 = arith.addf %13, %26 : vector<4x128xf32>
    %28 = arith.mulf %17, %19 : vector<4x128xf32>
    %29 = arith.subf %27, %28 : vector<4x128xf32>
    %c2 = arith.constant 2 : index
    %c0_22 = arith.constant 0 : index
    %c0_23 = arith.constant 0 : index
    %30 = vector.load %arg3[%c2, %c0_22, %c0_23] : memref<4x4x128xf32, #tpu.memory_space<vmem>>, vector<1x4x128xf32>
    %31 = vector.shape_cast %30 : vector<1x4x128xf32> to vector<4x128xf32>
    %c2_24 = arith.constant 2 : index
    %c0_25 = arith.constant 0 : index
    %c0_26 = arith.constant 0 : index
    %32 = vector.load %arg4[%c2_24, %c0_25, %c0_26] : memref<4x4x128xf32, #tpu.memory_space<vmem>>, vector<1x4x128xf32>
    %33 = vector.shape_cast %32 : vector<1x4x128xf32> to vector<4x128xf32>
    %c2_27 = arith.constant 2 : index
    %c0_28 = arith.constant 0 : index
    %c0_29 = arith.constant 0 : index
    %34 = vector.load %arg1[%c2_27, %c0_28, %c0_29] : memref<4x4x128xf32, #tpu.memory_space<vmem>>, vector<1x4x128xf32>
    %35 = vector.shape_cast %34 : vector<1x4x128xf32> to vector<4x128xf32>
    %c2_30 = arith.constant 2 : index
    %c0_31 = arith.constant 0 : index
    %c0_32 = arith.constant 0 : index
    %36 = vector.load %arg2[%c2_30, %c0_31, %c0_32] : memref<4x4x128xf32, #tpu.memory_space<vmem>>, vector<1x4x128xf32>
    %37 = vector.shape_cast %36 : vector<1x4x128xf32> to vector<4x128xf32>
    %38 = arith.mulf %31, %35 : vector<4x128xf32>
    %39 = arith.addf %25, %38 : vector<4x128xf32>
    %40 = arith.mulf %33, %37 : vector<4x128xf32>
    %41 = arith.addf %39, %40 : vector<4x128xf32>
    %42 = arith.mulf %31, %37 : vector<4x128xf32>
    %43 = arith.addf %29, %42 : vector<4x128xf32>
    %44 = arith.mulf %33, %35 : vector<4x128xf32>
    %45 = arith.subf %43, %44 : vector<4x128xf32>
    %c3 = arith.constant 3 : index
    %c0_33 = arith.constant 0 : index
    %c0_34 = arith.constant 0 : index
    %46 = vector.load %arg3[%c3, %c0_33, %c0_34] : memref<4x4x128xf32, #tpu.memory_space<vmem>>, vector<1x4x128xf32>
    %47 = vector.shape_cast %46 : vector<1x4x128xf32> to vector<4x128xf32>
    %c3_35 = arith.constant 3 : index
    %c0_36 = arith.constant 0 : index
    %c0_37 = arith.constant 0 : index
    %48 = vector.load %arg4[%c3_35, %c0_36, %c0_37] : memref<4x4x128xf32, #tpu.memory_space<vmem>>, vector<1x4x128xf32>
    %49 = vector.shape_cast %48 : vector<1x4x128xf32> to vector<4x128xf32>
    %c3_38 = arith.constant 3 : index
    %c0_39 = arith.constant 0 : index
    %c0_40 = arith.constant 0 : index
    %50 = vector.load %arg1[%c3_38, %c0_39, %c0_40] : memref<4x4x128xf32, #tpu.memory_space<vmem>>, vector<1x4x128xf32>
    %51 = vector.shape_cast %50 : vector<1x4x128xf32> to vector<4x128xf32>
    %c3_41 = arith.constant 3 : index
    %c0_42 = arith.constant 0 : index
    %c0_43 = arith.constant 0 : index
    %52 = vector.load %arg2[%c3_41, %c0_42, %c0_43] : memref<4x4x128xf32, #tpu.memory_space<vmem>>, vector<1x4x128xf32>
    %53 = vector.shape_cast %52 : vector<1x4x128xf32> to vector<4x128xf32>
    %54 = arith.mulf %47, %51 : vector<4x128xf32>
    %55 = arith.addf %41, %54 : vector<4x128xf32>
    %56 = arith.mulf %49, %53 : vector<4x128xf32>
    %57 = arith.addf %55, %56 : vector<4x128xf32>
    %58 = arith.mulf %47, %53 : vector<4x128xf32>
    %59 = arith.addf %45, %58 : vector<4x128xf32>
    %60 = arith.mulf %49, %51 : vector<4x128xf32>
    %61 = arith.subf %59, %60 : vector<4x128xf32>
    %c0_44 = arith.constant 0 : index
    %c0_45 = arith.constant 0 : index
    %62 = vector.load %arg7[%c0_44, %c0_45] : memref<4x128xf32, #tpu.memory_space<vmem>>, vector<4x128xf32>
    %cst = arith.constant 1.000000e+00 : f32
    %63 = vector.broadcast %cst : f32 to vector<4x128xf32>
    %64 = arith.mulf %63, %62 : vector<4x128xf32>
    %c0_46 = arith.constant 0 : index
    %c0_47 = arith.constant 0 : index
    %65 = vector.load %arg9[%c0_46, %c0_47] : memref<4x128xf32, #tpu.memory_space<vmem>>, vector<4x128xf32>
    %cst_48 = arith.constant 1.000000e+00 : f32
    %66 = vector.broadcast %cst_48 : f32 to vector<4x128xf32>
    %67 = arith.mulf %66, %65 : vector<4x128xf32>
    %68 = arith.addf %64, %67 : vector<4x128xf32>
    %c0_49 = arith.constant 0 : index
    %c0_50 = arith.constant 0 : index
    %69 = vector.load %arg5[%c0_49, %c0_50] : memref<4x128xf32, #tpu.memory_space<vmem>>, vector<4x128xf32>
    %cst_51 = arith.constant 1.000000e+00 : f32
    %70 = vector.broadcast %cst_51 : f32 to vector<4x128xf32>
    %71 = arith.mulf %70, %69 : vector<4x128xf32>
    %72 = arith.addf %57, %71 : vector<4x128xf32>
    %73 = arith.subf %68, %72 : vector<4x128xf32>
    %c0_52 = arith.constant 0 : index
    %c0_53 = arith.constant 0 : index
    %74 = vector.load %arg8[%c0_52, %c0_53] : memref<4x128xf32, #tpu.memory_space<vmem>>, vector<4x128xf32>
    %cst_54 = arith.constant 1.000000e+00 : f32
    %75 = vector.broadcast %cst_54 : f32 to vector<4x128xf32>
    %76 = arith.mulf %75, %74 : vector<4x128xf32>
    %c0_55 = arith.constant 0 : index
    %c0_56 = arith.constant 0 : index
    %77 = vector.load %arg10[%c0_55, %c0_56] : memref<4x128xf32, #tpu.memory_space<vmem>>, vector<4x128xf32>
    %cst_57 = arith.constant 1.000000e+00 : f32
    %78 = vector.broadcast %cst_57 : f32 to vector<4x128xf32>
    %79 = arith.mulf %78, %77 : vector<4x128xf32>
    %80 = arith.addf %76, %79 : vector<4x128xf32>
    %c0_58 = arith.constant 0 : index
    %c0_59 = arith.constant 0 : index
    %81 = vector.load %arg6[%c0_58, %c0_59] : memref<4x128xf32, #tpu.memory_space<vmem>>, vector<4x128xf32>
    %cst_60 = arith.constant 1.000000e+00 : f32
    %82 = vector.broadcast %cst_60 : f32 to vector<4x128xf32>
    %83 = arith.mulf %82, %81 : vector<4x128xf32>
    %84 = arith.addf %61, %83 : vector<4x128xf32>
    %85 = arith.subf %80, %84 : vector<4x128xf32>
    %c0_61 = arith.constant 0 : index
    %c0_62 = arith.constant 0 : index
    %86 = vector.load %arg11[%c0_61, %c0_62] : memref<4x128xf32, #tpu.memory_space<vmem>>, vector<4x128xf32>
    tpu.vector_store %arg11[%c0_61, %c0_62], %73 {strides = array<i32>} : memref<4x128xf32, #tpu.memory_space<vmem>>, vector<4x128xf32>,
    %c0_63 = arith.constant 0 : index
    %c0_64 = arith.constant 0 : index
    %87 = vector.load %arg12[%c0_63, %c0_64] : memref<4x128xf32, #tpu.memory_space<vmem>>, vector<4x128xf32>
    tpu.vector_store %arg12[%c0_63, %c0_64], %85 {strides = array<i32>} : memref<4x128xf32, #tpu.memory_space<vmem>>, vector<4x128xf32>,
    %c0_65 = arith.constant 0 : index
    %c0_66 = arith.constant 0 : index
    %88 = vector.load %arg13[%c0_65, %c0_66] : memref<4x128xf32, #tpu.memory_space<vmem>>, vector<4x128xf32>
    tpu.vector_store %arg13[%c0_65, %c0_66], %73 {strides = array<i32>} : memref<4x128xf32, #tpu.memory_space<vmem>>, vector<4x128xf32>,
    %c0_67 = arith.constant 0 : index
    %c0_68 = arith.constant 0 : index
    %89 = vector.load %arg14[%c0_67, %c0_68] : memref<4x128xf32, #tpu.memory_space<vmem>>, vector<4x128xf32>
    tpu.vector_store %arg14[%c0_67, %c0_68], %85 {strides = array<i32>} : memref<4x128xf32, #tpu.memory_space<vmem>>, vector<4x128xf32>,
    %c0_69 = arith.constant 0 : index
    %c0_70 = arith.constant 0 : index
    %c0_71 = arith.constant 0 : index
    %90 = vector.load %arg3[%c0_69, %c0_70, %c0_71] : memref<4x4x128xf32, #tpu.memory_space<vmem>>, vector<1x4x128xf32>
    %91 = vector.shape_cast %90 : vector<1x4x128xf32> to vector<4x128xf32>
    %c0_72 = arith.constant 0 : index
    %c0_73 = arith.constant 0 : index
    %c0_74 = arith.constant 0 : index
    %92 = vector.load %arg4[%c0_72, %c0_73, %c0_74] : memref<4x4x128xf32, #tpu.memory_space<vmem>>, vector<1x4x128xf32>
    %93 = vector.shape_cast %92 : vector<1x4x128xf32> to vector<4x128xf32>
    %94 = arith.mulf %91, %73 : vector<4x128xf32>
    %95 = arith.mulf %93, %85 : vector<4x128xf32>
    %96 = arith.subf %94, %95 : vector<4x128xf32>
    %c0_75 = arith.constant 0 : index
    %c0_76 = arith.constant 0 : index
    %c0_77 = arith.constant 0 : index
    %97 = vector.load %arg15[%c0_75, %c0_76, %c0_77] : memref<4x4x128xf32, #tpu.memory_space<vmem>>, vector<1x4x128xf32>
    %98 = vector.shape_cast %97 : vector<1x4x128xf32> to vector<4x128xf32>
    %99 = vector.shape_cast %96 : vector<4x128xf32> to vector<1x4x128xf32>
    tpu.vector_store %arg15[%c0_75, %c0_76, %c0_77], %99 {strides = array<i32>} : memref<4x4x128xf32, #tpu.memory_space<vmem>>, vector<1x4x128xf32>,
    %100 = arith.mulf %91, %85 : vector<4x128xf32>
    %101 = arith.mulf %93, %73 : vector<4x128xf32>
    %102 = arith.addf %100, %101 : vector<4x128xf32>
    %c0_78 = arith.constant 0 : index
    %c0_79 = arith.constant 0 : index
    %c0_80 = arith.constant 0 : index
    %103 = vector.load %arg16[%c0_78, %c0_79, %c0_80] : memref<4x4x128xf32, #tpu.memory_space<vmem>>, vector<1x4x128xf32>
    %104 = vector.shape_cast %103 : vector<1x4x128xf32> to vector<4x128xf32>
    %105 = vector.shape_cast %102 : vector<4x128xf32> to vector<1x4x128xf32>
    tpu.vector_store %arg16[%c0_78, %c0_79, %c0_80], %105 {strides = array<i32>} : memref<4x4x128xf32, #tpu.memory_space<vmem>>, vector<1x4x128xf32>,
    %c1_81 = arith.constant 1 : index
    %c0_82 = arith.constant 0 : index
    %c0_83 = arith.constant 0 : index
    %106 = vector.load %arg3[%c1_81, %c0_82, %c0_83] : memref<4x4x128xf32, #tpu.memory_space<vmem>>, vector<1x4x128xf32>
    %107 = vector.shape_cast %106 : vector<1x4x128xf32> to vector<4x128xf32>
    %c1_84 = arith.constant 1 : index
    %c0_85 = arith.constant 0 : index
    %c0_86 = arith.constant 0 : index
    %108 = vector.load %arg4[%c1_84, %c0_85, %c0_86] : memref<4x4x128xf32, #tpu.memory_space<vmem>>, vector<1x4x128xf32>
    %109 = vector.shape_cast %108 : vector<1x4x128xf32> to vector<4x128xf32>
    %110 = arith.mulf %107, %73 : vector<4x128xf32>
    %111 = arith.mulf %109, %85 : vector<4x128xf32>
    %112 = arith.subf %110, %111 : vector<4x128xf32>
    %c1_87 = arith.constant 1 : index
    %c0_88 = arith.constant 0 : index
    %c0_89 = arith.constant 0 : index
    %113 = vector.load %arg15[%c1_87, %c0_88, %c0_89] : memref<4x4x128xf32, #tpu.memory_space<vmem>>, vector<1x4x128xf32>
    %114 = vector.shape_cast %113 : vector<1x4x128xf32> to vector<4x128xf32>
    %115 = vector.shape_cast %112 : vector<4x128xf32> to vector<1x4x128xf32>
    tpu.vector_store %arg15[%c1_87, %c0_88, %c0_89], %115 {strides = array<i32>} : memref<4x4x128xf32, #tpu.memory_space<vmem>>, vector<1x4x128xf32>,
    %116 = arith.mulf %107, %85 : vector<4x128xf32>
    %117 = arith.mulf %109, %73 : vector<4x128xf32>
    %118 = arith.addf %116, %117 : vector<4x128xf32>
    %c1_90 = arith.constant 1 : index
    %c0_91 = arith.constant 0 : index
    %c0_92 = arith.constant 0 : index
    %119 = vector.load %arg16[%c1_90, %c0_91, %c0_92] : memref<4x4x128xf32, #tpu.memory_space<vmem>>, vector<1x4x128xf32>
    %120 = vector.shape_cast %119 : vector<1x4x128xf32> to vector<4x128xf32>
    %121 = vector.shape_cast %118 : vector<4x128xf32> to vector<1x4x128xf32>
    tpu.vector_store %arg16[%c1_90, %c0_91, %c0_92], %121 {strides = array<i32>} : memref<4x4x128xf32, #tpu.memory_space<vmem>>, vector<1x4x128xf32>,
    %c2_93 = arith.constant 2 : index
    %c0_94 = arith.constant 0 : index
    %c0_95 = arith.constant 0 : index
    %122 = vector.load %arg3[%c2_93, %c0_94, %c0_95] : memref<4x4x128xf32, #tpu.memory_space<vmem>>, vector<1x4x128xf32>
    %123 = vector.shape_cast %122 : vector<1x4x128xf32> to vector<4x128xf32>
    %c2_96 = arith.constant 2 : index
    %c0_97 = arith.constant 0 : index
    %c0_98 = arith.constant 0 : index
    %124 = vector.load %arg4[%c2_96, %c0_97, %c0_98] : memref<4x4x128xf32, #tpu.memory_space<vmem>>, vector<1x4x128xf32>
    %125 = vector.shape_cast %124 : vector<1x4x128xf32> to vector<4x128xf32>
    %126 = arith.mulf %123, %73 : vector<4x128xf32>
    %127 = arith.mulf %125, %85 : vector<4x128xf32>
    %128 = arith.subf %126, %127 : vector<4x128xf32>
    %c2_99 = arith.constant 2 : index
    %c0_100 = arith.constant 0 : index
    %c0_101 = arith.constant 0 : index
    %129 = vector.load %arg15[%c2_99, %c0_100, %c0_101] : memref<4x4x128xf32, #tpu.memory_space<vmem>>, vector<1x4x128xf32>
    %130 = vector.shape_cast %129 : vector<1x4x128xf32> to vector<4x128xf32>
    %131 = vector.shape_cast %128 : vector<4x128xf32> to vector<1x4x128xf32>
    tpu.vector_store %arg15[%c2_99, %c0_100, %c0_101], %131 {strides = array<i32>} : memref<4x4x128xf32, #tpu.memory_space<vmem>>, vector<1x4x128xf32>,
    %132 = arith.mulf %123, %85 : vector<4x128xf32>
    %133 = arith.mulf %125, %73 : vector<4x128xf32>
    %134 = arith.addf %132, %133 : vector<4x128xf32>
    %c2_102 = arith.constant 2 : index
    %c0_103 = arith.constant 0 : index
    %c0_104 = arith.constant 0 : index
    %135 = vector.load %arg16[%c2_102, %c0_103, %c0_104] : memref<4x4x128xf32, #tpu.memory_space<vmem>>, vector<1x4x128xf32>
    %136 = vector.shape_cast %135 : vector<1x4x128xf32> to vector<4x128xf32>
    %137 = vector.shape_cast %134 : vector<4x128xf32> to vector<1x4x128xf32>
    tpu.vector_store %arg16[%c2_102, %c0_103, %c0_104], %137 {strides = array<i32>} : memref<4x4x128xf32, #tpu.memory_space<vmem>>, vector<1x4x128xf32>,
    %c3_105 = arith.constant 3 : index
    %c0_106 = arith.constant 0 : index
    %c0_107 = arith.constant 0 : index
    %138 = vector.load %arg3[%c3_105, %c0_106, %c0_107] : memref<4x4x128xf32, #tpu.memory_space<vmem>>, vector<1x4x128xf32>
    %139 = vector.shape_cast %138 : vector<1x4x128xf32> to vector<4x128xf32>
    %c3_108 = arith.constant 3 : index
    %c0_109 = arith.constant 0 : index
    %c0_110 = arith.constant 0 : index
    %140 = vector.load %arg4[%c3_108, %c0_109, %c0_110] : memref<4x4x128xf32, #tpu.memory_space<vmem>>, vector<1x4x128xf32>
    %141 = vector.shape_cast %140 : vector<1x4x128xf32> to vector<4x128xf32>
    %142 = arith.mulf %139, %73 : vector<4x128xf32>
    %143 = arith.mulf %141, %85 : vector<4x128xf32>
    %144 = arith.subf %142, %143 : vector<4x128xf32>
    %c3_111 = arith.constant 3 : index
    %c0_112 = arith.constant 0 : index
    %c0_113 = arith.constant 0 : index
    %145 = vector.load %arg15[%c3_111, %c0_112, %c0_113] : memref<4x4x128xf32, #tpu.memory_space<vmem>>, vector<1x4x128xf32>
    %146 = vector.shape_cast %145 : vector<1x4x128xf32> to vector<4x128xf32>
    %147 = vector.shape_cast %144 : vector<4x128xf32> to vector<1x4x128xf32>
    tpu.vector_store %arg15[%c3_111, %c0_112, %c0_113], %147 {strides = array<i32>} : memref<4x4x128xf32, #tpu.memory_space<vmem>>, vector<1x4x128xf32>,
    %148 = arith.mulf %139, %85 : vector<4x128xf32>
    %149 = arith.mulf %141, %73 : vector<4x128xf32>
    %150 = arith.addf %148, %149 : vector<4x128xf32>
    %c3_114 = arith.constant 3 : index
    %c0_115 = arith.constant 0 : index
    %c0_116 = arith.constant 0 : index
    %151 = vector.load %arg16[%c3_114, %c0_115, %c0_116] : memref<4x4x128xf32, #tpu.memory_space<vmem>>, vector<1x4x128xf32>
    %152 = vector.shape_cast %151 : vector<1x4x128xf32> to vector<4x128xf32>
    %153 = vector.shape_cast %150 : vector<4x128xf32> to vector<1x4x128xf32>
    tpu.vector_store %arg16[%c3_114, %c0_115, %c0_116], %153 {strides = array<i32>} : memref<4x4x128xf32, #tpu.memory_space<vmem>>, vector<1x4x128xf32>,
    %154 = arith.mulf %73, %73 : vector<4x128xf32>
    %155 = arith.mulf %85, %85 : vector<4x128xf32>
    %156 = arith.addf %154, %155 : vector<4x128xf32>
    %157 = vector.shape_cast %156 : vector<4x128xf32> to vector<1x4x128xf32>
    %cst_117 = arith.constant dense<0.000000e+00> : vector<1xf32>
    %158 = vector.multi_reduction <add>, %157, %cst_117 [1, 2] : vector<1x4x128xf32> to vector<1xf32>
    %159 = vector.shape_cast %158 : vector<1xf32> to vector<1x1x1xf32>
    %160 = vector.extract %159[0, 0, 0] : f32 from vector<1x1x1xf32>
    %161 = vector.broadcast %160 : f32 to vector<1x1xf32>
    %c0_i32 = arith.constant 0 : i32
    %162 = arith.cmpi eq, %arg0, %c0_i32 : i32
    %163 = arith.extui %162 : i1 to i32
    %c0_i32_118 = arith.constant 0 : i32
    %164 = arith.cmpi ne, %163, %c0_i32_118 : i32
    scf.if %164 {
      %cst_123 = arith.constant 0.000000e+00 : f32
      %168 = vector.broadcast %cst_123 : f32 to vector<1x1xf32>
      %c0_124 = arith.constant 0 : index
      %c0_125 = arith.constant 0 : index
      %169 = vector.load %arg17[%c0_124, %c0_125] : memref<1x1xf32, #tpu.memory_space<vmem>>, vector<1x1xf32>
      tpu.vector_store %arg17[%c0_124, %c0_125], %168 {strides = array<i32>} : memref<1x1xf32, #tpu.memory_space<vmem>>, vector<1x1xf32>,
    } else {
    }
    %c0_119 = arith.constant 0 : index
    %c0_120 = arith.constant 0 : index
    %165 = vector.load %arg17[%c0_119, %c0_120] : memref<1x1xf32, #tpu.memory_space<vmem>>, vector<1x1xf32>
    %166 = arith.addf %165, %161 : vector<1x1xf32>
    %c0_121 = arith.constant 0 : index
    %c0_122 = arith.constant 0 : index
    %167 = vector.load %arg17[%c0_121, %c0_122] : memref<1x1xf32, #tpu.memory_space<vmem>>, vector<1x1xf32>
    tpu.vector_store %arg17[%c0_121, %c0_122], %166 {strides = array<i32>} : memref<1x1xf32, #tpu.memory_space<vmem>>, vector<1x1xf32>,
    return
  }
  func.func @transform_0(%arg0: i32) -> (i32, i32, i32) {
    %c0_i32 = arith.constant 0 : i32
    %c0_i32_0 = arith.constant 0 : i32
    %c0_i32_1 = arith.constant 0 : i32
    return %c0_i32, %arg0, %c0_i32_0 : i32, i32, i32
  }
  func.func @transform_1(%arg0: i32) -> (i32, i32, i32) {
    %c0_i32 = arith.constant 0 : i32
    %c0_i32_0 = arith.constant 0 : i32
    %c0_i32_1 = arith.constant 0 : i32
    return %c0_i32, %arg0, %c0_i32_0 : i32, i32, i32
  }
  func.func @transform_2(%arg0: i32) -> (i32, i32, i32) {
    %c0_i32 = arith.constant 0 : i32
    %c0_i32_0 = arith.constant 0 : i32
    %c0_i32_1 = arith.constant 0 : i32
    return %c0_i32, %arg0, %c0_i32_0 : i32, i32, i32
  }
  func.func @transform_3(%arg0: i32) -> (i32, i32, i32) {
    %c0_i32 = arith.constant 0 : i32
    %c0_i32_0 = arith.constant 0 : i32
    %c0_i32_1 = arith.constant 0 : i32
    return %c0_i32, %arg0, %c0_i32_0 : i32, i32, i32
  }
  func.func @transform_4(%arg0: i32) -> (i32, i32) {
    %c0_i32 = arith.constant 0 : i32
    %c0_i32_0 = arith.constant 0 : i32
    return %arg0, %c0_i32 : i32, i32
  }
  func.func @transform_5(%arg0: i32) -> (i32, i32) {
    %c0_i32 = arith.constant 0 : i32
    %c0_i32_0 = arith.constant 0 : i32
    return %arg0, %c0_i32 : i32, i32
  }
  func.func @transform_6(%arg0: i32) -> (i32, i32) {
    %c0_i32 = arith.constant 0 : i32
    %c0_i32_0 = arith.constant 0 : i32
    return %arg0, %c0_i32 : i32, i32
  }
  func.func @transform_7(%arg0: i32) -> (i32, i32) {
    %c0_i32 = arith.constant 0 : i32
    %c0_i32_0 = arith.constant 0 : i32
    return %arg0, %c0_i32 : i32, i32
  }
  func.func @transform_8(%arg0: i32) -> (i32, i32) {
    %c0_i32 = arith.constant 0 : i32
    %c0_i32_0 = arith.constant 0 : i32
    return %arg0, %c0_i32 : i32, i32
  }
  func.func @transform_9(%arg0: i32) -> (i32, i32) {
    %c0_i32 = arith.constant 0 : i32
    %c0_i32_0 = arith.constant 0 : i32
    return %arg0, %c0_i32 : i32, i32
  }
  func.func @transform_10(%arg0: i32) -> (i32, i32) {
    %c0_i32 = arith.constant 0 : i32
    %c0_i32_0 = arith.constant 0 : i32
    return %arg0, %c0_i32 : i32, i32
  }
  func.func @transform_11(%arg0: i32) -> (i32, i32) {
    %c0_i32 = arith.constant 0 : i32
    %c0_i32_0 = arith.constant 0 : i32
    return %arg0, %c0_i32 : i32, i32
  }
  func.func @transform_12(%arg0: i32) -> (i32, i32) {
    %c0_i32 = arith.constant 0 : i32
    %c0_i32_0 = arith.constant 0 : i32
    return %arg0, %c0_i32 : i32, i32
  }
  func.func @transform_13(%arg0: i32) -> (i32, i32) {
    %c0_i32 = arith.constant 0 : i32
    %c0_i32_0 = arith.constant 0 : i32
    return %arg0, %c0_i32 : i32, i32
  }
  func.func @transform_14(%arg0: i32) -> (i32, i32, i32) {
    %c0_i32 = arith.constant 0 : i32
    %c0_i32_0 = arith.constant 0 : i32
    %c0_i32_1 = arith.constant 0 : i32
    return %c0_i32, %arg0, %c0_i32_0 : i32, i32, i32
  }
  func.func @transform_15(%arg0: i32) -> (i32, i32, i32) {
    %c0_i32 = arith.constant 0 : i32
    %c0_i32_0 = arith.constant 0 : i32
    %c0_i32_1 = arith.constant 0 : i32
    return %c0_i32, %arg0, %c0_i32_0 : i32, i32, i32
  }
  func.func @transform_16(%arg0: i32) -> (i32, i32) {
    %c0_i32 = arith.constant 0 : i32
    %c0_i32_0 = arith.constant 0 : i32
    %c0_i32_1 = arith.constant 0 : i32
    return %c0_i32, %c0_i32_0 : i32, i32
  }
}

module attributes {stable_mosaic.version = 11 : i64} {
  func.func @cg_ap_kernel(%arg0: i32, %arg1: memref<4x4x128xf32, #tpu.memory_space<vmem>>, %arg2: memref<4x4x128xf32, #tpu.memory_space<vmem>>, %arg3: memref<4x4x128xf32, #tpu.memory_space<vmem>>, %arg4: memref<4x4x128xf32, #tpu.memory_space<vmem>>, %arg5: memref<4x128xf32, #tpu.memory_space<vmem>>, %arg6: memref<4x128xf32, #tpu.memory_space<vmem>>, %arg7: memref<4x128xf32, #tpu.memory_space<vmem>>, %arg8: memref<4x128xf32, #tpu.memory_space<vmem>>, %arg9: memref<1x1xf32, #tpu.memory_space<vmem>>) attributes {dimension_semantics = [#tpu.dimension_semantics<arbitrary>], iteration_bounds = array<i64: 1>, scalar_prefetch = 0 : i64, scratch_operands = 0 : i64, tpu.core_type = #tpu.core_type<tc>, window_params = [{transform_indices = @transform_0, window_bounds = array<i64: 4, 4, 128>}, {transform_indices = @transform_1, window_bounds = array<i64: 4, 4, 128>}, {transform_indices = @transform_2, window_bounds = array<i64: 4, 4, 128>}, {transform_indices = @transform_3, window_bounds = array<i64: 4, 4, 128>}, {transform_indices = @transform_4, window_bounds = array<i64: 4, 128>}, {transform_indices = @transform_5, window_bounds = array<i64: 4, 128>}, {transform_indices = @transform_6, window_bounds = array<i64: 4, 128>}, {transform_indices = @transform_7, window_bounds = array<i64: 4, 128>}, {pipeline_mode = #tpu.pipeline_mode<synchronous>, transform_indices = @transform_8, window_bounds = array<i64: 1, 1>}]} {
    %c0 = arith.constant 0 : index
    %c0_0 = arith.constant 0 : index
    %0 = vector.load %arg5[%c0, %c0_0] : memref<4x128xf32, #tpu.memory_space<vmem>>, vector<4x128xf32>
    %c0_1 = arith.constant 0 : index
    %c0_2 = arith.constant 0 : index
    %1 = vector.load %arg6[%c0_1, %c0_2] : memref<4x128xf32, #tpu.memory_space<vmem>>, vector<4x128xf32>
    %c0_3 = arith.constant 0 : index
    %c0_4 = arith.constant 0 : index
    %c0_5 = arith.constant 0 : index
    %2 = vector.load %arg3[%c0_3, %c0_4, %c0_5] : memref<4x4x128xf32, #tpu.memory_space<vmem>>, vector<1x4x128xf32>
    %3 = vector.shape_cast %2 : vector<1x4x128xf32> to vector<4x128xf32>
    %c0_6 = arith.constant 0 : index
    %c0_7 = arith.constant 0 : index
    %c0_8 = arith.constant 0 : index
    %4 = vector.load %arg4[%c0_6, %c0_7, %c0_8] : memref<4x4x128xf32, #tpu.memory_space<vmem>>, vector<1x4x128xf32>
    %5 = vector.shape_cast %4 : vector<1x4x128xf32> to vector<4x128xf32>
    %c0_9 = arith.constant 0 : index
    %c0_10 = arith.constant 0 : index
    %c0_11 = arith.constant 0 : index
    %6 = vector.load %arg1[%c0_9, %c0_10, %c0_11] : memref<4x4x128xf32, #tpu.memory_space<vmem>>, vector<1x4x128xf32>
    %7 = vector.shape_cast %6 : vector<1x4x128xf32> to vector<4x128xf32>
    %c0_12 = arith.constant 0 : index
    %c0_13 = arith.constant 0 : index
    %c0_14 = arith.constant 0 : index
    %8 = vector.load %arg2[%c0_12, %c0_13, %c0_14] : memref<4x4x128xf32, #tpu.memory_space<vmem>>, vector<1x4x128xf32>
    %9 = vector.shape_cast %8 : vector<1x4x128xf32> to vector<4x128xf32>
    %10 = arith.mulf %3, %7 : vector<4x128xf32>
    %11 = arith.mulf %5, %9 : vector<4x128xf32>
    %12 = arith.addf %10, %11 : vector<4x128xf32>
    %13 = arith.mulf %3, %9 : vector<4x128xf32>
    %14 = arith.mulf %5, %7 : vector<4x128xf32>
    %15 = arith.subf %13, %14 : vector<4x128xf32>
    %c1 = arith.constant 1 : index
    %c0_15 = arith.constant 0 : index
    %c0_16 = arith.constant 0 : index
    %16 = vector.load %arg3[%c1, %c0_15, %c0_16] : memref<4x4x128xf32, #tpu.memory_space<vmem>>, vector<1x4x128xf32>
    %17 = vector.shape_cast %16 : vector<1x4x128xf32> to vector<4x128xf32>
    %c1_17 = arith.constant 1 : index
    %c0_18 = arith.constant 0 : index
    %c0_19 = arith.constant 0 : index
    %18 = vector.load %arg4[%c1_17, %c0_18, %c0_19] : memref<4x4x128xf32, #tpu.memory_space<vmem>>, vector<1x4x128xf32>
    %19 = vector.shape_cast %18 : vector<1x4x128xf32> to vector<4x128xf32>
    %c1_20 = arith.constant 1 : index
    %c0_21 = arith.constant 0 : index
    %c0_22 = arith.constant 0 : index
    %20 = vector.load %arg1[%c1_20, %c0_21, %c0_22] : memref<4x4x128xf32, #tpu.memory_space<vmem>>, vector<1x4x128xf32>
    %21 = vector.shape_cast %20 : vector<1x4x128xf32> to vector<4x128xf32>
    %c1_23 = arith.constant 1 : index
    %c0_24 = arith.constant 0 : index
    %c0_25 = arith.constant 0 : index
    %22 = vector.load %arg2[%c1_23, %c0_24, %c0_25] : memref<4x4x128xf32, #tpu.memory_space<vmem>>, vector<1x4x128xf32>
    %23 = vector.shape_cast %22 : vector<1x4x128xf32> to vector<4x128xf32>
    %24 = arith.mulf %17, %21 : vector<4x128xf32>
    %25 = arith.addf %12, %24 : vector<4x128xf32>
    %26 = arith.mulf %19, %23 : vector<4x128xf32>
    %27 = arith.addf %25, %26 : vector<4x128xf32>
    %28 = arith.mulf %17, %23 : vector<4x128xf32>
    %29 = arith.addf %15, %28 : vector<4x128xf32>
    %30 = arith.mulf %19, %21 : vector<4x128xf32>
    %31 = arith.subf %29, %30 : vector<4x128xf32>
    %c2 = arith.constant 2 : index
    %c0_26 = arith.constant 0 : index
    %c0_27 = arith.constant 0 : index
    %32 = vector.load %arg3[%c2, %c0_26, %c0_27] : memref<4x4x128xf32, #tpu.memory_space<vmem>>, vector<1x4x128xf32>
    %33 = vector.shape_cast %32 : vector<1x4x128xf32> to vector<4x128xf32>
    %c2_28 = arith.constant 2 : index
    %c0_29 = arith.constant 0 : index
    %c0_30 = arith.constant 0 : index
    %34 = vector.load %arg4[%c2_28, %c0_29, %c0_30] : memref<4x4x128xf32, #tpu.memory_space<vmem>>, vector<1x4x128xf32>
    %35 = vector.shape_cast %34 : vector<1x4x128xf32> to vector<4x128xf32>
    %c2_31 = arith.constant 2 : index
    %c0_32 = arith.constant 0 : index
    %c0_33 = arith.constant 0 : index
    %36 = vector.load %arg1[%c2_31, %c0_32, %c0_33] : memref<4x4x128xf32, #tpu.memory_space<vmem>>, vector<1x4x128xf32>
    %37 = vector.shape_cast %36 : vector<1x4x128xf32> to vector<4x128xf32>
    %c2_34 = arith.constant 2 : index
    %c0_35 = arith.constant 0 : index
    %c0_36 = arith.constant 0 : index
    %38 = vector.load %arg2[%c2_34, %c0_35, %c0_36] : memref<4x4x128xf32, #tpu.memory_space<vmem>>, vector<1x4x128xf32>
    %39 = vector.shape_cast %38 : vector<1x4x128xf32> to vector<4x128xf32>
    %40 = arith.mulf %33, %37 : vector<4x128xf32>
    %41 = arith.addf %27, %40 : vector<4x128xf32>
    %42 = arith.mulf %35, %39 : vector<4x128xf32>
    %43 = arith.addf %41, %42 : vector<4x128xf32>
    %44 = arith.mulf %33, %39 : vector<4x128xf32>
    %45 = arith.addf %31, %44 : vector<4x128xf32>
    %46 = arith.mulf %35, %37 : vector<4x128xf32>
    %47 = arith.subf %45, %46 : vector<4x128xf32>
    %c3 = arith.constant 3 : index
    %c0_37 = arith.constant 0 : index
    %c0_38 = arith.constant 0 : index
    %48 = vector.load %arg3[%c3, %c0_37, %c0_38] : memref<4x4x128xf32, #tpu.memory_space<vmem>>, vector<1x4x128xf32>
    %49 = vector.shape_cast %48 : vector<1x4x128xf32> to vector<4x128xf32>
    %c3_39 = arith.constant 3 : index
    %c0_40 = arith.constant 0 : index
    %c0_41 = arith.constant 0 : index
    %50 = vector.load %arg4[%c3_39, %c0_40, %c0_41] : memref<4x4x128xf32, #tpu.memory_space<vmem>>, vector<1x4x128xf32>
    %51 = vector.shape_cast %50 : vector<1x4x128xf32> to vector<4x128xf32>
    %c3_42 = arith.constant 3 : index
    %c0_43 = arith.constant 0 : index
    %c0_44 = arith.constant 0 : index
    %52 = vector.load %arg1[%c3_42, %c0_43, %c0_44] : memref<4x4x128xf32, #tpu.memory_space<vmem>>, vector<1x4x128xf32>
    %53 = vector.shape_cast %52 : vector<1x4x128xf32> to vector<4x128xf32>
    %c3_45 = arith.constant 3 : index
    %c0_46 = arith.constant 0 : index
    %c0_47 = arith.constant 0 : index
    %54 = vector.load %arg2[%c3_45, %c0_46, %c0_47] : memref<4x4x128xf32, #tpu.memory_space<vmem>>, vector<1x4x128xf32>
    %55 = vector.shape_cast %54 : vector<1x4x128xf32> to vector<4x128xf32>
    %56 = arith.mulf %49, %53 : vector<4x128xf32>
    %57 = arith.addf %43, %56 : vector<4x128xf32>
    %58 = arith.mulf %51, %55 : vector<4x128xf32>
    %59 = arith.addf %57, %58 : vector<4x128xf32>
    %60 = arith.mulf %49, %55 : vector<4x128xf32>
    %61 = arith.addf %47, %60 : vector<4x128xf32>
    %62 = arith.mulf %51, %53 : vector<4x128xf32>
    %63 = arith.subf %61, %62 : vector<4x128xf32>
    %cst = arith.constant 1.000000e+00 : f32
    %64 = vector.broadcast %cst : f32 to vector<4x128xf32>
    %65 = arith.mulf %64, %0 : vector<4x128xf32>
    %66 = arith.addf %59, %65 : vector<4x128xf32>
    %cst_48 = arith.constant 1.000000e+00 : f32
    %67 = vector.broadcast %cst_48 : f32 to vector<4x128xf32>
    %68 = arith.mulf %67, %1 : vector<4x128xf32>
    %69 = arith.addf %63, %68 : vector<4x128xf32>
    %c0_49 = arith.constant 0 : index
    %c0_50 = arith.constant 0 : index
    %70 = vector.load %arg7[%c0_49, %c0_50] : memref<4x128xf32, #tpu.memory_space<vmem>>, vector<4x128xf32>
    tpu.vector_store %arg7[%c0_49, %c0_50], %66 {strides = array<i32>} : memref<4x128xf32, #tpu.memory_space<vmem>>, vector<4x128xf32>,
    %c0_51 = arith.constant 0 : index
    %c0_52 = arith.constant 0 : index
    %71 = vector.load %arg8[%c0_51, %c0_52] : memref<4x128xf32, #tpu.memory_space<vmem>>, vector<4x128xf32>
    tpu.vector_store %arg8[%c0_51, %c0_52], %69 {strides = array<i32>} : memref<4x128xf32, #tpu.memory_space<vmem>>, vector<4x128xf32>,
    %72 = arith.mulf %0, %66 : vector<4x128xf32>
    %73 = arith.mulf %1, %69 : vector<4x128xf32>
    %74 = arith.addf %72, %73 : vector<4x128xf32>
    %75 = vector.shape_cast %74 : vector<4x128xf32> to vector<1x4x128xf32>
    %cst_53 = arith.constant dense<0.000000e+00> : vector<1xf32>
    %76 = vector.multi_reduction <add>, %75, %cst_53 [1, 2] : vector<1x4x128xf32> to vector<1xf32>
    %77 = vector.shape_cast %76 : vector<1xf32> to vector<1x1x1xf32>
    %78 = vector.extract %77[0, 0, 0] : f32 from vector<1x1x1xf32>
    %79 = vector.broadcast %78 : f32 to vector<1x1xf32>
    %c0_i32 = arith.constant 0 : i32
    %80 = arith.cmpi eq, %arg0, %c0_i32 : i32
    %81 = arith.extui %80 : i1 to i32
    %c0_i32_54 = arith.constant 0 : i32
    %82 = arith.cmpi ne, %81, %c0_i32_54 : i32
    scf.if %82 {
      %cst_59 = arith.constant 0.000000e+00 : f32
      %86 = vector.broadcast %cst_59 : f32 to vector<1x1xf32>
      %c0_60 = arith.constant 0 : index
      %c0_61 = arith.constant 0 : index
      %87 = vector.load %arg9[%c0_60, %c0_61] : memref<1x1xf32, #tpu.memory_space<vmem>>, vector<1x1xf32>
      tpu.vector_store %arg9[%c0_60, %c0_61], %86 {strides = array<i32>} : memref<1x1xf32, #tpu.memory_space<vmem>>, vector<1x1xf32>,
    } else {
    }
    %c0_55 = arith.constant 0 : index
    %c0_56 = arith.constant 0 : index
    %83 = vector.load %arg9[%c0_55, %c0_56] : memref<1x1xf32, #tpu.memory_space<vmem>>, vector<1x1xf32>
    %84 = arith.addf %83, %79 : vector<1x1xf32>
    %c0_57 = arith.constant 0 : index
    %c0_58 = arith.constant 0 : index
    %85 = vector.load %arg9[%c0_57, %c0_58] : memref<1x1xf32, #tpu.memory_space<vmem>>, vector<1x1xf32>
    tpu.vector_store %arg9[%c0_57, %c0_58], %84 {strides = array<i32>} : memref<1x1xf32, #tpu.memory_space<vmem>>, vector<1x1xf32>,
    return
  }
  func.func @transform_0(%arg0: i32) -> (i32, i32, i32) {
    %c0_i32 = arith.constant 0 : i32
    %c0_i32_0 = arith.constant 0 : i32
    %c0_i32_1 = arith.constant 0 : i32
    return %c0_i32, %arg0, %c0_i32_0 : i32, i32, i32
  }
  func.func @transform_1(%arg0: i32) -> (i32, i32, i32) {
    %c0_i32 = arith.constant 0 : i32
    %c0_i32_0 = arith.constant 0 : i32
    %c0_i32_1 = arith.constant 0 : i32
    return %c0_i32, %arg0, %c0_i32_0 : i32, i32, i32
  }
  func.func @transform_2(%arg0: i32) -> (i32, i32, i32) {
    %c0_i32 = arith.constant 0 : i32
    %c0_i32_0 = arith.constant 0 : i32
    %c0_i32_1 = arith.constant 0 : i32
    return %c0_i32, %arg0, %c0_i32_0 : i32, i32, i32
  }
  func.func @transform_3(%arg0: i32) -> (i32, i32, i32) {
    %c0_i32 = arith.constant 0 : i32
    %c0_i32_0 = arith.constant 0 : i32
    %c0_i32_1 = arith.constant 0 : i32
    return %c0_i32, %arg0, %c0_i32_0 : i32, i32, i32
  }
  func.func @transform_4(%arg0: i32) -> (i32, i32) {
    %c0_i32 = arith.constant 0 : i32
    %c0_i32_0 = arith.constant 0 : i32
    return %arg0, %c0_i32 : i32, i32
  }
  func.func @transform_5(%arg0: i32) -> (i32, i32) {
    %c0_i32 = arith.constant 0 : i32
    %c0_i32_0 = arith.constant 0 : i32
    return %arg0, %c0_i32 : i32, i32
  }
  func.func @transform_6(%arg0: i32) -> (i32, i32) {
    %c0_i32 = arith.constant 0 : i32
    %c0_i32_0 = arith.constant 0 : i32
    return %arg0, %c0_i32 : i32, i32
  }
  func.func @transform_7(%arg0: i32) -> (i32, i32) {
    %c0_i32 = arith.constant 0 : i32
    %c0_i32_0 = arith.constant 0 : i32
    return %arg0, %c0_i32 : i32, i32
  }
  func.func @transform_8(%arg0: i32) -> (i32, i32) {
    %c0_i32 = arith.constant 0 : i32
    %c0_i32_0 = arith.constant 0 : i32
    %c0_i32_1 = arith.constant 0 : i32
    return %c0_i32, %c0_i32_0 : i32, i32
  }
}

module attributes {stable_mosaic.version = 11 : i64} {
  func.func @rel_err_kernel(%arg0: i32, %arg1: memref<4x128xf32, #tpu.memory_space<vmem>>, %arg2: memref<4x128xf32, #tpu.memory_space<vmem>>, %arg3: memref<4x128xf32, #tpu.memory_space<vmem>>, %arg4: memref<4x128xf32, #tpu.memory_space<vmem>>, %arg5: memref<1x1xf32, #tpu.memory_space<vmem>>, %arg6: memref<1x1xf32, #tpu.memory_space<vmem>>) attributes {dimension_semantics = [#tpu.dimension_semantics<arbitrary>], iteration_bounds = array<i64: 1>, scalar_prefetch = 0 : i64, scratch_operands = 0 : i64, tpu.core_type = #tpu.core_type<tc>, window_params = [{transform_indices = @transform_0, window_bounds = array<i64: 4, 128>}, {transform_indices = @transform_1, window_bounds = array<i64: 4, 128>}, {transform_indices = @transform_2, window_bounds = array<i64: 4, 128>}, {transform_indices = @transform_3, window_bounds = array<i64: 4, 128>}, {pipeline_mode = #tpu.pipeline_mode<synchronous>, transform_indices = @transform_4, window_bounds = array<i64: 1, 1>}, {pipeline_mode = #tpu.pipeline_mode<synchronous>, transform_indices = @transform_5, window_bounds = array<i64: 1, 1>}]} {
    %c0 = arith.constant 0 : index
    %c0_0 = arith.constant 0 : index
    %0 = vector.load %arg1[%c0, %c0_0] : memref<4x128xf32, #tpu.memory_space<vmem>>, vector<4x128xf32>
    %c0_1 = arith.constant 0 : index
    %c0_2 = arith.constant 0 : index
    %1 = vector.load %arg3[%c0_1, %c0_2] : memref<4x128xf32, #tpu.memory_space<vmem>>, vector<4x128xf32>
    %2 = arith.subf %0, %1 : vector<4x128xf32>
    %c0_3 = arith.constant 0 : index
    %c0_4 = arith.constant 0 : index
    %3 = vector.load %arg2[%c0_3, %c0_4] : memref<4x128xf32, #tpu.memory_space<vmem>>, vector<4x128xf32>
    %c0_5 = arith.constant 0 : index
    %c0_6 = arith.constant 0 : index
    %4 = vector.load %arg4[%c0_5, %c0_6] : memref<4x128xf32, #tpu.memory_space<vmem>>, vector<4x128xf32>
    %5 = arith.subf %3, %4 : vector<4x128xf32>
    %6 = arith.mulf %2, %2 : vector<4x128xf32>
    %7 = arith.mulf %5, %5 : vector<4x128xf32>
    %8 = arith.addf %6, %7 : vector<4x128xf32>
    %9 = vector.shape_cast %8 : vector<4x128xf32> to vector<1x4x128xf32>
    %cst = arith.constant dense<0.000000e+00> : vector<1xf32>
    %10 = vector.multi_reduction <add>, %9, %cst [1, 2] : vector<1x4x128xf32> to vector<1xf32>
    %11 = vector.shape_cast %10 : vector<1xf32> to vector<1x1x1xf32>
    %12 = vector.extract %11[0, 0, 0] : f32 from vector<1x1x1xf32>
    %13 = vector.broadcast %12 : f32 to vector<1x1xf32>
    %c0_7 = arith.constant 0 : index
    %c0_8 = arith.constant 0 : index
    %14 = vector.load %arg3[%c0_7, %c0_8] : memref<4x128xf32, #tpu.memory_space<vmem>>, vector<4x128xf32>
    %c0_9 = arith.constant 0 : index
    %c0_10 = arith.constant 0 : index
    %15 = vector.load %arg3[%c0_9, %c0_10] : memref<4x128xf32, #tpu.memory_space<vmem>>, vector<4x128xf32>
    %16 = arith.mulf %14, %15 : vector<4x128xf32>
    %c0_11 = arith.constant 0 : index
    %c0_12 = arith.constant 0 : index
    %17 = vector.load %arg4[%c0_11, %c0_12] : memref<4x128xf32, #tpu.memory_space<vmem>>, vector<4x128xf32>
    %c0_13 = arith.constant 0 : index
    %c0_14 = arith.constant 0 : index
    %18 = vector.load %arg4[%c0_13, %c0_14] : memref<4x128xf32, #tpu.memory_space<vmem>>, vector<4x128xf32>
    %19 = arith.mulf %17, %18 : vector<4x128xf32>
    %20 = arith.addf %16, %19 : vector<4x128xf32>
    %21 = vector.shape_cast %20 : vector<4x128xf32> to vector<1x4x128xf32>
    %cst_15 = arith.constant dense<0.000000e+00> : vector<1xf32>
    %22 = vector.multi_reduction <add>, %21, %cst_15 [1, 2] : vector<1x4x128xf32> to vector<1xf32>
    %23 = vector.shape_cast %22 : vector<1xf32> to vector<1x1x1xf32>
    %24 = vector.extract %23[0, 0, 0] : f32 from vector<1x1x1xf32>
    %25 = vector.broadcast %24 : f32 to vector<1x1xf32>
    %c0_i32 = arith.constant 0 : i32
    %26 = arith.cmpi eq, %arg0, %c0_i32 : i32
    %27 = arith.extui %26 : i1 to i32
    %c0_i32_16 = arith.constant 0 : i32
    %28 = arith.cmpi ne, %27, %c0_i32_16 : i32
    scf.if %28 {
      %cst_25 = arith.constant 0.000000e+00 : f32
      %35 = vector.broadcast %cst_25 : f32 to vector<1x1xf32>
      %c0_26 = arith.constant 0 : index
      %c0_27 = arith.constant 0 : index
      %36 = vector.load %arg5[%c0_26, %c0_27] : memref<1x1xf32, #tpu.memory_space<vmem>>, vector<1x1xf32>
      tpu.vector_store %arg5[%c0_26, %c0_27], %35 {strides = array<i32>} : memref<1x1xf32, #tpu.memory_space<vmem>>, vector<1x1xf32>,
      %cst_28 = arith.constant 0.000000e+00 : f32
      %37 = vector.broadcast %cst_28 : f32 to vector<1x1xf32>
      %c0_29 = arith.constant 0 : index
      %c0_30 = arith.constant 0 : index
      %38 = vector.load %arg6[%c0_29, %c0_30] : memref<1x1xf32, #tpu.memory_space<vmem>>, vector<1x1xf32>
      tpu.vector_store %arg6[%c0_29, %c0_30], %37 {strides = array<i32>} : memref<1x1xf32, #tpu.memory_space<vmem>>, vector<1x1xf32>,
    } else {
    }
    %c0_17 = arith.constant 0 : index
    %c0_18 = arith.constant 0 : index
    %29 = vector.load %arg5[%c0_17, %c0_18] : memref<1x1xf32, #tpu.memory_space<vmem>>, vector<1x1xf32>
    %30 = arith.addf %29, %13 : vector<1x1xf32>
    %c0_19 = arith.constant 0 : index
    %c0_20 = arith.constant 0 : index
    %31 = vector.load %arg5[%c0_19, %c0_20] : memref<1x1xf32, #tpu.memory_space<vmem>>, vector<1x1xf32>
    tpu.vector_store %arg5[%c0_19, %c0_20], %30 {strides = array<i32>} : memref<1x1xf32, #tpu.memory_space<vmem>>, vector<1x1xf32>,
    %c0_21 = arith.constant 0 : index
    %c0_22 = arith.constant 0 : index
    %32 = vector.load %arg6[%c0_21, %c0_22] : memref<1x1xf32, #tpu.memory_space<vmem>>, vector<1x1xf32>
    %33 = arith.addf %32, %25 : vector<1x1xf32>
    %c0_23 = arith.constant 0 : index
    %c0_24 = arith.constant 0 : index
    %34 = vector.load %arg6[%c0_23, %c0_24] : memref<1x1xf32, #tpu.memory_space<vmem>>, vector<1x1xf32>
    tpu.vector_store %arg6[%c0_23, %c0_24], %33 {strides = array<i32>} : memref<1x1xf32, #tpu.memory_space<vmem>>, vector<1x1xf32>,
    return
  }
  func.func @transform_0(%arg0: i32) -> (i32, i32) {
    %c0_i32 = arith.constant 0 : i32
    %c0_i32_0 = arith.constant 0 : i32
    return %arg0, %c0_i32 : i32, i32
  }
  func.func @transform_1(%arg0: i32) -> (i32, i32) {
    %c0_i32 = arith.constant 0 : i32
    %c0_i32_0 = arith.constant 0 : i32
    return %arg0, %c0_i32 : i32, i32
  }
  func.func @transform_2(%arg0: i32) -> (i32, i32) {
    %c0_i32 = arith.constant 0 : i32
    %c0_i32_0 = arith.constant 0 : i32
    return %arg0, %c0_i32 : i32, i32
  }
  func.func @transform_3(%arg0: i32) -> (i32, i32) {
    %c0_i32 = arith.constant 0 : i32
    %c0_i32_0 = arith.constant 0 : i32
    return %arg0, %c0_i32 : i32, i32
  }
  func.func @transform_4(%arg0: i32) -> (i32, i32) {
    %c0_i32 = arith.constant 0 : i32
    %c0_i32_0 = arith.constant 0 : i32
    %c0_i32_1 = arith.constant 0 : i32
    return %c0_i32, %c0_i32_0 : i32, i32
  }
  func.func @transform_5(%arg0: i32) -> (i32, i32) {
    %c0_i32 = arith.constant 0 : i32
    %c0_i32_0 = arith.constant 0 : i32
    %c0_i32_1 = arith.constant 0 : i32
    return %c0_i32, %c0_i32_0 : i32, i32
  }
}

</mosaic_0001>

<bundles_post_ra>
// kernel: deq_forward.20
= control target key start
LH: loop header
LB: loop body
LE: loop exit
PB: predicated region body
PF: predicated region fallthrough
CT: control target
= control target key end

     0   :  { %s342_s0 = inlined_call_operand.vmem [shape: f32[4,128], index: 0, kind: input, shape index: {}, may-alias: {0,2}]   ;;  %s343_s1 = inlined_call_operand.vmem [shape: f32[4,128], index: 1, kind: input, shape index: {}, may-alias: {1,3}]   ;;  %s344_s2 = inlined_call_operand.vmem [shape: f32[4,128], index: 2, kind: input, shape index: {}, may-alias: {0,2}]   ;;  %s345_s3 = inlined_call_operand.vmem [shape: f32[4,128], index: 3, kind: input, shape index: {}, may-alias: {1,3}]   ;;  %s346_s4 = inlined_call_operand.vmem [shape: f32[4,4,128], index: 4, kind: input, shape index: {}]   ;;  %s347_s5 = inlined_call_operand.vmem [shape: f32[4,4,128], index: 5, kind: input, shape index: {}]   ;;  %s348_s6 = inlined_call_operand.vmem [shape: f32[4,128], index: 6, kind: output, shape index: {0}]   ;;  %s349_s7 = inlined_call_operand.vmem [shape: f32[4,128], index: 7, kind: output, shape index: {1}]   ;;  %s350_s8 = inlined_call_operand.vmem [shape: f32[4,128], index: 8, kind: output, shape index: {2}]   ;;  %s351_s9 = inlined_call_operand.vmem [shape: f32[4,128], index: 9, kind: output, shape index: {3}]   ;;  %s352_s10 = inlined_call_operand.vmem [shape: f32[4,4,128], index: 10, kind: output, shape index: {4}]   ;;  %s353_s11 = inlined_call_operand.vmem [shape: f32[4,4,128], index: 11, kind: output, shape index: {5}]   ;;  %s354_s12 = inlined_call_operand.hbm [shape: f32[1,1], index: 12, kind: output, shape index: {6}]  }
   0x1   :  { %v31_v0 = vld [vmem:[%s342_s0] sm:$0xf]  ;;  %v160_v11 = vld [vmem:[%s346_s4 + $0x4] sm:$0xf]  ;;  %v164_v14 = vld [vmem:[%s346_s4 + $0x8] sm:$0xf] }
   0x2   :  { %v33_v1 = vld [vmem:[%s344_s2] sm:$0xf]  ;;  %v32_v3 = vmul.f32 0.0, %v31_v0  ;;  %v161_v12 = vld [vmem:[%s347_s5 + $0x4] sm:$0xf] }
   0x3   :  { %v36_v2 = vld [vmem:[%s343_s1] sm:$0xf]  ;;  %v34_v4 = vmul.f32 0.5, %v33_v1  ;;  %v165_v15 = vld [vmem:[%s347_s5 + $0x8] sm:$0xf] }
   0x4   :  { %v37_v5 = vmul.f32 0.0, %v36_v2  ;;  %v38_v6 = vld [vmem:[%s345_s3] sm:$0xf] }
   0x5   :  { %v39_v7 = vmul.f32 0.5, %v38_v6  ;;  %v45_v8 = vld [vmem:[%s346_s4] sm:$0xf]  ;;  %v35_v10 = vadd.f32 %v34_v4, %v32_v3 }
   0x6   :  { %v46_v9 = vld [vmem:[%s347_s5] sm:$0xf] }
   0x7   :  { %v40_v13 = vadd.f32 %v39_v7, %v37_v5  ;;  %41 = vst [vmem:[%s348_s6] sm:$0xf] %v35_v10  ;;  %43 = vst [vmem:[%s350_s8] sm:$0xf] %v35_v10  ;;  %v47_v16 = vmul.f32 %v45_v8, %v35_v10  ;;  %v52_v17 = vmul.f32 %v46_v9, %v35_v10 }
   0x8   :  { %v59_v18 = vmul.f32 %v160_v11, %v35_v10  ;;  %v65_v19 = vmul.f32 %v161_v12, %v35_v10 }
   0x9   :  { %18 = vsyncpa [#allocation3], 0  ;;  %42 = vst [vmem:[%s349_s7] sm:$0xf] %v40_v13  ;;  %v48_v20 = vmul.f32 %v46_v9, %v40_v13  ;;  %v51_v21 = vmul.f32 %v45_v8, %v40_v13  ;;  %v60_v22 = vmul.f32 %v161_v12, %v40_v13  ;;  %v64_v23 = vmul.f32 %v160_v11, %v40_v13  ;;  %v168_v24 = vld [vmem:[%s346_s4 + $0xc] sm:$0xf] }
   0xa   :  { %44 = vst [vmem:[%s351_s9] sm:$0xf] %v40_v13  ;;  %v169_v25 = vld [vmem:[%s347_s5 + $0xc] sm:$0xf]  ;;  %v73_v26 = vmul.f32 %v164_v14, %v35_v10  ;;  %v74_v27 = vmul.f32 %v165_v15, %v40_v13  ;;  %v78_v28 = vmul.f32 %v164_v14, %v40_v13  ;;  %v79_v29 = vmul.f32 %v165_v15, %v35_v10 }
   0xb   :  { %v49_v30 = vsub.f32 %v47_v16, %v48_v20  ;;  %v53_v31 = vadd.f32 %v52_v17, %v51_v21  ;;  %v61_v32 = vsub.f32 %v59_v18, %v60_v22  ;;  %v66_v33 = vadd.f32 %v65_v19, %v64_v23 }
   0xc   :  { %v75_v34 = vsub.f32 %v73_v26, %v74_v27  ;;  %v80_v35 = vadd.f32 %v79_v29, %v78_v28  ;;  %v87_v36 = vmul.f32 %v168_v24, %v35_v10  ;;  %v88_v37 = vmul.f32 %v169_v25, %v40_v13 }
   0xd   :  { %50 = vst [vmem:[%s352_s10] sm:$0xf] %v49_v30  ;;  %54 = vst [vmem:[%s353_s11] sm:$0xf] %v53_v31  ;;  %v92_v38 = vmul.f32 %v168_v24, %v40_v13  ;;  %v93_v39 = vmul.f32 %v169_v25, %v35_v10  ;;  %v97_v40 = vmul.f32 %v35_v10, %v35_v10  ;;  %vm100_vm0 = vcmask 1043456  }
   0xe   :  { %162 = vst [vmem:[%s352_s10 + $0x4] sm:$0xf] %v61_v32  ;;  %163 = vst [vmem:[%s353_s11 + $0x4] sm:$0xf] %v66_v33  ;;  %v98_v41 = vmul.f32 %v40_v13, %v40_v13  ;;  %v89_v42 = vsub.f32 %v87_v36, %v88_v37  ;;  %vm116_vm1 = vcmask 0   ;;  %v198_v46 = vmov 0.0  }
   0xf   :  { %166 = vst [vmem:[%s352_s10 + $0x8] sm:$0xf] %v75_v34  ;;  %167 = vst [vmem:[%s353_s11 + $0x8] sm:$0xf] %v80_v35  ;;  %v94_v43 = vadd.f32 %v93_v39, %v92_v38 }
  0x10   :  { %v99_v44 = vadd.f32 %v98_v41, %v97_v40  ;;  %170 = vst [vmem:[%s352_s10 + $0xc] sm:$0xf] %v89_v42  ;;  %117 = vst.msk [vmem:[#allocation2] sm:$0x1] %vm116_vm1, %v198_v46  ;;  %s199_s10 = smov [#allocation2]  }
  0x11   :  { %171 = vst [vmem:[%s353_s11 + $0xc] sm:$0xf] %v94_v43  ;;  %s140_s19 = sshll.u32 %s199_s10, 4  ;;  %s141_s19 = int_to_ptr.vmem [resolvable:$true] %s140_s19 }
  0x12   :  { %v101_v45 = vsel %vm100_vm0, %v99_v44, 0.0  ;;  %s176_s11 = scalar_lea.vmem %s141_s19, 16  ;;  %s180_s21 = scalar_lea.vmem %s141_s19, 32 }
  0x13   :  { %102 = vadd.xlane.f32.xlu0 %v101_v45  ;;  %p177_p0 = scmp.ne.s32.totalorder %s141_s19, %s176_s11  ;;  %p181_p1 = scmp.lt.s32.totalorder %s141_s19, %s141_s19 }
  0x14   :  { %p182_p2 = scmp.lt.s32.totalorder %s180_s21, %s176_s11 }
  0x16   :  { %p183_p3 = por %p182_p2, %p181_p1 }
  0x17   :  { %v118_v54 = vld [vmem:[#allocation2] sm:$0x1] }
  0x18   :  { %p184_p4 = pnand %p183_p3, %p177_p0 }
  0x9c   :  { %v103_v47 = vpop.xlane.xlu0 %102 }
  0x9d   :  { %v104_v48 = vrot.slane %v103_v47, 4 }
  0x9f   :  { %v105_v49 = vadd.f32 %v104_v48, %v103_v47 }
  0xa1   :  { %v106_v50 = vrot.slane %v105_v49, 2 }
  0xa3   :  { %v107_v51 = vadd.f32 %v106_v50, %v105_v49 }
  0xa5   :  { %v108_v52 = vrot.slane %v107_v51, 1 }
  0xa7   :  { %v109_v53 = vadd.f32 %v108_v52, %v107_v51 }
  0xa9   :  { %172 = vpush %v109_v53 }
  0xda   :  { %s173_s20 = spop %172 }
  0xdb   :  { %v111_v55 = vstv %s173_s20 }
  0xdc   :  { %v119_v56 = vadd.f32 %v118_v54, %v111_v55 }
  0xde   :  { %121 = vst.msk [vmem:[#allocation2] sm:$0x1] %vm116_vm1, %v119_v56 }
  0xdf   :  { %187 = shalt.err (!%p184_p4)
}
  0xe0   :  { %143 = dma.vmem_to_hbm [thread:$0]  %s141_s19, 16, %s354_s12, [#allocation3]  }
  0xe1   :  { %196 = dma.done.wait [#allocation3], 16  }
  0xe2   :  { %197 = vsyncadd [#allocation3], 4294967280 }
  0xe3   :  { %159 = vsyncpa [#allocation3], 1 }

// kernel: deq_forward.19
= control target key start
LH: loop header
LB: loop body
LE: loop exit
PB: predicated region body
PF: predicated region fallthrough
CT: control target
= control target key end

     0   :  { %s183_s0 = inlined_call_operand.vmem [shape: f32[4,4,128], index: 0, kind: input, shape index: {}]   ;;  %s184_s1 = inlined_call_operand.vmem [shape: f32[4,4,128], index: 1, kind: input, shape index: {}]   ;;  %s185_s2 = inlined_call_operand.vmem [shape: f32[4,4,128], index: 2, kind: input, shape index: {}]   ;;  %s186_s3 = inlined_call_operand.vmem [shape: f32[4,4,128], index: 3, kind: input, shape index: {}]   ;;  %s187_s4 = inlined_call_operand.vmem [shape: f32[4,128], index: 4, kind: output, shape index: {0}]   ;;  %s188_s5 = inlined_call_operand.vmem [shape: f32[4,128], index: 5, kind: output, shape index: {1}]  }
   0x1   :  { %v19_v0 = vld [vmem:[%s185_s2] sm:$0xf]  ;;  %v87_v6 = vld [vmem:[%s185_s2 + $0x4] sm:$0xf]  ;;  %v91_v13 = vld [vmem:[%s185_s2 + $0x8] sm:$0xf] }
   0x2   :  { %v20_v1 = vld [vmem:[%s186_s3] sm:$0xf]  ;;  %v88_v7 = vld [vmem:[%s186_s3 + $0x4] sm:$0xf]  ;;  %v93_v14 = vld [vmem:[%s183_s0 + $0x8] sm:$0xf] }
   0x3   :  { %v21_v2 = vld [vmem:[%s183_s0] sm:$0xf]  ;;  %v89_v10 = vld [vmem:[%s183_s0 + $0x4] sm:$0xf]  ;;  %v94_v15 = vld [vmem:[%s184_s1 + $0x8] sm:$0xf]  ;;  %v53_v23 = vmul.f32 %v93_v14, %v91_v13 }
   0x4   :  { %v22_v3 = vld [vmem:[%s184_s1] sm:$0xf]  ;;  %v23_v4 = vmul.f32 %v21_v2, %v19_v0  ;;  %v27_v5 = vmul.f32 %v21_v2, %v20_v1  ;;  %v90_v11 = vld [vmem:[%s184_s1 + $0x4] sm:$0xf]  ;;  %v37_v12 = vmul.f32 %v89_v10, %v87_v6  ;;  %v43_v20 = vmul.f32 %v89_v10, %v88_v7  ;;  %v92_v21 = vld [vmem:[%s186_s3 + $0x8] sm:$0xf] }
   0x5   :  { %v24_v8 = vmul.f32 %v22_v3, %v20_v1  ;;  %v26_v9 = vmul.f32 %v22_v3, %v19_v0  ;;  %v41_v16 = vmul.f32 %v90_v11, %v87_v6  ;;  %v39_v18 = vmul.f32 %v90_v11, %v88_v7  ;;  %v95_v26 = vld [vmem:[%s185_s2 + $0xc] sm:$0xf] }
   0x6   :  { %v57_v25 = vmul.f32 %v94_v15, %v91_v13  ;;  %v97_v27 = vld [vmem:[%s183_s0 + $0xc] sm:$0xf]  ;;  %v55_v30 = vmul.f32 %v94_v15, %v92_v21  ;;  %v59_v32 = vmul.f32 %v93_v14, %v92_v21 }
   0x7   :  { %v25_v17 = vadd.f32 %v24_v8, %v23_v4  ;;  %v28_v19 = vsub.f32 %v26_v9, %v27_v5  ;;  %v98_v28 = vld [vmem:[%s184_s1 + $0xc] sm:$0xf]  ;;  %v69_v35 = vmul.f32 %v97_v27, %v95_v26 }
   0x8   :  { %v96_v33 = vld [vmem:[%s186_s3 + $0xc] sm:$0xf]  ;;  %v73_v37 = vmul.f32 %v98_v28, %v95_v26 }
   0x9   :  { %v38_v22 = vadd.f32 %v37_v12, %v25_v17  ;;  %v42_v24 = vadd.f32 %v41_v16, %v28_v19  ;;  %v71_v39 = vmul.f32 %v98_v28, %v96_v33  ;;  %v75_v41 = vmul.f32 %v97_v27, %v96_v33 }
   0xb   :  { %v40_v29 = vadd.f32 %v39_v18, %v38_v22  ;;  %v44_v31 = vsub.f32 %v42_v24, %v43_v20 }
   0xd   :  { %v54_v34 = vadd.f32 %v53_v23, %v40_v29  ;;  %v58_v36 = vadd.f32 %v57_v25, %v44_v31 }
   0xf   :  { %v56_v38 = vadd.f32 %v55_v30, %v54_v34  ;;  %v60_v40 = vsub.f32 %v58_v36, %v59_v32 }
  0x11   :  { %v70_v42 = vadd.f32 %v69_v35, %v56_v38  ;;  %v74_v43 = vadd.f32 %v73_v37, %v60_v40 }
  0x13   :  { %v72_v44 = vadd.f32 %v71_v39, %v70_v42  ;;  %v76_v45 = vsub.f32 %v74_v43, %v75_v41 }
  0x15   :  { %77 = vst [vmem:[%s187_s4] sm:$0xf] %v72_v44  ;;  %78 = vst [vmem:[%s188_s5] sm:$0xf] %v76_v45 }

// kernel: closed_call.240
= control target key start
LH: loop header
LB: loop body
LE: loop exit
PB: predicated region body
PF: predicated region fallthrough
CT: control target
= control target key end

     0   :  { %s290_s0 = inlined_call_operand.vmem [shape: f32[4,4,128], index: 0, kind: input, shape index: {}]   ;;  %s291_s1 = inlined_call_operand.vmem [shape: f32[4,4,128], index: 1, kind: input, shape index: {}]   ;;  %s292_s2 = inlined_call_operand.vmem [shape: f32[4,4,128], index: 2, kind: input, shape index: {}]   ;;  %s293_s3 = inlined_call_operand.vmem [shape: f32[4,4,128], index: 3, kind: input, shape index: {}]   ;;  %s294_s4 = inlined_call_operand.vmem [shape: f32[4,128], index: 4, kind: input, shape index: {}]   ;;  %s295_s5 = inlined_call_operand.vmem [shape: f32[4,128], index: 5, kind: input, shape index: {}]   ;;  %s296_s6 = inlined_call_operand.vmem [shape: f32[4,128], index: 6, kind: output, shape index: {0}]   ;;  %s297_s7 = inlined_call_operand.vmem [shape: f32[4,128], index: 7, kind: output, shape index: {1}]   ;;  %s298_s8 = inlined_call_operand.hbm [shape: f32[1,1], index: 8, kind: output, shape index: {2}]  }
   0x1   :  { %v29_v0 = vld [vmem:[%s292_s2] sm:$0xf]  ;;  %v140_v8 = vld [vmem:[%s292_s2 + $0x4] sm:$0xf]  ;;  %v144_v14 = vld [vmem:[%s292_s2 + $0x8] sm:$0xf] }
   0x2   :  { %v30_v1 = vld [vmem:[%s293_s3] sm:$0xf]  ;;  %v141_v9 = vld [vmem:[%s293_s3 + $0x4] sm:$0xf]  ;;  %v146_v19 = vld [vmem:[%s290_s0 + $0x8] sm:$0xf] }
   0x3   :  { %v31_v2 = vld [vmem:[%s290_s0] sm:$0xf]  ;;  %v142_v10 = vld [vmem:[%s290_s0 + $0x4] sm:$0xf]  ;;  %v147_v20 = vld [vmem:[%s291_s1 + $0x8] sm:$0xf]  ;;  %v63_v24 = vmul.f32 %v146_v19, %v144_v14 }
   0x4   :  { %v32_v3 = vld [vmem:[%s291_s1] sm:$0xf]  ;;  %v33_v4 = vmul.f32 %v31_v2, %v29_v0  ;;  %v37_v7 = vmul.f32 %v31_v2, %v30_v1  ;;  %v143_v11 = vld [vmem:[%s291_s1 + $0x4] sm:$0xf]  ;;  %v47_v12 = vmul.f32 %v142_v10, %v140_v8  ;;  %v53_v13 = vmul.f32 %v142_v10, %v141_v9  ;;  %v145_v21 = vld [vmem:[%s293_s3 + $0x8] sm:$0xf] }
   0x5   :  { %v34_v5 = vmul.f32 %v32_v3, %v30_v1  ;;  %v36_v6 = vmul.f32 %v32_v3, %v29_v0  ;;  %v49_v17 = vmul.f32 %v143_v11, %v141_v9  ;;  %v51_v18 = vmul.f32 %v143_v11, %v140_v8 }
   0x6   :  { %v67_v25 = vmul.f32 %v147_v20, %v144_v14 }
   0x7   :  { %v35_v15 = vadd.f32 %v34_v5, %v33_v4  ;;  %v38_v16 = vsub.f32 %v36_v6, %v37_v7 }
   0x9   :  { %v48_v22 = vadd.f32 %v47_v12, %v35_v15  ;;  %v52_v23 = vadd.f32 %v51_v18, %v38_v16 }
   0xa   :  { %14 = vsyncpa [#allocation3], 0  ;;  %v148_v26 = vld [vmem:[%s292_s2 + $0xc] sm:$0xf]  ;;  %v65_v31 = vmul.f32 %v147_v20, %v145_v21  ;;  %v69_v32 = vmul.f32 %v146_v19, %v145_v21  ;;  %v27_v38 = vld [vmem:[%s294_s4] sm:$0xf] }
   0xb   :  { %v150_v27 = vld [vmem:[%s290_s0 + $0xc] sm:$0xf]  ;;  %v50_v29 = vadd.f32 %v49_v17, %v48_v22  ;;  %v54_v30 = vsub.f32 %v52_v23, %v53_v13  ;;  %v28_v39 = vld [vmem:[%s295_s5] sm:$0xf]  ;;  %v87_v46 = vmul.f32 0.5, %v27_v38  ;;  %vm96_vm0 = vcmask 1043456  }
   0xc   :  { %v151_v28 = vld [vmem:[%s291_s1 + $0xc] sm:$0xf]  ;;  %v79_v36 = vmul.f32 %v150_v27, %v148_v26  ;;  %v89_v47 = vmul.f32 0.5, %v28_v39  ;;  %vm112_vm1 = vcmask 0   ;;  %v178_v56 = vmov 0.0   ;;  %s179_s5 = smov [#allocation2]  }
   0xd   :  { %v149_v33 = vld [vmem:[%s293_s3 + $0xc] sm:$0xf]  ;;  %v64_v34 = vadd.f32 %v63_v24, %v50_v29  ;;  %v68_v35 = vadd.f32 %v67_v25, %v54_v30  ;;  %v83_v37 = vmul.f32 %v151_v28, %v148_v26  ;;  %113 = vst.msk [vmem:[#allocation2] sm:$0x1] %vm112_vm1, %v178_v56 }
   0xe   :  { %v81_v42 = vmul.f32 %v151_v28, %v149_v33  ;;  %v85_v43 = vmul.f32 %v150_v27, %v149_v33 }
   0xf   :  { %v66_v40 = vadd.f32 %v65_v31, %v64_v34  ;;  %v70_v41 = vsub.f32 %v68_v35, %v69_v32 }
  0x11   :  { %v80_v44 = vadd.f32 %v79_v36, %v66_v40  ;;  %v84_v45 = vadd.f32 %v83_v37, %v70_v41 }
  0x13   :  { %v82_v48 = vadd.f32 %v81_v42, %v80_v44  ;;  %v86_v49 = vsub.f32 %v84_v45, %v85_v43 }
  0x14   :  { %v114_v0 = vld [vmem:[#allocation2] sm:$0x1] }
  0x15   :  { %v88_v50 = vadd.f32 %v87_v46, %v82_v48  ;;  %v90_v51 = vadd.f32 %v89_v47, %v86_v49 }
  0x17   :  { %91 = vst [vmem:[%s296_s6] sm:$0xf] %v88_v50  ;;  %92 = vst [vmem:[%s297_s7] sm:$0xf] %v90_v51  ;;  %v93_v52 = vmul.f32 %v88_v50, %v27_v38  ;;  %v94_v53 = vmul.f32 %v90_v51, %v28_v39  ;;  %s128_s6 = sshll.u32 %s179_s5, 4  ;;  %s129_s6 = int_to_ptr.vmem [resolvable:$true] %s128_s6 }
  0x18   :  { %s156_s18 = scalar_lea.vmem %s129_s6, 16  ;;  %s160_s19 = scalar_lea.vmem %s129_s6, 32 }
  0x19   :  { %v95_v54 = vadd.f32 %v94_v53, %v93_v52  ;;  %p157_p0 = scmp.ne.s32.totalorder %s129_s6, %s156_s18  ;;  %p161_p1 = scmp.lt.s32.totalorder %s129_s6, %s129_s6 }
  0x1a   :  { %p162_p2 = scmp.lt.s32.totalorder %s160_s19, %s156_s18 }
  0x1b   :  { %v97_v55 = vsel %vm96_vm0, %v95_v54, 0.0 }
  0x1c   :  { %98 = vadd.xlane.f32.xlu0 %v97_v55  ;;  %p163_p3 = por %p162_p2, %p161_p1 }
  0x1e   :  { %p164_p4 = pnand %p163_p3, %p157_p0 }
  0xa5   :  { %v99_v57 = vpop.xlane.xlu0 %98 }
  0xa6   :  { %v100_v58 = vrot.slane %v99_v57, 4 }
  0xa8   :  { %v101_v59 = vadd.f32 %v100_v58, %v99_v57 }
  0xaa   :  { %v102_v60 = vrot.slane %v101_v59, 2 }
  0xac   :  { %v103_v61 = vadd.f32 %v102_v60, %v101_v59 }
  0xae   :  { %v104_v62 = vrot.slane %v103_v61, 1 }
  0xb0   :  { %v105_v63 = vadd.f32 %v104_v62, %v103_v61 }
  0xb2   :  { %152 = vpush %v105_v63 }
  0xe3   :  { %s153_s7 = spop %152 }
  0xe4   :  { %v107_v1 = vstv %s153_s7 }
  0xe5   :  { %v115_v2 = vadd.f32 %v114_v0, %v107_v1 }
  0xe7   :  { %117 = vst.msk [vmem:[#allocation2] sm:$0x1] %vm112_vm1, %v115_v2 }
  0xe8   :  { %167 = shalt.err (!%p164_p4)
}
  0xe9   :  { %131 = dma.vmem_to_hbm [thread:$0]  %s129_s6, 16, %s298_s8, [#allocation3]  }
  0xea   :  { %176 = dma.done.wait [#allocation3], 16  }
  0xeb   :  { %177 = vsyncadd [#allocation3], 4294967280 }
  0xec   :  { %139 = vsyncpa [#allocation3], 1 }

// kernel: closed_call.241
= control target key start
LH: loop header
LB: loop body
LE: loop exit
PB: predicated region body
PF: predicated region fallthrough
CT: control target
= control target key end

     0   :  { %s289_s0 = inlined_call_operand.vmem [shape: f32[4,128], index: 0, kind: input, shape index: {}]   ;;  %s290_s1 = inlined_call_operand.vmem [shape: f32[4,128], index: 1, kind: input, shape index: {}]   ;;  %s291_s2 = inlined_call_operand.vmem [shape: f32[4,128], index: 2, kind: input, shape index: {}]   ;;  %s292_s3 = inlined_call_operand.vmem [shape: f32[4,128], index: 3, kind: input, shape index: {}]   ;;  %s293_s4 = inlined_call_operand.vmem [shape: f32[4,128], index: 4, kind: input, shape index: {}]   ;;  %s294_s5 = inlined_call_operand.vmem [shape: f32[4,128], index: 5, kind: input, shape index: {}]   ;;  %s295_s6 = inlined_call_operand.vmem [shape: f32[4,128], index: 6, kind: input, shape index: {}]   ;;  %s296_s7 = inlined_call_operand.vmem [shape: f32[4,128], index: 7, kind: input, shape index: {}]   ;;  %s297_s8 = inlined_call_operand.<no memory space> [shape: f32[1,1], index: 8, kind: input, shape index: {}]   ;;  %s298_s10 = inlined_call_operand.vmem [shape: f32[4,128], index: 10, kind: output, shape index: {0}]   ;;  %s299_s11 = inlined_call_operand.vmem [shape: f32[4,128], index: 11, kind: output, shape index: {1}]   ;;  %s300_s12 = inlined_call_operand.vmem [shape: f32[4,128], index: 12, kind: output, shape index: {2}]   ;;  %s301_s13 = inlined_call_operand.vmem [shape: f32[4,128], index: 13, kind: output, shape index: {3}]   ;;  %s302_s14 = inlined_call_operand.hbm [shape: f32[1,1], index: 14, kind: output, shape index: {4}]   ;;  %s303_s9 = inlined_call_operand.<no memory space> [shape: f32[1,1], index: 9, kind: input, shape index: {}]  }
   0x1   :  { %v20_v0 = vstv %s297_s8  ;;  %v22_v1 = vstv %s303_s9 }
   0x2   :  { %21 = vst [vmem:[#allocation2] sm:$0x1] %v20_v0  ;;  %23 = vst [vmem:[#allocation3] sm:$0x1] %v22_v1 }
   0x3   :  { %v164_v3 = vmov 0  }
   0x4   :  { %139 = vset.pattern.permute.xlu0 %v164_v3 }
   0x9   :  { %v46_v2 = vld [vmem:[#allocation3] sm:$0x1] }
   0xa   :  { %v47_v4 = vadd.f32 1e-12, %v46_v2 }
   0xc   :  { %140 = vrcp.f32 %v47_v4 }
   0xd   :  { %24 = vsyncpa [#allocation5], 0  ;;  %v53_v5 = vlaneseq  ;;  %v45_v7 = vld [vmem:[#allocation2] sm:$0x1]  ;;  %vm82_vm0 = vcmask 1043456   ;;  %vm98_vm1 = vcmask 0  }
   0xe   :  { %v51_v12 = vld [vmem:[%s293_s4] sm:$0xf]  ;;  %v165_v33 = vmov 0.0  }
   0xf   :  { %v54_v6 = vshrl.u32 %v53_v5, 7  ;;  %v65_v13 = vld [vmem:[%s294_s5] sm:$0xf]  ;;  %99 = vst.msk [vmem:[#allocation4] sm:$0x1] %vm98_vm1, %v165_v33 }
  0x10   :  { %v70_v14 = vld [vmem:[%s295_s6] sm:$0xf] }
  0x11   :  { %v55_v8 = vsub.s32 0, %v54_v6  ;;  %v74_v15 = vld [vmem:[%s296_s7] sm:$0xf] }
  0x12   :  { %v50_v16 = vld [vmem:[%s289_s0] sm:$0xf] }
  0x13   :  { %v64_v17 = vld [vmem:[%s290_s1] sm:$0xf] }
  0x14   :  { %v69_v19 = vld [vmem:[%s291_s2] sm:$0xf] }
  0x15   :  { %v73_v20 = vld [vmem:[%s292_s3] sm:$0xf] }
  0x16   :  { %v100_v41 = vld [vmem:[#allocation4] sm:$0x1] }
  0x19   :  { %v141_v9 = vpop.eup %140 }
  0x1a   :  { %v49_v10 = vmul.f32 %v141_v9, %v45_v7 }
  0x1c   :  { %v56_v11 = vrot.slane %v49_v10, %v55_v8 }
  0x1e   :  { %58 = vperm.xlu0 %139, %v56_v11  }
  0x99   :  { %v59_v18 = vpop.permute.xlu0 %58 }
  0x9a   :  { %v61_v21 = vmul.f32 %v59_v18, %v51_v12  ;;  %v66_v22 = vmul.f32 %v65_v13, %v59_v18  ;;  %v71_v23 = vmul.f32 %v70_v14, %v59_v18  ;;  %v75_v24 = vmul.f32 %v74_v15, %v59_v18 }
  0x9c   :  { %v62_v25 = vadd.f32 %v61_v21, %v50_v16  ;;  %v67_v26 = vadd.f32 %v66_v22, %v64_v17  ;;  %v72_v27 = vsub.f32 %v69_v19, %v71_v23  ;;  %v76_v28 = vsub.f32 %v73_v20, %v75_v24 }
  0x9e   :  { %63 = vst [vmem:[%s298_s10] sm:$0xf] %v62_v25  ;;  %68 = vst [vmem:[%s299_s11] sm:$0xf] %v67_v26  ;;  %v79_v29 = vmul.f32 %v72_v27, %v72_v27  ;;  %v80_v30 = vmul.f32 %v76_v28, %v76_v28  ;;  %s166_s10 = smov [#allocation4]  }
  0x9f   :  { %78 = vst [vmem:[%s301_s13] sm:$0xf] %v76_v28  ;;  %77 = vst [vmem:[%s300_s12] sm:$0xf] %v72_v27  ;;  %s118_s11 = sshll.u32 %s166_s10, 4  ;;  %s119_s11 = int_to_ptr.vmem [resolvable:$true] %s118_s11 }
  0xa0   :  { %v81_v31 = vadd.f32 %v80_v30, %v79_v29  ;;  %s142_s13 = scalar_lea.vmem %s119_s11, 16  ;;  %s146_s15 = scalar_lea.vmem %s119_s11, 32 }
  0xa1   :  { %p143_p0 = scmp.ne.s32.totalorder %s119_s11, %s142_s13  ;;  %p147_p1 = scmp.lt.s32.totalorder %s119_s11, %s119_s11 }
  0xa2   :  { %v83_v32 = vsel %vm82_vm0, %v81_v31, 0.0  ;;  %p148_p2 = scmp.lt.s32.totalorder %s146_s15, %s142_s13 }
  0xa3   :  { %84 = vadd.xlane.f32.xlu0 %v83_v32 }
  0xa4   :  { %p149_p3 = por %p148_p2, %p147_p1 }
  0xa6   :  { %p150_p4 = pnand %p149_p3, %p143_p0 }
 0x12c   :  { %v85_v34 = vpop.xlane.xlu0 %84 }
 0x12d   :  { %v86_v35 = vrot.slane %v85_v34, 4 }
 0x12f   :  { %v87_v36 = vadd.f32 %v86_v35, %v85_v34 }
 0x131   :  { %v88_v37 = vrot.slane %v87_v36, 2 }
 0x133   :  { %v89_v38 = vadd.f32 %v88_v37, %v87_v36 }
 0x135   :  { %v90_v39 = vrot.slane %v89_v38, 1 }
 0x137   :  { %v91_v40 = vadd.f32 %v90_v39, %v89_v38 }
 0x139   :  { %134 = vpush %v91_v40 }
 0x16a   :  { %s135_s12 = spop %134 }
 0x16b   :  { %v93_v42 = vstv %s135_s12 }
 0x16c   :  { %v101_v43 = vadd.f32 %v100_v41, %v93_v42 }
 0x16e   :  { %103 = vst.msk [vmem:[#allocation4] sm:$0x1] %vm98_vm1, %v101_v43 }
 0x16f   :  { %153 = shalt.err (!%p150_p4)
}
 0x170   :  { %121 = dma.vmem_to_hbm [thread:$0]  %s119_s11, 16, %s302_s14, [#allocation5]  }
 0x171   :  { %162 = dma.done.wait [#allocation5], 16  }
 0x172   :  { %163 = vsyncadd [#allocation5], 4294967280 }
 0x173   :  { %133 = vsyncpa [#allocation5], 1 }

// kernel: closed_call.242
= control target key start
LH: loop header
LB: loop body
LE: loop exit
PB: predicated region body
PF: predicated region fallthrough
CT: control target
= control target key end

     0   :  { %v145_v0 = vmov 0   ;;  %v45_v5 = vlaneseq  ;;  %s278_s6 = inlined_call_operand.<no memory space> [shape: f32[1,1], index: 6, kind: input, shape index: {}]   ;;  %s279_s7 = inlined_call_operand.<no memory space> [shape: f32[1,1], index: 7, kind: input, shape index: {}]   ;;  %s280_s2 = inlined_call_operand.vmem [shape: f32[4,128], index: 2, kind: input, shape index: {}]   ;;  %s281_s3 = inlined_call_operand.vmem [shape: f32[4,128], index: 3, kind: input, shape index: {}]   ;;  %s282_s0 = inlined_call_operand.vmem [shape: f32[4,128], index: 0, kind: input, shape index: {}]   ;;  %s283_s1 = inlined_call_operand.vmem [shape: f32[4,128], index: 1, kind: input, shape index: {}]   ;;  %s284_s4 = inlined_call_operand.vmem [shape: f32[4,4,128], index: 4, kind: input, shape index: {}]   ;;  %s285_s5 = inlined_call_operand.vmem [shape: f32[4,4,128], index: 5, kind: input, shape index: {}]   ;;  %s286_s8 = inlined_call_operand.vmem [shape: f32[4,128], index: 8, kind: output, shape index: {0}]   ;;  %s287_s9 = inlined_call_operand.vmem [shape: f32[4,128], index: 9, kind: output, shape index: {1}]   ;;  %s288_s10 = inlined_call_operand.vmem [shape: f32[4,4,128], index: 10, kind: output, shape index: {2}]   ;;  %s289_s11 = inlined_call_operand.vmem [shape: f32[4,4,128], index: 11, kind: output, shape index: {3}]  }
   0x1   :  { %142 = vset.pattern.permute.xlu0 %v145_v0  ;;  %v17_v1 = vstv %s278_s6  ;;  %v19_v2 = vstv %s279_s7  ;;  %v43_v12 = vld [vmem:[%s280_s2] sm:$0xf]  ;;  %v129_v23 = vld [vmem:[%s284_s4 + $0x4] sm:$0xf] }
   0x2   :  { %18 = vst [vmem:[#allocation2] sm:$0x1] %v17_v1  ;;  %20 = vst [vmem:[#allocation3] sm:$0x1] %v19_v2  ;;  %v46_v6 = vshrl.u32 %v45_v5, 7 }
   0x3   :  { %v56_v13 = vld [vmem:[%s281_s3] sm:$0xf]  ;;  %v130_v24 = vld [vmem:[%s285_s5 + $0x4] sm:$0xf]  ;;  %v133_v25 = vld [vmem:[%s284_s4 + $0x8] sm:$0xf] }
   0x4   :  { %v47_v8 = vsub.s32 0, %v46_v6  ;;  %v42_v15 = vld [vmem:[%s282_s0] sm:$0xf]  ;;  %v134_v26 = vld [vmem:[%s285_s5 + $0x8] sm:$0xf] }
   0x5   :  { %v55_v16 = vld [vmem:[%s283_s1] sm:$0xf]  ;;  %v137_v35 = vld [vmem:[%s284_s4 + $0xc] sm:$0xf] }
   0x6   :  { %v61_v19 = vld [vmem:[%s284_s4] sm:$0xf]  ;;  %v138_v36 = vld [vmem:[%s285_s5 + $0xc] sm:$0xf] }
   0x7   :  { %v62_v20 = vld [vmem:[%s285_s5] sm:$0xf] }
   0x9   :  { %v38_v3 = vld [vmem:[#allocation2] sm:$0x1]  ;;  %v37_v7 = vld [vmem:[#allocation3] sm:$0x1] }
   0xa   :  { %v39_v4 = vadd.f32 1e-12, %v38_v3 }
   0xc   :  { %143 = vrcp.f32 %v39_v4 }
  0x19   :  { %v144_v9 = vpop.eup %143 }
  0x1a   :  { %v41_v10 = vmul.f32 %v144_v9, %v37_v7 }
  0x1c   :  { %v48_v11 = vrot.slane %v41_v10, %v47_v8 }
  0x1e   :  { %50 = vperm.xlu0 %142, %v48_v11  }
  0x99   :  { %v51_v14 = vpop.permute.xlu0 %50 }
  0x9a   :  { %v53_v17 = vmul.f32 %v51_v14, %v43_v12  ;;  %v57_v18 = vmul.f32 %v56_v13, %v51_v14 }
  0x9c   :  { %v54_v21 = vadd.f32 %v53_v17, %v42_v15  ;;  %v58_v22 = vadd.f32 %v57_v18, %v55_v16 }
  0x9e   :  { %59 = vst [vmem:[%s286_s8] sm:$0xf] %v54_v21  ;;  %60 = vst [vmem:[%s287_s9] sm:$0xf] %v58_v22  ;;  %v63_v27 = vmul.f32 %v61_v19, %v54_v21  ;;  %v64_v28 = vmul.f32 %v62_v20, %v58_v22  ;;  %v67_v29 = vmul.f32 %v61_v19, %v58_v22 }
  0x9f   :  { %v68_v30 = vmul.f32 %v62_v20, %v54_v21  ;;  %v75_v31 = vmul.f32 %v129_v23, %v54_v21  ;;  %v76_v32 = vmul.f32 %v130_v24, %v58_v22  ;;  %v80_v33 = vmul.f32 %v129_v23, %v58_v22 }
  0xa0   :  { %v81_v34 = vmul.f32 %v130_v24, %v54_v21  ;;  %v65_v37 = vsub.f32 %v63_v27, %v64_v28  ;;  %v89_v39 = vmul.f32 %v133_v25, %v54_v21  ;;  %v90_v40 = vmul.f32 %v134_v26, %v58_v22 }
  0xa1   :  { %v69_v38 = vadd.f32 %v68_v30, %v67_v29  ;;  %v77_v41 = vsub.f32 %v75_v31, %v76_v32  ;;  %v94_v43 = vmul.f32 %v133_v25, %v58_v22  ;;  %v95_v44 = vmul.f32 %v134_v26, %v54_v21 }
  0xa2   :  { %v82_v42 = vadd.f32 %v81_v34, %v80_v33  ;;  %66 = vst [vmem:[%s288_s10] sm:$0xf] %v65_v37  ;;  %v91_v45 = vsub.f32 %v89_v39, %v90_v40  ;;  %v103_v46 = vmul.f32 %v137_v35, %v54_v21  ;;  %v104_v47 = vmul.f32 %v138_v36, %v58_v22 }
  0xa3   :  { %70 = vst [vmem:[%s289_s11] sm:$0xf] %v69_v38  ;;  %v108_v48 = vmul.f32 %v137_v35, %v58_v22  ;;  %131 = vst [vmem:[%s288_s10 + $0x4] sm:$0xf] %v77_v41  ;;  %v96_v49 = vadd.f32 %v95_v44, %v94_v43  ;;  %v109_v50 = vmul.f32 %v138_v36, %v54_v21 }
  0xa4   :  { %132 = vst [vmem:[%s289_s11 + $0x4] sm:$0xf] %v82_v42  ;;  %135 = vst [vmem:[%s288_s10 + $0x8] sm:$0xf] %v91_v45  ;;  %v105_v51 = vsub.f32 %v103_v46, %v104_v47 }
  0xa5   :  { %136 = vst [vmem:[%s289_s11 + $0x8] sm:$0xf] %v96_v49  ;;  %v110_v52 = vadd.f32 %v109_v50, %v108_v48 }
  0xa6   :  { %139 = vst [vmem:[%s288_s10 + $0xc] sm:$0xf] %v105_v51 }
  0xa7   :  { %140 = vst [vmem:[%s289_s11 + $0xc] sm:$0xf] %v110_v52 }

// kernel: deq_forward.21
= control target key start
LH: loop header
LB: loop body
LE: loop exit
PB: predicated region body
PF: predicated region fallthrough
CT: control target
= control target key end

     0   :  { %s177_s0 = inlined_call_operand.vmem [shape: f32[4,128], index: 0, kind: input, shape index: {}]   ;;  %s178_s1 = inlined_call_operand.vmem [shape: f32[4,128], index: 1, kind: input, shape index: {}]   ;;  %s179_s2 = inlined_call_operand.vmem [shape: f32[4,4,128], index: 2, kind: input, shape index: {}]   ;;  %s180_s3 = inlined_call_operand.vmem [shape: f32[4,4,128], index: 3, kind: input, shape index: {}]   ;;  %s181_s4 = inlined_call_operand.vmem [shape: f32[4,4,128], index: 4, kind: output, shape index: {0}]   ;;  %s182_s5 = inlined_call_operand.vmem [shape: f32[4,4,128], index: 5, kind: output, shape index: {1}]  }
   0x1   :  { %v19_v0 = vld [vmem:[%s177_s0] sm:$0xf]  ;;  %v81_v6 = vld [vmem:[%s179_s2 + $0x4] sm:$0xf]  ;;  %v85_v12 = vld [vmem:[%s179_s2 + $0x8] sm:$0xf] }
   0x2   :  { %v20_v1 = vld [vmem:[%s178_s1] sm:$0xf]  ;;  %v82_v7 = vld [vmem:[%s180_s3 + $0x4] sm:$0xf]  ;;  %v35_v10 = vmul.f32 %v81_v6, %v19_v0  ;;  %v86_v13 = vld [vmem:[%s180_s3 + $0x8] sm:$0xf]  ;;  %v49_v17 = vmul.f32 %v85_v12, %v19_v0 }
   0x3   :  { %v21_v2 = vld [vmem:[%s179_s2] sm:$0xf]  ;;  %v36_v11 = vmul.f32 %v82_v7, %v20_v1  ;;  %v89_v14 = vld [vmem:[%s179_s2 + $0xc] sm:$0xf]  ;;  %v40_v15 = vmul.f32 %v81_v6, %v20_v1  ;;  %v41_v16 = vmul.f32 %v82_v7, %v19_v0  ;;  %v50_v18 = vmul.f32 %v86_v13, %v20_v1 }
   0x4   :  { %v22_v3 = vld [vmem:[%s180_s3] sm:$0xf]  ;;  %v23_v4 = vmul.f32 %v21_v2, %v19_v0  ;;  %v27_v5 = vmul.f32 %v21_v2, %v20_v1  ;;  %v90_v19 = vld [vmem:[%s180_s3 + $0xc] sm:$0xf]  ;;  %v54_v23 = vmul.f32 %v85_v12, %v20_v1  ;;  %v55_v26 = vmul.f32 %v86_v13, %v19_v0 }
   0x5   :  { %v24_v8 = vmul.f32 %v22_v3, %v20_v1  ;;  %v28_v9 = vmul.f32 %v22_v3, %v19_v0  ;;  %v37_v22 = vsub.f32 %v35_v10, %v36_v11  ;;  %v42_v24 = vadd.f32 %v41_v16, %v40_v15 }
   0x6   :  { %v51_v25 = vsub.f32 %v49_v17, %v50_v18  ;;  %v63_v27 = vmul.f32 %v89_v14, %v19_v0  ;;  %v64_v28 = vmul.f32 %v90_v19, %v20_v1  ;;  %v68_v29 = vmul.f32 %v89_v14, %v20_v1 }
   0x7   :  { %v25_v20 = vsub.f32 %v23_v4, %v24_v8  ;;  %v29_v21 = vadd.f32 %v28_v9, %v27_v5  ;;  %83 = vst [vmem:[%s181_s4 + $0x4] sm:$0xf] %v37_v22  ;;  %v69_v30 = vmul.f32 %v90_v19, %v19_v0  ;;  %84 = vst [vmem:[%s182_s5 + $0x4] sm:$0xf] %v42_v24 }
   0x8   :  { %87 = vst [vmem:[%s181_s4 + $0x8] sm:$0xf] %v51_v25  ;;  %v56_v31 = vadd.f32 %v55_v26, %v54_v23  ;;  %v65_v32 = vsub.f32 %v63_v27, %v64_v28 }
   0x9   :  { %26 = vst [vmem:[%s181_s4] sm:$0xf] %v25_v20  ;;  %30 = vst [vmem:[%s182_s5] sm:$0xf] %v29_v21  ;;  %v70_v33 = vadd.f32 %v69_v30, %v68_v29 }
   0xa   :  { %88 = vst [vmem:[%s182_s5 + $0x8] sm:$0xf] %v56_v31  ;;  %91 = vst [vmem:[%s181_s4 + $0xc] sm:$0xf] %v65_v32 }
   0xb   :  { %92 = vst [vmem:[%s182_s5 + $0xc] sm:$0xf] %v70_v33 }

// kernel: deq_forward.22
= control target key start
LH: loop header
LB: loop body
LE: loop exit
PB: predicated region body
PF: predicated region fallthrough
CT: control target
= control target key end

     0   :  { %vm355_vm0 = vcmask 1040384   ;;  %vm258_vm1 = vcmask 146432   ;;  %s1883_s1 = inlined_call_operand.vmem [shape: bf16[18,128], index: 1, kind: input, shape index: {}]   ;;  %s1884_s0 = inlined_call_operand.vmem [shape: bf16[512,18], index: 0, kind: input, shape index: {}]   ;;  %s1885_s2 = inlined_call_operand.vmem [shape: f32[1,128], index: 2, kind: input, shape index: {}]   ;;  %s1886_s3 = inlined_call_operand.vmem [shape: bf16[512,128], index: 3, kind: output, shape index: {}]  }
   0x1   :  { %v1530_v0 = vld [vmem:[%s1883_s1 + $0x8] ss:$0 sps:$4 sm:$0x11]   ;;  %v1531_v1 = vld [vmem:[%s1883_s1] sm:$0xff]   ;;  %v1536_v7 = vld [vmem:[%s1884_s0 + $0x10] sm:$0xff]  }
   0x2   :  { %1528 = vmatprep.subr.msk.bf16.mxu0 %vm355_vm0, %v1530_v0  ;;  %1529 = vmatprep.subr.msk.bf16.mxu1 %vm355_vm0, %v1530_v0  ;;  %v357_v2 = vsel %vm355_vm0, %v1530_v0, 0  ;;  %v1532_v3 = vld [vmem:[%s1884_s0] sm:$0xff]   ;;  %v1534_v5 = vld [vmem:[%s1884_s0 + $0x8] sm:$0xff]   ;;  %v1537_v8 = vld [vmem:[%s1884_s0 + $0x90] sm:$0xff]  }
   0x3   :  { %1457 = vmatpush3.bf16.msra.mxu0 %v357_v2  ;;  %1526 = vmatpush3.bf16.msra.mxu1 %v357_v2  ;;  %v1533_v4 = vld [vmem:[%s1884_s0 + $0x80] sm:$0xff]   ;;  %v1535_v6 = vld [vmem:[%s1884_s0 + $0x88] sm:$0xff]   ;;  %v1538_v9 = vld [vmem:[%s1884_s0 + $0x18] sm:$0xff]  }
   0x4   :  { %1458 = vmatprep.subr.bf16.mxu0 %v1531_v1  ;;  %1525 = vmatprep.subr.bf16.mxu1 %v1531_v1  ;;  %v1539_v10 = vld [vmem:[%s1884_s0 + $0x98] sm:$0xff]   ;;  %v1540_v11 = vld [vmem:[%s1884_s0 + $0x20] sm:$0xff]   ;;  %v1542_v13 = vld [vmem:[%s1884_s0 + $0x28] sm:$0xff]  }
   0x5   :  { %1460 = vmatprep.mubr.msk.bf16.mxu0 %vm258_vm1, %v1532_v3  ;;  %1492 = vmatprep.mubr.msk.bf16.mxu1 %vm258_vm1, %v1533_v4  ;;  %v1541_v12 = vld [vmem:[%s1884_s0 + $0xa0] sm:$0xff]   ;;  %v1543_v14 = vld [vmem:[%s1884_s0 + $0xa8] sm:$0xff]   ;;  %v1544_v15 = vld [vmem:[%s1884_s0 + $0x30] sm:$0xff]  }
   0x6   :  { %v1545_v16 = vld [vmem:[%s1884_s0 + $0xb0] sm:$0xff]   ;;  %v1546_v17 = vld [vmem:[%s1884_s0 + $0x38] sm:$0xff]   ;;  %v1548_v19 = vld [vmem:[%s1884_s0 + $0x40] sm:$0xff]  }
   0x7   :  { %1459 = vmatpush3.bf16.msra.mxu0 %v1531_v1  ;;  %1527 = vmatpush3.bf16.msra.mxu1 %v1531_v1  ;;  %v1547_v18 = vld [vmem:[%s1884_s0 + $0xb8] sm:$0xff]   ;;  %v1549_v20 = vld [vmem:[%s1884_s0 + $0xc0] sm:$0xff]   ;;  %v1550_v21 = vld [vmem:[%s1884_s0 + $0x48] sm:$0xff]  }
   0x8   :  { %v1551_v22 = vld [vmem:[%s1884_s0 + $0xc8] sm:$0xff]   ;;  %v1552_v23 = vld [vmem:[%s1884_s0 + $0x50] sm:$0xff]   ;;  %v1554_v25 = vld [vmem:[%s1884_s0 + $0x58] sm:$0xff]  }
   0x9   :  { %v1553_v24 = vld [vmem:[%s1884_s0 + $0xd0] sm:$0xff]   ;;  %v1555_v26 = vld [vmem:[%s1884_s0 + $0xd8] sm:$0xff]   ;;  %v1556_v27 = vld [vmem:[%s1884_s0 + $0x60] sm:$0xff]  }
   0xa   :  { %1461 = vmatmul.mubr.msk.bf16.vlgmr.msra.gmra.mxu0 %vm258_vm1, %v1534_v5  ;;  %1493 = vmatmul.mubr.msk.bf16.vlgmr.msra.gmra.mxu1 %vm258_vm1, %v1535_v6  ;;  %v1557_v28 = vld [vmem:[%s1884_s0 + $0xe0] sm:$0xff]   ;;  %v1558_v29 = vld [vmem:[%s1884_s0 + $0x68] sm:$0xff]   ;;  %v1560_v31 = vld [vmem:[%s1884_s0 + $0x70] sm:$0xff]  }
   0xb   :  { %1464 = vmatprep.mubr.msk.bf16.mxu0 %vm258_vm1, %v1536_v7  ;;  %1496 = vmatprep.mubr.msk.bf16.mxu1 %vm258_vm1, %v1537_v8  ;;  %v1559_v30 = vld [vmem:[%s1884_s0 + $0xe8] sm:$0xff]   ;;  %v1561_v32 = vld [vmem:[%s1884_s0 + $0xf0] sm:$0xff]   ;;  %v1562_v33 = vld [vmem:[%s1884_s0 + $0x78] sm:$0xff]  }
   0xc   :  { %v1563_v34 = vld [vmem:[%s1884_s0 + $0xf8] sm:$0xff]   ;;  %v1721_v35 = vld [vmem:[%s1885_s2] ss:$0 sm:$0xff] }
  0x12   :  { %1465 = vmatmul.mubr.msk.bf16.gmra.mxu0 %vm258_vm1, %v1538_v9  ;;  %1497 = vmatmul.mubr.msk.bf16.gmra.mxu1 %vm258_vm1, %v1539_v10 }
  0x13   :  { %1468 = vmatprep.mubr.msk.bf16.mxu0 %vm258_vm1, %v1540_v11  ;;  %1500 = vmatprep.mubr.msk.bf16.mxu1 %vm258_vm1, %v1541_v12 }
  0x1a   :  { %1469 = vmatmul.mubr.msk.bf16.gmra.mxu0 %vm258_vm1, %v1542_v13  ;;  %1501 = vmatmul.mubr.msk.bf16.gmra.mxu1 %vm258_vm1, %v1543_v14 }
  0x1b   :  { %1472 = vmatprep.mubr.msk.bf16.mxu0 %vm258_vm1, %v1544_v15  ;;  %1504 = vmatprep.mubr.msk.bf16.mxu1 %vm258_vm1, %v1545_v16 }
  0x22   :  { %1473 = vmatmul.mubr.msk.bf16.gmra.mxu0 %vm258_vm1, %v1546_v17  ;;  %1505 = vmatmul.mubr.msk.bf16.gmra.mxu1 %vm258_vm1, %v1547_v18 }
  0x23   :  { %1476 = vmatprep.mubr.msk.bf16.mxu0 %vm258_vm1, %v1548_v19  ;;  %1508 = vmatprep.mubr.msk.bf16.mxu1 %vm258_vm1, %v1549_v20 }
  0x2a   :  { %1477 = vmatmul.mubr.msk.bf16.gmra.mxu0 %vm258_vm1, %v1550_v21  ;;  %1509 = vmatmul.mubr.msk.bf16.gmra.mxu1 %vm258_vm1, %v1551_v22 }
  0x2b   :  { %1480 = vmatprep.mubr.msk.bf16.mxu0 %vm258_vm1, %v1552_v23  ;;  %1512 = vmatprep.mubr.msk.bf16.mxu1 %vm258_vm1, %v1553_v24 }
  0x32   :  { %1481 = vmatmul.mubr.msk.bf16.gmra.mxu0 %vm258_vm1, %v1554_v25  ;;  %1513 = vmatmul.mubr.msk.bf16.gmra.mxu1 %vm258_vm1, %v1555_v26 }
  0x33   :  { %1484 = vmatprep.mubr.msk.bf16.mxu0 %vm258_vm1, %v1556_v27  ;;  %1516 = vmatprep.mubr.msk.bf16.mxu1 %vm258_vm1, %v1557_v28 }
  0x3a   :  { %1485 = vmatmul.mubr.msk.bf16.gmra.mxu0 %vm258_vm1, %v1558_v29  ;;  %1517 = vmatmul.mubr.msk.bf16.gmra.mxu1 %vm258_vm1, %v1559_v30 }
  0x3b   :  { %1488 = vmatprep.mubr.msk.bf16.mxu0 %vm258_vm1, %v1560_v31  ;;  %1520 = vmatprep.mubr.msk.bf16.mxu1 %vm258_vm1, %v1561_v32 }
  0x42   :  { %1489 = vmatmul.mubr.msk.bf16.gmra.mxu0 %vm258_vm1, %v1562_v33  ;;  %1521 = vmatmul.mubr.msk.bf16.gmra.mxu1 %vm258_vm1, %v1563_v34 }
  0xca   :  { %v1462_v36 = vpop.f32.mrf.mxu0  ;;  %v1494_v37 = vpop.f32.mrf.mxu1 }
  0xcb   :  { %v402_v38 = vadd.f32 %v1462_v36, %v1721_v35  ;;  %v530_v39 = vadd.f32 %v1494_v37, %v1721_v35 }
  0xcc   :  { %v393_v40 = vpop.f32.mrf.mxu0  ;;  %v521_v41 = vpop.f32.mrf.mxu1 }
  0xcd   :  { %v394_v42 = vadd.f32 %v1721_v35, %v393_v40  ;;  %v522_v43 = vadd.f32 %v1721_v35, %v521_v41  ;;  %v650_v48 = vmax.f32 %v402_v38, 0.0  ;;  %v682_v49 = vmax.f32 %v530_v39, 0.0 }
  0xce   :  { %v1463_v44 = vpop.f32.mrf.mxu0  ;;  %v1495_v45 = vpop.f32.mrf.mxu1 }
  0xcf   :  { %v405_v46 = vadd.f32 %v1463_v44, %v1721_v35  ;;  %v533_v47 = vadd.f32 %v1495_v45, %v1721_v35  ;;  %v648_v56 = vmax.f32 %v394_v42, 0.0  ;;  %v680_v57 = vmax.f32 %v522_v43, 0.0 }
  0xd0   :  { %v396_v50 = vpop.f32.mrf.mxu0  ;;  %v524_v51 = vpop.f32.mrf.mxu1 }
  0xd1   :  { %v651_v52 = vmax.f32 %v405_v46, 0.0  ;;  %v683_v53 = vmax.f32 %v533_v47, 0.0  ;;  %v397_v54 = vadd.f32 %v1721_v35, %v396_v50  ;;  %v525_v55 = vadd.f32 %v1721_v35, %v524_v51 }
  0xd2   :  { %v1466_v58 = vpop.f32.mrf.mxu0  ;;  %v1498_v59 = vpop.f32.mrf.mxu1 }
  0xd3   :  { %v1239_v60 = vpack.c.bf16 %v651_v52, %v650_v48  ;;  %v1319_v61 = vpack.c.bf16 %v683_v53, %v682_v49  ;;  %v649_v62 = vmax.f32 %v397_v54, 0.0  ;;  %v681_v63 = vmax.f32 %v525_v55, 0.0 }
  0xd4   :  { %v418_v0 = vadd.f32 %v1466_v58, %v1721_v35  ;;  %v546_v1 = vadd.f32 %v1498_v59, %v1721_v35  ;;  %v409_v2 = vpop.f32.mrf.mxu0  ;;  %v537_v3 = vpop.f32.mrf.mxu1 }
  0xd5   :  { %1391 = vst [vmem:[%s1886_s3 + $0x8] sm:$0xff] %v1239_v60   ;;  %1407 = vst [vmem:[%s1886_s3 + $0x88] sm:$0xff] %v1319_v61   ;;  %v1234_v4 = vpack.c.bf16 %v649_v62, %v648_v56  ;;  %v1314_v5 = vpack.c.bf16 %v681_v63, %v680_v57  ;;  %v410_v6 = vadd.f32 %v1721_v35, %v409_v2 }
  0xd6   :  { %v538_v7 = vadd.f32 %v1721_v35, %v537_v3  ;;  %v1467_v8 = vpop.f32.mrf.mxu0  ;;  %v1499_v9 = vpop.f32.mrf.mxu1  ;;  %v654_v12 = vmax.f32 %v418_v0, 0.0  ;;  %v686_v13 = vmax.f32 %v546_v1, 0.0 }
  0xd7   :  { %1235 = vst [vmem:[%s1886_s3] sm:$0xff] %v1234_v4   ;;  %1406 = vst [vmem:[%s1886_s3 + $0x80] sm:$0xff] %v1314_v5   ;;  %v421_v10 = vadd.f32 %v1467_v8, %v1721_v35  ;;  %v549_v11 = vadd.f32 %v1499_v9, %v1721_v35  ;;  %v652_v20 = vmax.f32 %v410_v6, 0.0 }
  0xd8   :  { %v412_v14 = vpop.f32.mrf.mxu0  ;;  %v540_v15 = vpop.f32.mrf.mxu1  ;;  %v684_v21 = vmax.f32 %v538_v7, 0.0 }
  0xd9   :  { %v655_v16 = vmax.f32 %v421_v10, 0.0  ;;  %v687_v17 = vmax.f32 %v549_v11, 0.0  ;;  %v413_v18 = vadd.f32 %v1721_v35, %v412_v14  ;;  %v541_v19 = vadd.f32 %v1721_v35, %v540_v15 }
  0xda   :  { %v1470_v22 = vpop.f32.mrf.mxu0  ;;  %v1502_v23 = vpop.f32.mrf.mxu1 }
  0xdb   :  { %v1249_v24 = vpack.c.bf16 %v655_v16, %v654_v12  ;;  %v1329_v25 = vpack.c.bf16 %v687_v17, %v686_v13  ;;  %v653_v26 = vmax.f32 %v413_v18, 0.0  ;;  %v685_v27 = vmax.f32 %v541_v19, 0.0 }
  0xdc   :  { %v434_v28 = vadd.f32 %v1470_v22, %v1721_v35  ;;  %v562_v29 = vadd.f32 %v1502_v23, %v1721_v35  ;;  %v425_v30 = vpop.f32.mrf.mxu0  ;;  %v553_v31 = vpop.f32.mrf.mxu1 }
  0xdd   :  { %1393 = vst [vmem:[%s1886_s3 + $0x18] sm:$0xff] %v1249_v24   ;;  %1409 = vst [vmem:[%s1886_s3 + $0x98] sm:$0xff] %v1329_v25   ;;  %v1244_v32 = vpack.c.bf16 %v653_v26, %v652_v20  ;;  %v1324_v33 = vpack.c.bf16 %v685_v27, %v684_v21  ;;  %v426_v34 = vadd.f32 %v1721_v35, %v425_v30 }
  0xde   :  { %v554_v36 = vadd.f32 %v1721_v35, %v553_v31  ;;  %v1471_v37 = vpop.f32.mrf.mxu0  ;;  %v1503_v38 = vpop.f32.mrf.mxu1  ;;  %v658_v41 = vmax.f32 %v434_v28, 0.0  ;;  %v690_v42 = vmax.f32 %v562_v29, 0.0 }
  0xdf   :  { %1392 = vst [vmem:[%s1886_s3 + $0x10] sm:$0xff] %v1244_v32   ;;  %1408 = vst [vmem:[%s1886_s3 + $0x90] sm:$0xff] %v1324_v33   ;;  %v437_v39 = vadd.f32 %v1471_v37, %v1721_v35  ;;  %v565_v40 = vadd.f32 %v1503_v38, %v1721_v35  ;;  %v656_v49 = vmax.f32 %v426_v34, 0.0 }
  0xe0   :  { %v428_v43 = vpop.f32.mrf.mxu0  ;;  %v556_v44 = vpop.f32.mrf.mxu1  ;;  %v688_v50 = vmax.f32 %v554_v36, 0.0 }
  0xe1   :  { %v659_v45 = vmax.f32 %v437_v39, 0.0  ;;  %v691_v46 = vmax.f32 %v565_v40, 0.0  ;;  %v429_v47 = vadd.f32 %v1721_v35, %v428_v43  ;;  %v557_v48 = vadd.f32 %v1721_v35, %v556_v44 }
  0xe2   :  { %v1474_v51 = vpop.f32.mrf.mxu0  ;;  %v1506_v52 = vpop.f32.mrf.mxu1 }
  0xe3   :  { %v1259_v53 = vpack.c.bf16 %v659_v45, %v658_v41  ;;  %v1339_v54 = vpack.c.bf16 %v691_v46, %v690_v42  ;;  %v657_v55 = vmax.f32 %v429_v47, 0.0  ;;  %v689_v56 = vmax.f32 %v557_v48, 0.0 }
  0xe4   :  { %v450_v57 = vadd.f32 %v1474_v51, %v1721_v35  ;;  %v578_v58 = vadd.f32 %v1506_v52, %v1721_v35  ;;  %v441_v59 = vpop.f32.mrf.mxu0  ;;  %v569_v60 = vpop.f32.mrf.mxu1 }
  0xe5   :  { %1395 = vst [vmem:[%s1886_s3 + $0x28] sm:$0xff] %v1259_v53   ;;  %1411 = vst [vmem:[%s1886_s3 + $0xa8] sm:$0xff] %v1339_v54   ;;  %v1254_v61 = vpack.c.bf16 %v657_v55, %v656_v49  ;;  %v1334_v62 = vpack.c.bf16 %v689_v56, %v688_v50  ;;  %v442_v63 = vadd.f32 %v1721_v35, %v441_v59 }
  0xe6   :  { %v570_v0 = vadd.f32 %v1721_v35, %v569_v60  ;;  %v1475_v1 = vpop.f32.mrf.mxu0  ;;  %v1507_v2 = vpop.f32.mrf.mxu1  ;;  %v662_v5 = vmax.f32 %v450_v57, 0.0  ;;  %v694_v6 = vmax.f32 %v578_v58, 0.0 }
  0xe7   :  { %1394 = vst [vmem:[%s1886_s3 + $0x20] sm:$0xff] %v1254_v61   ;;  %1410 = vst [vmem:[%s1886_s3 + $0xa0] sm:$0xff] %v1334_v62   ;;  %v453_v3 = vadd.f32 %v1475_v1, %v1721_v35  ;;  %v581_v4 = vadd.f32 %v1507_v2, %v1721_v35  ;;  %v660_v13 = vmax.f32 %v442_v63, 0.0 }
  0xe8   :  { %v444_v7 = vpop.f32.mrf.mxu0  ;;  %v572_v8 = vpop.f32.mrf.mxu1  ;;  %v692_v14 = vmax.f32 %v570_v0, 0.0 }
  0xe9   :  { %v663_v9 = vmax.f32 %v453_v3, 0.0  ;;  %v695_v10 = vmax.f32 %v581_v4, 0.0  ;;  %v445_v11 = vadd.f32 %v1721_v35, %v444_v7  ;;  %v573_v12 = vadd.f32 %v1721_v35, %v572_v8 }
  0xea   :  { %v1478_v15 = vpop.f32.mrf.mxu0  ;;  %v1510_v16 = vpop.f32.mrf.mxu1 }
  0xeb   :  { %v1269_v17 = vpack.c.bf16 %v663_v9, %v662_v5  ;;  %v1349_v18 = vpack.c.bf16 %v695_v10, %v694_v6  ;;  %v661_v19 = vmax.f32 %v445_v11, 0.0  ;;  %v693_v20 = vmax.f32 %v573_v12, 0.0 }
  0xec   :  { %v466_v21 = vadd.f32 %v1478_v15, %v1721_v35  ;;  %v594_v22 = vadd.f32 %v1510_v16, %v1721_v35  ;;  %v457_v23 = vpop.f32.mrf.mxu0  ;;  %v585_v24 = vpop.f32.mrf.mxu1 }
  0xed   :  { %1397 = vst [vmem:[%s1886_s3 + $0x38] sm:$0xff] %v1269_v17   ;;  %1413 = vst [vmem:[%s1886_s3 + $0xb8] sm:$0xff] %v1349_v18   ;;  %v1264_v25 = vpack.c.bf16 %v661_v19, %v660_v13  ;;  %v1344_v26 = vpack.c.bf16 %v693_v20, %v692_v14  ;;  %v458_v27 = vadd.f32 %v1721_v35, %v457_v23 }
  0xee   :  { %v586_v28 = vadd.f32 %v1721_v35, %v585_v24  ;;  %v1479_v29 = vpop.f32.mrf.mxu0  ;;  %v1511_v30 = vpop.f32.mrf.mxu1  ;;  %v666_v33 = vmax.f32 %v466_v21, 0.0  ;;  %v698_v34 = vmax.f32 %v594_v22, 0.0 }
  0xef   :  { %1396 = vst [vmem:[%s1886_s3 + $0x30] sm:$0xff] %v1264_v25   ;;  %1412 = vst [vmem:[%s1886_s3 + $0xb0] sm:$0xff] %v1344_v26   ;;  %v469_v31 = vadd.f32 %v1479_v29, %v1721_v35  ;;  %v597_v32 = vadd.f32 %v1511_v30, %v1721_v35  ;;  %v664_v42 = vmax.f32 %v458_v27, 0.0 }
  0xf0   :  { %v460_v36 = vpop.f32.mrf.mxu0  ;;  %v588_v37 = vpop.f32.mrf.mxu1  ;;  %v696_v43 = vmax.f32 %v586_v28, 0.0 }
  0xf1   :  { %v667_v38 = vmax.f32 %v469_v31, 0.0  ;;  %v699_v39 = vmax.f32 %v597_v32, 0.0  ;;  %v461_v40 = vadd.f32 %v1721_v35, %v460_v36  ;;  %v589_v41 = vadd.f32 %v1721_v35, %v588_v37 }
  0xf2   :  { %v1482_v44 = vpop.f32.mrf.mxu0  ;;  %v1514_v45 = vpop.f32.mrf.mxu1 }
  0xf3   :  { %v1279_v46 = vpack.c.bf16 %v667_v38, %v666_v33  ;;  %v1359_v47 = vpack.c.bf16 %v699_v39, %v698_v34  ;;  %v665_v48 = vmax.f32 %v461_v40, 0.0  ;;  %v697_v49 = vmax.f32 %v589_v41, 0.0 }
  0xf4   :  { %v482_v50 = vadd.f32 %v1482_v44, %v1721_v35  ;;  %v610_v51 = vadd.f32 %v1514_v45, %v1721_v35  ;;  %v473_v52 = vpop.f32.mrf.mxu0  ;;  %v601_v53 = vpop.f32.mrf.mxu1 }
  0xf5   :  { %1399 = vst [vmem:[%s1886_s3 + $0x48] sm:$0xff] %v1279_v46   ;;  %1415 = vst [vmem:[%s1886_s3 + $0xc8] sm:$0xff] %v1359_v47   ;;  %v1274_v54 = vpack.c.bf16 %v665_v48, %v664_v42  ;;  %v1354_v55 = vpack.c.bf16 %v697_v49, %v696_v43  ;;  %v474_v56 = vadd.f32 %v1721_v35, %v473_v52 }
  0xf6   :  { %v602_v57 = vadd.f32 %v1721_v35, %v601_v53  ;;  %v1483_v58 = vpop.f32.mrf.mxu0  ;;  %v1515_v59 = vpop.f32.mrf.mxu1  ;;  %v670_v62 = vmax.f32 %v482_v50, 0.0  ;;  %v702_v63 = vmax.f32 %v610_v51, 0.0 }
  0xf7   :  { %1398 = vst [vmem:[%s1886_s3 + $0x40] sm:$0xff] %v1274_v54   ;;  %1414 = vst [vmem:[%s1886_s3 + $0xc0] sm:$0xff] %v1354_v55   ;;  %v485_v60 = vadd.f32 %v1483_v58, %v1721_v35  ;;  %v613_v61 = vadd.f32 %v1515_v59, %v1721_v35  ;;  %v668_v6 = vmax.f32 %v474_v56, 0.0 }
  0xf8   :  { %v476_v0 = vpop.f32.mrf.mxu0  ;;  %v604_v1 = vpop.f32.mrf.mxu1  ;;  %v700_v7 = vmax.f32 %v602_v57, 0.0 }
  0xf9   :  { %v671_v2 = vmax.f32 %v485_v60, 0.0  ;;  %v703_v3 = vmax.f32 %v613_v61, 0.0  ;;  %v477_v4 = vadd.f32 %v1721_v35, %v476_v0  ;;  %v605_v5 = vadd.f32 %v1721_v35, %v604_v1 }
  0xfa   :  { %v1486_v8 = vpop.f32.mrf.mxu0  ;;  %v1518_v9 = vpop.f32.mrf.mxu1 }
  0xfb   :  { %v1289_v10 = vpack.c.bf16 %v671_v2, %v670_v62  ;;  %v1369_v11 = vpack.c.bf16 %v703_v3, %v702_v63  ;;  %v669_v12 = vmax.f32 %v477_v4, 0.0  ;;  %v701_v13 = vmax.f32 %v605_v5, 0.0 }
  0xfc   :  { %v498_v14 = vadd.f32 %v1486_v8, %v1721_v35  ;;  %v626_v15 = vadd.f32 %v1518_v9, %v1721_v35  ;;  %v489_v16 = vpop.f32.mrf.mxu0  ;;  %v617_v17 = vpop.f32.mrf.mxu1 }
  0xfd   :  { %1401 = vst [vmem:[%s1886_s3 + $0x58] sm:$0xff] %v1289_v10   ;;  %1417 = vst [vmem:[%s1886_s3 + $0xd8] sm:$0xff] %v1369_v11   ;;  %v1284_v18 = vpack.c.bf16 %v669_v12, %v668_v6  ;;  %v1364_v19 = vpack.c.bf16 %v701_v13, %v700_v7  ;;  %v490_v20 = vadd.f32 %v1721_v35, %v489_v16 }
  0xfe   :  { %v618_v21 = vadd.f32 %v1721_v35, %v617_v17  ;;  %v1487_v22 = vpop.f32.mrf.mxu0  ;;  %v1519_v23 = vpop.f32.mrf.mxu1  ;;  %v674_v26 = vmax.f32 %v498_v14, 0.0  ;;  %v706_v27 = vmax.f32 %v626_v15, 0.0 }
  0xff   :  { %1400 = vst [vmem:[%s1886_s3 + $0x50] sm:$0xff] %v1284_v18   ;;  %1416 = vst [vmem:[%s1886_s3 + $0xd0] sm:$0xff] %v1364_v19   ;;  %v501_v24 = vadd.f32 %v1487_v22, %v1721_v35  ;;  %v629_v25 = vadd.f32 %v1519_v23, %v1721_v35  ;;  %v672_v34 = vmax.f32 %v490_v20, 0.0 }
 0x100   :  { %v492_v28 = vpop.f32.mrf.mxu0  ;;  %v620_v29 = vpop.f32.mrf.mxu1  ;;  %v704_v36 = vmax.f32 %v618_v21, 0.0 }
 0x101   :  { %v675_v30 = vmax.f32 %v501_v24, 0.0  ;;  %v707_v31 = vmax.f32 %v629_v25, 0.0  ;;  %v493_v32 = vadd.f32 %v1721_v35, %v492_v28  ;;  %v621_v33 = vadd.f32 %v1721_v35, %v620_v29 }
 0x102   :  { %v1490_v37 = vpop.f32.mrf.mxu0  ;;  %v1522_v38 = vpop.f32.mrf.mxu1 }
 0x103   :  { %v1299_v39 = vpack.c.bf16 %v675_v30, %v674_v26  ;;  %v1379_v40 = vpack.c.bf16 %v707_v31, %v706_v27  ;;  %v673_v41 = vmax.f32 %v493_v32, 0.0  ;;  %v705_v42 = vmax.f32 %v621_v33, 0.0 }
 0x104   :  { %v514_v43 = vadd.f32 %v1490_v37, %v1721_v35  ;;  %v642_v44 = vadd.f32 %v1522_v38, %v1721_v35  ;;  %v505_v45 = vpop.f32.mrf.mxu0  ;;  %v633_v46 = vpop.f32.mrf.mxu1 }
 0x105   :  { %1403 = vst [vmem:[%s1886_s3 + $0x68] sm:$0xff] %v1299_v39   ;;  %1419 = vst [vmem:[%s1886_s3 + $0xe8] sm:$0xff] %v1379_v40   ;;  %v1294_v47 = vpack.c.bf16 %v673_v41, %v672_v34  ;;  %v1374_v48 = vpack.c.bf16 %v705_v42, %v704_v36  ;;  %v506_v49 = vadd.f32 %v1721_v35, %v505_v45 }
 0x106   :  { %v634_v50 = vadd.f32 %v1721_v35, %v633_v46  ;;  %v1491_v51 = vpop.f32.mrf.mxu0  ;;  %v1523_v52 = vpop.f32.mrf.mxu1  ;;  %v678_v55 = vmax.f32 %v514_v43, 0.0  ;;  %v710_v56 = vmax.f32 %v642_v44, 0.0 }
 0x107   :  { %1402 = vst [vmem:[%s1886_s3 + $0x60] sm:$0xff] %v1294_v47   ;;  %1418 = vst [vmem:[%s1886_s3 + $0xe0] sm:$0xff] %v1374_v48   ;;  %v517_v53 = vadd.f32 %v1491_v51, %v1721_v35  ;;  %v645_v54 = vadd.f32 %v1523_v52, %v1721_v35  ;;  %v676_v63 = vmax.f32 %v506_v49, 0.0 }
 0x108   :  { %v508_v57 = vpop.f32.mrf.mxu0  ;;  %v636_v58 = vpop.f32.mrf.mxu1  ;;  %v708_v0 = vmax.f32 %v634_v50, 0.0 }
 0x109   :  { %v679_v59 = vmax.f32 %v517_v53, 0.0  ;;  %v711_v60 = vmax.f32 %v645_v54, 0.0  ;;  %v509_v61 = vadd.f32 %v1721_v35, %v508_v57  ;;  %v637_v62 = vadd.f32 %v1721_v35, %v636_v58 }
 0x10b   :  { %v1309_v1 = vpack.c.bf16 %v679_v59, %v678_v55  ;;  %v1389_v2 = vpack.c.bf16 %v711_v60, %v710_v56  ;;  %v677_v3 = vmax.f32 %v509_v61, 0.0  ;;  %v709_v4 = vmax.f32 %v637_v62, 0.0 }
 0x10d   :  { %1405 = vst [vmem:[%s1886_s3 + $0x78] sm:$0xff] %v1309_v1   ;;  %1421 = vst [vmem:[%s1886_s3 + $0xf8] sm:$0xff] %v1389_v2   ;;  %v1304_v5 = vpack.c.bf16 %v677_v3, %v676_v63  ;;  %v1384_v6 = vpack.c.bf16 %v709_v4, %v708_v0 }
 0x10f   :  { %1404 = vst [vmem:[%s1886_s3 + $0x70] sm:$0xff] %v1304_v5   ;;  %1420 = vst [vmem:[%s1886_s3 + $0xf0] sm:$0xff] %v1384_v6  }

// kernel: deq_forward.23
= control target key start
LH: loop header
LB: loop body
LE: loop exit
PB: predicated region body
PF: predicated region fallthrough
CT: control target
= control target key end

     0   :  { %v1262_v0 = vmov 0   ;;  %vm449_vm0 = vcmask 130048   ;;  %vm963_vm1 = vcmask 15360   ;;  %s2056_s1 = inlined_call_operand.vmem [shape: bf16[144,128], index: 1, kind: input, shape index: {}]   ;;  %s2057_s0 = inlined_call_operand.vmem [shape: bf16[512,144], index: 0, kind: input, shape index: {}]   ;;  %s2058_s2 = inlined_call_operand.vmem [shape: f32[1,128], index: 2, kind: input, shape index: {}]   ;;  %s2059_s3 = inlined_call_operand.vmem [shape: f32[512,2], index: 3, kind: input, shape index: {}]   ;;  %s2060_s4 = inlined_call_operand.vmem [shape: f32[512,2], index: 4, kind: output, shape index: {}]  }
   0x1   :  { %546 = vmatprep.subr.bf16.mxu0 %v1262_v0  ;;  %1138 = vmatprep.subr.bf16.mxu1 %v1262_v0  ;;  %v1157_v1 = vld [vmem:[%s2056_s1 + $0x38] sm:$0xff]   ;;  %v1158_v2 = vld [vmem:[%s2056_s1 + $0x30] sm:$0xff]   ;;  %v1159_v3 = vld [vmem:[%s2056_s1 + $0x28] sm:$0xff]  }
   0x2   :  { %547 = vmatpush1.bf16.msra.mxu0 %v1157_v1  ;;  %1147 = vmatpush1.bf16.msra.mxu1 %v1157_v1  ;;  %v1160_v4 = vld [vmem:[%s2056_s1 + $0x20] sm:$0xff]   ;;  %v1161_v7 = vld [vmem:[%s2056_s1 + $0x18] sm:$0xff]   ;;  %v1162_v8 = vld [vmem:[%s2056_s1 + $0x10] sm:$0xff]  }
   0x3   :  { %548 = vmatprep.subr.bf16.mxu0 %v1262_v0  ;;  %1139 = vmatprep.subr.bf16.mxu1 %v1262_v0  ;;  %v1168_v5 = vld [vmem:[%s2057_s0 + $0x4] ss:$8 sps:$4 sm:$0xff]   ;;  %v1166_v12 = vld [vmem:[%s2057_s0] ss:$8 sps:$4 sm:$0xff]   ;;  %v1172_v14 = vld [vmem:[%s2057_s0 + $0x14] ss:$8 sps:$4 sm:$0xff]  }
   0x4   :  { %v1171_v6 = vld [vmem:[%s2057_s0 + $0x104] ss:$8 sps:$4 sm:$0xff]   ;;  %1106 = vmatprep.mubr.msk.bf16.mxu0 %vm449_vm0, %v1168_v5  ;;  %v1169_v13 = vld [vmem:[%s2057_s0 + $0x100] ss:$8 sps:$4 sm:$0xff]   ;;  %v1174_v15 = vld [vmem:[%s2057_s0 + $0x114] ss:$8 sps:$4 sm:$0xff]  }
   0x5   :  { %1122 = vmatprep.mubr.msk.bf16.mxu1 %vm449_vm0, %v1171_v6  ;;  %v1163_v9 = vld [vmem:[%s2056_s1 + $0x8] sm:$0xff]   ;;  %v1164_v10 = vld [vmem:[%s2056_s1] sm:$0xff]   ;;  %v1176_v16 = vld [vmem:[%s2057_s0 + $0x10] ss:$8 sps:$4 sm:$0xff]  }
   0x6   :  { %549 = vmatpush1.bf16.msra.mxu0 %v1158_v2  ;;  %1148 = vmatpush1.bf16.msra.mxu1 %v1158_v2  ;;  %v1165_v11 = vld [vmem:[%s2056_s1 + $0x40] sm:$0xff]   ;;  %v1177_v17 = vld [vmem:[%s2057_s0 + $0x110] ss:$8 sps:$4 sm:$0xff]   ;;  %v1184_v22 = vld [vmem:[%s2057_s0 + $0x34] ss:$8 sps:$4 sm:$0xff]  }
   0x7   :  { %550 = vmatprep.subr.bf16.mxu0 %v1262_v0  ;;  %1140 = vmatprep.subr.bf16.mxu1 %v1262_v0  ;;  %v1178_v18 = vld [vmem:[%s2057_s0 + $0x24] ss:$8 sps:$4 sm:$0xff]   ;;  %v1182_v20 = vld [vmem:[%s2057_s0 + $0x20] ss:$8 sps:$4 sm:$0xff]   ;;  %v1186_v23 = vld [vmem:[%s2057_s0 + $0x134] ss:$8 sps:$4 sm:$0xff]  }
   0x8   :  { %v1180_v19 = vld [vmem:[%s2057_s0 + $0x124] ss:$8 sps:$4 sm:$0xff]   ;;  %v1183_v21 = vld [vmem:[%s2057_s0 + $0x120] ss:$8 sps:$4 sm:$0xff]   ;;  %v1188_v24 = vld [vmem:[%s2057_s0 + $0x30] ss:$8 sps:$4 sm:$0xff]  }
   0x9   :  { %v1189_v25 = vld [vmem:[%s2057_s0 + $0x130] ss:$8 sps:$4 sm:$0xff]   ;;  %v1190_v26 = vld [vmem:[%s2057_s0 + $0x44] ss:$8 sps:$4 sm:$0xff]   ;;  %v1194_v28 = vld [vmem:[%s2057_s0 + $0x40] ss:$8 sps:$4 sm:$0xff]  }
   0xa   :  { %551 = vmatpush1.bf16.msra.mxu0 %v1159_v3  ;;  %1149 = vmatpush1.bf16.msra.mxu1 %v1159_v3  ;;  %v1192_v27 = vld [vmem:[%s2057_s0 + $0x144] ss:$8 sps:$4 sm:$0xff]   ;;  %v1195_v29 = vld [vmem:[%s2057_s0 + $0x140] ss:$8 sps:$4 sm:$0xff]   ;;  %v1196_v30 = vld [vmem:[%s2057_s0 + $0x54] ss:$8 sps:$4 sm:$0xff]  }
   0xb   :  { %552 = vmatprep.subr.bf16.mxu0 %v1262_v0  ;;  %1141 = vmatprep.subr.bf16.mxu1 %v1262_v0  ;;  %v1198_v31 = vld [vmem:[%s2057_s0 + $0x154] ss:$8 sps:$4 sm:$0xff]   ;;  %v1200_v32 = vld [vmem:[%s2057_s0 + $0x50] ss:$8 sps:$4 sm:$0xff]   ;;  %v1202_v34 = vld [vmem:[%s2057_s0 + $0x64] ss:$8 sps:$4 sm:$0xff]  }
   0xc   :  { %v1201_v33 = vld [vmem:[%s2057_s0 + $0x150] ss:$8 sps:$4 sm:$0xff]   ;;  %v1204_v35 = vld [vmem:[%s2057_s0 + $0x164] ss:$8 sps:$4 sm:$0xff]   ;;  %v1206_v36 = vld [vmem:[%s2057_s0 + $0x60] ss:$8 sps:$4 sm:$0xff]  }
   0xd   :  { %v1207_v37 = vld [vmem:[%s2057_s0 + $0x160] ss:$8 sps:$4 sm:$0xff]   ;;  %v1208_v38 = vld [vmem:[%s2057_s0 + $0x74] ss:$8 sps:$4 sm:$0xff]   ;;  %v1212_v40 = vld [vmem:[%s2057_s0 + $0x70] ss:$8 sps:$4 sm:$0xff]  }
   0xe   :  { %553 = vmatpush1.bf16.msra.mxu0 %v1160_v4  ;;  %1150 = vmatpush1.bf16.msra.mxu1 %v1160_v4  ;;  %v1210_v39 = vld [vmem:[%s2057_s0 + $0x174] ss:$8 sps:$4 sm:$0xff]   ;;  %v1213_v41 = vld [vmem:[%s2057_s0 + $0x170] ss:$8 sps:$4 sm:$0xff]   ;;  %v1214_v42 = vld [vmem:[%s2057_s0 + $0x84] ss:$8 sps:$4 sm:$0xff]  }
   0xf   :  { %554 = vmatprep.subr.bf16.mxu0 %v1262_v0  ;;  %1142 = vmatprep.subr.bf16.mxu1 %v1262_v0  ;;  %v1216_v43 = vld [vmem:[%s2057_s0 + $0x184] ss:$8 sps:$4 sm:$0xff]   ;;  %v1218_v44 = vld [vmem:[%s2057_s0 + $0x80] ss:$8 sps:$4 sm:$0xff]   ;;  %v1220_v46 = vld [vmem:[%s2057_s0 + $0x94] ss:$8 sps:$4 sm:$0xff]  }
  0x10   :  { %v1219_v45 = vld [vmem:[%s2057_s0 + $0x180] ss:$8 sps:$4 sm:$0xff]   ;;  %v1222_v47 = vld [vmem:[%s2057_s0 + $0x194] ss:$8 sps:$4 sm:$0xff]   ;;  %v1224_v48 = vld [vmem:[%s2057_s0 + $0x90] ss:$8 sps:$4 sm:$0xff]  }
  0x11   :  { %v1225_v49 = vld [vmem:[%s2057_s0 + $0x190] ss:$8 sps:$4 sm:$0xff]   ;;  %v1226_v50 = vld [vmem:[%s2057_s0 + $0xa4] ss:$8 sps:$4 sm:$0xff]   ;;  %v1230_v52 = vld [vmem:[%s2057_s0 + $0xa0] ss:$8 sps:$4 sm:$0xff]  }
  0x12   :  { %555 = vmatpush1.bf16.msra.mxu0 %v1161_v7  ;;  %1151 = vmatpush1.bf16.msra.mxu1 %v1161_v7  ;;  %v1228_v51 = vld [vmem:[%s2057_s0 + $0x1a4] ss:$8 sps:$4 sm:$0xff]   ;;  %v1231_v53 = vld [vmem:[%s2057_s0 + $0x1a0] ss:$8 sps:$4 sm:$0xff]   ;;  %v1232_v54 = vld [vmem:[%s2057_s0 + $0xb4] ss:$8 sps:$4 sm:$0xff]  }
  0x13   :  { %556 = vmatprep.subr.bf16.mxu0 %v1262_v0  ;;  %1143 = vmatprep.subr.bf16.mxu1 %v1262_v0  ;;  %v1234_v55 = vld [vmem:[%s2057_s0 + $0x1b4] ss:$8 sps:$4 sm:$0xff]   ;;  %v1236_v56 = vld [vmem:[%s2057_s0 + $0xb0] ss:$8 sps:$4 sm:$0xff]   ;;  %v1238_v58 = vld [vmem:[%s2057_s0 + $0xc4] ss:$8 sps:$4 sm:$0xff]  }
  0x14   :  { %v1237_v57 = vld [vmem:[%s2057_s0 + $0x1b0] ss:$8 sps:$4 sm:$0xff]   ;;  %v1240_v59 = vld [vmem:[%s2057_s0 + $0x1c4] ss:$8 sps:$4 sm:$0xff]   ;;  %v1242_v60 = vld [vmem:[%s2057_s0 + $0xc0] ss:$8 sps:$4 sm:$0xff]  }
  0x15   :  { %v1243_v61 = vld [vmem:[%s2057_s0 + $0x1c0] ss:$8 sps:$4 sm:$0xff]   ;;  %v1244_v62 = vld [vmem:[%s2057_s0 + $0xd4] ss:$8 sps:$4 sm:$0xff]   ;;  %v1249_v1 = vld [vmem:[%s2057_s0 + $0x1d0] ss:$8 sps:$4 sm:$0xff]  }
  0x16   :  { %557 = vmatpush1.bf16.msra.mxu0 %v1162_v8  ;;  %1152 = vmatpush1.bf16.msra.mxu1 %v1162_v8  ;;  %v1246_v63 = vld [vmem:[%s2057_s0 + $0x1d4] ss:$8 sps:$4 sm:$0xff]   ;;  %v1250_v2 = vld [vmem:[%s2057_s0 + $0xe4] ss:$8 sps:$4 sm:$0xff]   ;;  %v1254_v4 = vld [vmem:[%s2057_s0 + $0xe0] ss:$8 sps:$4 sm:$0xff]  }
  0x17   :  { %558 = vmatprep.subr.bf16.mxu0 %v1262_v0  ;;  %1144 = vmatprep.subr.bf16.mxu1 %v1262_v0  ;;  %v1252_v3 = vld [vmem:[%s2057_s0 + $0x1e4] ss:$8 sps:$4 sm:$0xff]   ;;  %v1255_v5 = vld [vmem:[%s2057_s0 + $0x1e0] ss:$8 sps:$4 sm:$0xff]   ;;  %v1256_v6 = vld [vmem:[%s2057_s0 + $0xf4] ss:$8 sps:$4 sm:$0xff]  }
  0x18   :  { %v1258_v7 = vld [vmem:[%s2057_s0 + $0x1f4] ss:$8 sps:$4 sm:$0xff]   ;;  %v1260_v8 = vld [vmem:[%s2057_s0 + $0xf0] ss:$8 sps:$4 sm:$0xff]  }
  0x1a   :  { %559 = vmatpush1.bf16.msra.mxu0 %v1163_v9  ;;  %1153 = vmatpush1.bf16.msra.mxu1 %v1163_v9  ;;  %v1261_v9 = vld [vmem:[%s2057_s0 + $0x1f0] ss:$8 sps:$4 sm:$0xff]  }
  0x1b   :  { %560 = vmatprep.subr.bf16.mxu0 %v1262_v0  ;;  %1145 = vmatprep.subr.bf16.mxu1 %v1262_v0 }
  0x1e   :  { %561 = vmatpush1.bf16.msra.mxu0 %v1164_v10  ;;  %1154 = vmatpush1.bf16.msra.mxu1 %v1164_v10  ;;  %v1542_v10 = vld [vmem:[%s2058_s2] ss:$0 sm:$0xff] }
  0x1f   :  { %576 = vmatprep.subr.bf16.mxu0 %v1262_v0  ;;  %1146 = vmatprep.subr.bf16.mxu1 %v1262_v0  ;;  %v1248_v0 = vld [vmem:[%s2057_s0 + $0xd0] ss:$8 sps:$4 sm:$0xff]  }
  0x22   :  { %577 = vmatpush2.bf16.msra.mxu0 %v1165_v11  ;;  %1155 = vmatpush2.bf16.msra.mxu1 %v1165_v11 }
  0x25   :  { %579 = vmatmul.mubr.bf16.vlgmr.msra.gmra.mxu0 %v1166_v12  ;;  %707 = vmatmul.mubr.bf16.vlgmr.msra.gmra.mxu1 %v1169_v13  ;;  %v835_v12 = vld [vmem:[%s2059_s3] sm:$0xff] }
  0x26   :  { %1107 = vmatprep.mubr.msk.bf16.mxu0 %vm449_vm0, %v1172_v14  ;;  %1123 = vmatprep.mubr.msk.bf16.mxu1 %vm449_vm0, %v1174_v15  ;;  %v867_v14 = vld [vmem:[%s2059_s3 + $0x100] sm:$0xff] }
  0x2d   :  { %587 = vmatmul.mubr.bf16.gmra.mxu0 %v1176_v16  ;;  %715 = vmatmul.mubr.bf16.gmra.mxu1 %v1177_v17 }
  0x2e   :  { %1108 = vmatprep.mubr.msk.bf16.mxu0 %vm449_vm0, %v1178_v18  ;;  %1124 = vmatprep.mubr.msk.bf16.mxu1 %vm449_vm0, %v1180_v19 }
  0x35   :  { %595 = vmatmul.mubr.bf16.gmra.mxu0 %v1182_v20  ;;  %723 = vmatmul.mubr.bf16.gmra.mxu1 %v1183_v21 }
  0x36   :  { %1109 = vmatprep.mubr.msk.bf16.mxu0 %vm449_vm0, %v1184_v22  ;;  %1125 = vmatprep.mubr.msk.bf16.mxu1 %vm449_vm0, %v1186_v23  ;;  %v836_v22 = vld [vmem:[%s2059_s3 + $0x8] sm:$0xff] }
  0x3d   :  { %603 = vmatmul.mubr.bf16.gmra.mxu0 %v1188_v24  ;;  %731 = vmatmul.mubr.bf16.gmra.mxu1 %v1189_v25  ;;  %v868_v24 = vld [vmem:[%s2059_s3 + $0x108] sm:$0xff] }
  0x3e   :  { %1110 = vmatprep.mubr.msk.bf16.mxu0 %vm449_vm0, %v1190_v26  ;;  %1126 = vmatprep.mubr.msk.bf16.mxu1 %vm449_vm0, %v1192_v27 }
  0x45   :  { %611 = vmatmul.mubr.bf16.gmra.mxu0 %v1194_v28  ;;  %739 = vmatmul.mubr.bf16.gmra.mxu1 %v1195_v29 }
  0x46   :  { %1111 = vmatprep.mubr.msk.bf16.mxu0 %vm449_vm0, %v1196_v30  ;;  %1127 = vmatprep.mubr.msk.bf16.mxu1 %vm449_vm0, %v1198_v31 }
  0x4d   :  { %619 = vmatmul.mubr.bf16.gmra.mxu0 %v1200_v32  ;;  %747 = vmatmul.mubr.bf16.gmra.mxu1 %v1201_v33  ;;  %v837_v32 = vld [vmem:[%s2059_s3 + $0x10] sm:$0xff] }
  0x4e   :  { %1112 = vmatprep.mubr.msk.bf16.mxu0 %vm449_vm0, %v1202_v34  ;;  %1128 = vmatprep.mubr.msk.bf16.mxu1 %vm449_vm0, %v1204_v35  ;;  %v869_v34 = vld [vmem:[%s2059_s3 + $0x110] sm:$0xff] }
  0x55   :  { %627 = vmatmul.mubr.bf16.gmra.mxu0 %v1206_v36  ;;  %755 = vmatmul.mubr.bf16.gmra.mxu1 %v1207_v37 }
  0x56   :  { %1113 = vmatprep.mubr.msk.bf16.mxu0 %vm449_vm0, %v1208_v38  ;;  %1129 = vmatprep.mubr.msk.bf16.mxu1 %vm449_vm0, %v1210_v39 }
  0x5d   :  { %635 = vmatmul.mubr.bf16.gmra.mxu0 %v1212_v40  ;;  %763 = vmatmul.mubr.bf16.gmra.mxu1 %v1213_v41 }
  0x5e   :  { %1114 = vmatprep.mubr.msk.bf16.mxu0 %vm449_vm0, %v1214_v42  ;;  %1130 = vmatprep.mubr.msk.bf16.mxu1 %vm449_vm0, %v1216_v43  ;;  %v838_v42 = vld [vmem:[%s2059_s3 + $0x18] sm:$0xff] }
  0x65   :  { %643 = vmatmul.mubr.bf16.gmra.mxu0 %v1218_v44  ;;  %771 = vmatmul.mubr.bf16.gmra.mxu1 %v1219_v45  ;;  %v870_v44 = vld [vmem:[%s2059_s3 + $0x118] sm:$0xff] }
  0x66   :  { %1115 = vmatprep.mubr.msk.bf16.mxu0 %vm449_vm0, %v1220_v46  ;;  %1131 = vmatprep.mubr.msk.bf16.mxu1 %vm449_vm0, %v1222_v47 }
  0x6d   :  { %651 = vmatmul.mubr.bf16.gmra.mxu0 %v1224_v48  ;;  %779 = vmatmul.mubr.bf16.gmra.mxu1 %v1225_v49 }
  0x6e   :  { %1116 = vmatprep.mubr.msk.bf16.mxu0 %vm449_vm0, %v1226_v50  ;;  %1132 = vmatprep.mubr.msk.bf16.mxu1 %vm449_vm0, %v1228_v51 }
  0x75   :  { %659 = vmatmul.mubr.bf16.gmra.mxu0 %v1230_v52  ;;  %787 = vmatmul.mubr.bf16.gmra.mxu1 %v1231_v53  ;;  %v839_v52 = vld [vmem:[%s2059_s3 + $0x20] sm:$0xff] }
  0x76   :  { %1117 = vmatprep.mubr.msk.bf16.mxu0 %vm449_vm0, %v1232_v54  ;;  %1133 = vmatprep.mubr.msk.bf16.mxu1 %vm449_vm0, %v1234_v55  ;;  %v871_v54 = vld [vmem:[%s2059_s3 + $0x120] sm:$0xff] }
  0x7d   :  { %667 = vmatmul.mubr.bf16.gmra.mxu0 %v1236_v56  ;;  %795 = vmatmul.mubr.bf16.gmra.mxu1 %v1237_v57 }
  0x7e   :  { %1118 = vmatprep.mubr.msk.bf16.mxu0 %vm449_vm0, %v1238_v58  ;;  %1134 = vmatprep.mubr.msk.bf16.mxu1 %vm449_vm0, %v1240_v59 }
  0x85   :  { %675 = vmatmul.mubr.bf16.gmra.mxu0 %v1242_v60  ;;  %803 = vmatmul.mubr.bf16.gmra.mxu1 %v1243_v61 }
  0x86   :  { %1119 = vmatprep.mubr.msk.bf16.mxu0 %vm449_vm0, %v1244_v62  ;;  %1135 = vmatprep.mubr.msk.bf16.mxu1 %vm449_vm0, %v1246_v63  ;;  %v840_v62 = vld [vmem:[%s2059_s3 + $0x28] sm:$0xff] }
  0x8d   :  { %683 = vmatmul.mubr.bf16.gmra.mxu0 %v1248_v0  ;;  %811 = vmatmul.mubr.bf16.gmra.mxu1 %v1249_v1  ;;  %v872_v0 = vld [vmem:[%s2059_s3 + $0x128] sm:$0xff] }
  0x8e   :  { %1120 = vmatprep.mubr.msk.bf16.mxu0 %vm449_vm0, %v1250_v2  ;;  %1136 = vmatprep.mubr.msk.bf16.mxu1 %vm449_vm0, %v1252_v3 }
  0x95   :  { %691 = vmatmul.mubr.bf16.gmra.mxu0 %v1254_v4  ;;  %819 = vmatmul.mubr.bf16.gmra.mxu1 %v1255_v5 }
  0x96   :  { %1121 = vmatprep.mubr.msk.bf16.mxu0 %vm449_vm0, %v1256_v6  ;;  %1137 = vmatprep.mubr.msk.bf16.mxu1 %vm449_vm0, %v1258_v7 }
  0x9d   :  { %699 = vmatmul.mubr.bf16.gmra.mxu0 %v1260_v8  ;;  %827 = vmatmul.mubr.bf16.gmra.mxu1 %v1261_v9  ;;  %v841_v8 = vld [vmem:[%s2059_s3 + $0x30] sm:$0xff] }
  0xe5   :  { %v580_v11 = vpop.f32.mrf.mxu0  ;;  %v708_v13 = vpop.f32.mrf.mxu1 }
  0xe6   :  { %v581_v15 = vadd.f32 %v1542_v10, %v580_v11  ;;  %v709_v16 = vadd.f32 %v1542_v10, %v708_v13  ;;  %v873_v11 = vld [vmem:[%s2059_s3 + $0x130] sm:$0xff] }
  0xe7   :  { %v582_v17 = vpop.f32.mrf.mxu0  ;;  %v710_v18 = vpop.f32.mrf.mxu1 }
  0xe8   :  { %v899_v19 = vadd.f32 %v835_v12, %v581_v15  ;;  %v931_v20 = vadd.f32 %v867_v14, %v709_v16 }
  0xe9   :  { %v583_v21 = vpop.f32.mrf.mxu0  ;;  %v711_v23 = vpop.f32.mrf.mxu1 }
  0xea   :  { %964 = vst.msk [vmem:[%s2060_s4] sm:$0xff] %vm963_vm1, %v899_v19  ;;  %996 = vst.msk [vmem:[%s2060_s4 + $0x100] sm:$0xff] %vm963_vm1, %v931_v20  ;;  %v584_v25 = vadd.f32 %v1542_v10, %v583_v21  ;;  %v712_v26 = vadd.f32 %v1542_v10, %v711_v23  ;;  %v842_v19 = vld [vmem:[%s2059_s3 + $0x38] sm:$0xff] }
  0xeb   :  { %v585_v27 = vpop.f32.mrf.mxu0  ;;  %v713_v28 = vpop.f32.mrf.mxu1  ;;  %v874_v21 = vld [vmem:[%s2059_s3 + $0x138] sm:$0xff] }
  0xec   :  { %v900_v29 = vadd.f32 %v836_v22, %v584_v25  ;;  %v932_v30 = vadd.f32 %v868_v24, %v712_v26 }
  0xed   :  { %v588_v31 = vpop.f32.mrf.mxu0  ;;  %v716_v33 = vpop.f32.mrf.mxu1 }
  0xee   :  { %965 = vst.msk [vmem:[%s2060_s4 + $0x8] sm:$0xff] %vm963_vm1, %v900_v29  ;;  %997 = vst.msk [vmem:[%s2060_s4 + $0x108] sm:$0xff] %vm963_vm1, %v932_v30  ;;  %v589_v35 = vadd.f32 %v1542_v10, %v588_v31  ;;  %v717_v36 = vadd.f32 %v1542_v10, %v716_v33  ;;  %v843_v29 = vld [vmem:[%s2059_s3 + $0x40] sm:$0xff] }
  0xef   :  { %v590_v37 = vpop.f32.mrf.mxu0  ;;  %v718_v38 = vpop.f32.mrf.mxu1  ;;  %v875_v31 = vld [vmem:[%s2059_s3 + $0x140] sm:$0xff] }
  0xf0   :  { %v901_v39 = vadd.f32 %v837_v32, %v589_v35  ;;  %v933_v40 = vadd.f32 %v869_v34, %v717_v36 }
  0xf1   :  { %v591_v41 = vpop.f32.mrf.mxu0  ;;  %v719_v43 = vpop.f32.mrf.mxu1 }
  0xf2   :  { %966 = vst.msk [vmem:[%s2060_s4 + $0x10] sm:$0xff] %vm963_vm1, %v901_v39  ;;  %998 = vst.msk [vmem:[%s2060_s4 + $0x110] sm:$0xff] %vm963_vm1, %v933_v40  ;;  %v592_v45 = vadd.f32 %v1542_v10, %v591_v41  ;;  %v720_v46 = vadd.f32 %v1542_v10, %v719_v43  ;;  %v844_v39 = vld [vmem:[%s2059_s3 + $0x48] sm:$0xff] }
  0xf3   :  { %v593_v47 = vpop.f32.mrf.mxu0  ;;  %v721_v48 = vpop.f32.mrf.mxu1  ;;  %v876_v41 = vld [vmem:[%s2059_s3 + $0x148] sm:$0xff] }
  0xf4   :  { %v902_v49 = vadd.f32 %v838_v42, %v592_v45  ;;  %v934_v50 = vadd.f32 %v870_v44, %v720_v46 }
  0xf5   :  { %v596_v51 = vpop.f32.mrf.mxu0  ;;  %v724_v53 = vpop.f32.mrf.mxu1 }
  0xf6   :  { %967 = vst.msk [vmem:[%s2060_s4 + $0x18] sm:$0xff] %vm963_vm1, %v902_v49  ;;  %999 = vst.msk [vmem:[%s2060_s4 + $0x118] sm:$0xff] %vm963_vm1, %v934_v50  ;;  %v597_v55 = vadd.f32 %v1542_v10, %v596_v51  ;;  %v725_v56 = vadd.f32 %v1542_v10, %v724_v53  ;;  %v845_v49 = vld [vmem:[%s2059_s3 + $0x50] sm:$0xff] }
  0xf7   :  { %v598_v57 = vpop.f32.mrf.mxu0  ;;  %v726_v58 = vpop.f32.mrf.mxu1  ;;  %v877_v51 = vld [vmem:[%s2059_s3 + $0x150] sm:$0xff] }
  0xf8   :  { %v903_v59 = vadd.f32 %v839_v52, %v597_v55  ;;  %v935_v60 = vadd.f32 %v871_v54, %v725_v56 }
  0xf9   :  { %v599_v61 = vpop.f32.mrf.mxu0  ;;  %v727_v63 = vpop.f32.mrf.mxu1 }
  0xfa   :  { %968 = vst.msk [vmem:[%s2060_s4 + $0x20] sm:$0xff] %vm963_vm1, %v903_v59  ;;  %1000 = vst.msk [vmem:[%s2060_s4 + $0x120] sm:$0xff] %vm963_vm1, %v935_v60  ;;  %v600_v1 = vadd.f32 %v1542_v10, %v599_v61  ;;  %v728_v2 = vadd.f32 %v1542_v10, %v727_v63  ;;  %v846_v59 = vld [vmem:[%s2059_s3 + $0x58] sm:$0xff] }
  0xfb   :  { %v601_v3 = vpop.f32.mrf.mxu0  ;;  %v729_v4 = vpop.f32.mrf.mxu1  ;;  %v878_v61 = vld [vmem:[%s2059_s3 + $0x158] sm:$0xff] }
  0xfc   :  { %v904_v5 = vadd.f32 %v840_v62, %v600_v1  ;;  %v936_v6 = vadd.f32 %v872_v0, %v728_v2 }
  0xfd   :  { %v604_v7 = vpop.f32.mrf.mxu0  ;;  %v732_v9 = vpop.f32.mrf.mxu1 }
  0xfe   :  { %969 = vst.msk [vmem:[%s2060_s4 + $0x28] sm:$0xff] %vm963_vm1, %v904_v5  ;;  %1001 = vst.msk [vmem:[%s2060_s4 + $0x128] sm:$0xff] %vm963_vm1, %v936_v6  ;;  %v605_v12 = vadd.f32 %v1542_v10, %v604_v7  ;;  %v733_v13 = vadd.f32 %v1542_v10, %v732_v9  ;;  %v847_v5 = vld [vmem:[%s2059_s3 + $0x60] sm:$0xff] }
  0xff   :  { %v606_v14 = vpop.f32.mrf.mxu0  ;;  %v734_v15 = vpop.f32.mrf.mxu1  ;;  %v879_v7 = vld [vmem:[%s2059_s3 + $0x160] sm:$0xff] }
 0x100   :  { %v905_v16 = vadd.f32 %v841_v8, %v605_v12  ;;  %v937_v17 = vadd.f32 %v873_v11, %v733_v13 }
 0x101   :  { %v607_v18 = vpop.f32.mrf.mxu0  ;;  %v735_v20 = vpop.f32.mrf.mxu1 }
 0x102   :  { %970 = vst.msk [vmem:[%s2060_s4 + $0x30] sm:$0xff] %vm963_vm1, %v905_v16  ;;  %1002 = vst.msk [vmem:[%s2060_s4 + $0x130] sm:$0xff] %vm963_vm1, %v937_v17  ;;  %v608_v22 = vadd.f32 %v1542_v10, %v607_v18  ;;  %v736_v23 = vadd.f32 %v1542_v10, %v735_v20  ;;  %v848_v16 = vld [vmem:[%s2059_s3 + $0x68] sm:$0xff] }
 0x103   :  { %v609_v24 = vpop.f32.mrf.mxu0  ;;  %v737_v25 = vpop.f32.mrf.mxu1  ;;  %v880_v18 = vld [vmem:[%s2059_s3 + $0x168] sm:$0xff] }
 0x104   :  { %v906_v26 = vadd.f32 %v842_v19, %v608_v22  ;;  %v938_v27 = vadd.f32 %v874_v21, %v736_v23 }
 0x105   :  { %v612_v28 = vpop.f32.mrf.mxu0  ;;  %v740_v30 = vpop.f32.mrf.mxu1 }
 0x106   :  { %971 = vst.msk [vmem:[%s2060_s4 + $0x38] sm:$0xff] %vm963_vm1, %v906_v26  ;;  %1003 = vst.msk [vmem:[%s2060_s4 + $0x138] sm:$0xff] %vm963_vm1, %v938_v27  ;;  %v613_v32 = vadd.f32 %v1542_v10, %v612_v28  ;;  %v741_v33 = vadd.f32 %v1542_v10, %v740_v30  ;;  %v849_v26 = vld [vmem:[%s2059_s3 + $0x70] sm:$0xff] }
 0x107   :  { %v614_v34 = vpop.f32.mrf.mxu0  ;;  %v742_v35 = vpop.f32.mrf.mxu1  ;;  %v881_v28 = vld [vmem:[%s2059_s3 + $0x170] sm:$0xff] }
 0x108   :  { %v907_v36 = vadd.f32 %v843_v29, %v613_v32  ;;  %v939_v37 = vadd.f32 %v875_v31, %v741_v33 }
 0x109   :  { %v615_v38 = vpop.f32.mrf.mxu0  ;;  %v743_v40 = vpop.f32.mrf.mxu1 }
 0x10a   :  { %972 = vst.msk [vmem:[%s2060_s4 + $0x40] sm:$0xff] %vm963_vm1, %v907_v36  ;;  %1004 = vst.msk [vmem:[%s2060_s4 + $0x140] sm:$0xff] %vm963_vm1, %v939_v37  ;;  %v616_v42 = vadd.f32 %v1542_v10, %v615_v38  ;;  %v744_v43 = vadd.f32 %v1542_v10, %v743_v40  ;;  %v850_v36 = vld [vmem:[%s2059_s3 + $0x78] sm:$0xff] }
 0x10b   :  { %v617_v44 = vpop.f32.mrf.mxu0  ;;  %v745_v45 = vpop.f32.mrf.mxu1  ;;  %v882_v38 = vld [vmem:[%s2059_s3 + $0x178] sm:$0xff] }
 0x10c   :  { %v908_v46 = vadd.f32 %v844_v39, %v616_v42  ;;  %v940_v47 = vadd.f32 %v876_v41, %v744_v43 }
 0x10d   :  { %v620_v48 = vpop.f32.mrf.mxu0  ;;  %v748_v50 = vpop.f32.mrf.mxu1 }
 0x10e   :  { %973 = vst.msk [vmem:[%s2060_s4 + $0x48] sm:$0xff] %vm963_vm1, %v908_v46  ;;  %1005 = vst.msk [vmem:[%s2060_s4 + $0x148] sm:$0xff] %vm963_vm1, %v940_v47  ;;  %v621_v52 = vadd.f32 %v1542_v10, %v620_v48  ;;  %v749_v53 = vadd.f32 %v1542_v10, %v748_v50  ;;  %v851_v46 = vld [vmem:[%s2059_s3 + $0x80] sm:$0xff] }
 0x10f   :  { %v622_v54 = vpop.f32.mrf.mxu0  ;;  %v750_v55 = vpop.f32.mrf.mxu1  ;;  %v883_v48 = vld [vmem:[%s2059_s3 + $0x180] sm:$0xff] }
 0x110   :  { %v909_v56 = vadd.f32 %v845_v49, %v621_v52  ;;  %v941_v57 = vadd.f32 %v877_v51, %v749_v53 }
 0x111   :  { %v623_v58 = vpop.f32.mrf.mxu0  ;;  %v751_v60 = vpop.f32.mrf.mxu1 }
 0x112   :  { %974 = vst.msk [vmem:[%s2060_s4 + $0x50] sm:$0xff] %vm963_vm1, %v909_v56  ;;  %1006 = vst.msk [vmem:[%s2060_s4 + $0x150] sm:$0xff] %vm963_vm1, %v941_v57  ;;  %v624_v62 = vadd.f32 %v1542_v10, %v623_v58  ;;  %v752_v63 = vadd.f32 %v1542_v10, %v751_v60  ;;  %v852_v56 = vld [vmem:[%s2059_s3 + $0x88] sm:$0xff] }
 0x113   :  { %v625_v0 = vpop.f32.mrf.mxu0  ;;  %v753_v1 = vpop.f32.mrf.mxu1  ;;  %v884_v58 = vld [vmem:[%s2059_s3 + $0x188] sm:$0xff] }
 0x114   :  { %v910_v2 = vadd.f32 %v846_v59, %v624_v62  ;;  %v942_v3 = vadd.f32 %v878_v61, %v752_v63 }
 0x115   :  { %v628_v4 = vpop.f32.mrf.mxu0  ;;  %v756_v6 = vpop.f32.mrf.mxu1 }
 0x116   :  { %975 = vst.msk [vmem:[%s2060_s4 + $0x58] sm:$0xff] %vm963_vm1, %v910_v2  ;;  %1007 = vst.msk [vmem:[%s2060_s4 + $0x158] sm:$0xff] %vm963_vm1, %v942_v3  ;;  %v629_v8 = vadd.f32 %v1542_v10, %v628_v4  ;;  %v757_v9 = vadd.f32 %v1542_v10, %v756_v6  ;;  %v853_v2 = vld [vmem:[%s2059_s3 + $0x90] sm:$0xff] }
 0x117   :  { %v630_v11 = vpop.f32.mrf.mxu0  ;;  %v758_v12 = vpop.f32.mrf.mxu1  ;;  %v885_v4 = vld [vmem:[%s2059_s3 + $0x190] sm:$0xff] }
 0x118   :  { %v911_v13 = vadd.f32 %v847_v5, %v629_v8  ;;  %v943_v14 = vadd.f32 %v879_v7, %v757_v9 }
 0x119   :  { %v631_v15 = vpop.f32.mrf.mxu0  ;;  %v759_v17 = vpop.f32.mrf.mxu1 }
 0x11a   :  { %976 = vst.msk [vmem:[%s2060_s4 + $0x60] sm:$0xff] %vm963_vm1, %v911_v13  ;;  %1008 = vst.msk [vmem:[%s2060_s4 + $0x160] sm:$0xff] %vm963_vm1, %v943_v14  ;;  %v632_v19 = vadd.f32 %v1542_v10, %v631_v15  ;;  %v760_v20 = vadd.f32 %v1542_v10, %v759_v17  ;;  %v854_v13 = vld [vmem:[%s2059_s3 + $0x98] sm:$0xff] }
 0x11b   :  { %v633_v21 = vpop.f32.mrf.mxu0  ;;  %v761_v22 = vpop.f32.mrf.mxu1  ;;  %v886_v15 = vld [vmem:[%s2059_s3 + $0x198] sm:$0xff] }
 0x11c   :  { %v912_v23 = vadd.f32 %v848_v16, %v632_v19  ;;  %v944_v24 = vadd.f32 %v880_v18, %v760_v20 }
 0x11d   :  { %v636_v25 = vpop.f32.mrf.mxu0  ;;  %v764_v27 = vpop.f32.mrf.mxu1 }
 0x11e   :  { %977 = vst.msk [vmem:[%s2060_s4 + $0x68] sm:$0xff] %vm963_vm1, %v912_v23  ;;  %1009 = vst.msk [vmem:[%s2060_s4 + $0x168] sm:$0xff] %vm963_vm1, %v944_v24  ;;  %v637_v29 = vadd.f32 %v1542_v10, %v636_v25  ;;  %v765_v30 = vadd.f32 %v1542_v10, %v764_v27  ;;  %v855_v23 = vld [vmem:[%s2059_s3 + $0xa0] sm:$0xff] }
 0x11f   :  { %v638_v31 = vpop.f32.mrf.mxu0  ;;  %v766_v32 = vpop.f32.mrf.mxu1  ;;  %v887_v25 = vld [vmem:[%s2059_s3 + $0x1a0] sm:$0xff] }
 0x120   :  { %v913_v33 = vadd.f32 %v849_v26, %v637_v29  ;;  %v945_v34 = vadd.f32 %v881_v28, %v765_v30 }
 0x121   :  { %v639_v35 = vpop.f32.mrf.mxu0  ;;  %v767_v37 = vpop.f32.mrf.mxu1 }
 0x122   :  { %978 = vst.msk [vmem:[%s2060_s4 + $0x70] sm:$0xff] %vm963_vm1, %v913_v33  ;;  %1010 = vst.msk [vmem:[%s2060_s4 + $0x170] sm:$0xff] %vm963_vm1, %v945_v34  ;;  %v640_v39 = vadd.f32 %v1542_v10, %v639_v35  ;;  %v768_v40 = vadd.f32 %v1542_v10, %v767_v37  ;;  %v856_v33 = vld [vmem:[%s2059_s3 + $0xa8] sm:$0xff] }
 0x123   :  { %v641_v41 = vpop.f32.mrf.mxu0  ;;  %v769_v42 = vpop.f32.mrf.mxu1  ;;  %v888_v35 = vld [vmem:[%s2059_s3 + $0x1a8] sm:$0xff] }
 0x124   :  { %v914_v43 = vadd.f32 %v850_v36, %v640_v39  ;;  %v946_v44 = vadd.f32 %v882_v38, %v768_v40 }
 0x125   :  { %v644_v45 = vpop.f32.mrf.mxu0  ;;  %v772_v47 = vpop.f32.mrf.mxu1 }
 0x126   :  { %979 = vst.msk [vmem:[%s2060_s4 + $0x78] sm:$0xff] %vm963_vm1, %v914_v43  ;;  %1011 = vst.msk [vmem:[%s2060_s4 + $0x178] sm:$0xff] %vm963_vm1, %v946_v44  ;;  %v645_v49 = vadd.f32 %v1542_v10, %v644_v45  ;;  %v773_v50 = vadd.f32 %v1542_v10, %v772_v47  ;;  %v857_v43 = vld [vmem:[%s2059_s3 + $0xb0] sm:$0xff] }
 0x127   :  { %v646_v51 = vpop.f32.mrf.mxu0  ;;  %v774_v52 = vpop.f32.mrf.mxu1  ;;  %v889_v45 = vld [vmem:[%s2059_s3 + $0x1b0] sm:$0xff] }
 0x128   :  { %v915_v53 = vadd.f32 %v851_v46, %v645_v49  ;;  %v947_v54 = vadd.f32 %v883_v48, %v773_v50 }
 0x129   :  { %v647_v55 = vpop.f32.mrf.mxu0  ;;  %v775_v57 = vpop.f32.mrf.mxu1 }
 0x12a   :  { %980 = vst.msk [vmem:[%s2060_s4 + $0x80] sm:$0xff] %vm963_vm1, %v915_v53  ;;  %1012 = vst.msk [vmem:[%s2060_s4 + $0x180] sm:$0xff] %vm963_vm1, %v947_v54  ;;  %v648_v59 = vadd.f32 %v1542_v10, %v647_v55  ;;  %v776_v60 = vadd.f32 %v1542_v10, %v775_v57  ;;  %v858_v53 = vld [vmem:[%s2059_s3 + $0xb8] sm:$0xff] }
 0x12b   :  { %v649_v61 = vpop.f32.mrf.mxu0  ;;  %v777_v62 = vpop.f32.mrf.mxu1  ;;  %v890_v55 = vld [vmem:[%s2059_s3 + $0x1b8] sm:$0xff] }
 0x12c   :  { %v916_v63 = vadd.f32 %v852_v56, %v648_v59  ;;  %v948_v0 = vadd.f32 %v884_v58, %v776_v60 }
 0x12d   :  { %v652_v1 = vpop.f32.mrf.mxu0  ;;  %v780_v3 = vpop.f32.mrf.mxu1 }
 0x12e   :  { %981 = vst.msk [vmem:[%s2060_s4 + $0x88] sm:$0xff] %vm963_vm1, %v916_v63  ;;  %1013 = vst.msk [vmem:[%s2060_s4 + $0x188] sm:$0xff] %vm963_vm1, %v948_v0  ;;  %v653_v5 = vadd.f32 %v1542_v10, %v652_v1  ;;  %v781_v6 = vadd.f32 %v1542_v10, %v780_v3  ;;  %v859_v63 = vld [vmem:[%s2059_s3 + $0xc0] sm:$0xff] }
 0x12f   :  { %v654_v7 = vpop.f32.mrf.mxu0  ;;  %v782_v8 = vpop.f32.mrf.mxu1  ;;  %v891_v1 = vld [vmem:[%s2059_s3 + $0x1c0] sm:$0xff] }
 0x130   :  { %v917_v9 = vadd.f32 %v853_v2, %v653_v5  ;;  %v949_v11 = vadd.f32 %v885_v4, %v781_v6 }
 0x131   :  { %v655_v12 = vpop.f32.mrf.mxu0  ;;  %v783_v14 = vpop.f32.mrf.mxu1 }
 0x132   :  { %982 = vst.msk [vmem:[%s2060_s4 + $0x90] sm:$0xff] %vm963_vm1, %v917_v9  ;;  %1014 = vst.msk [vmem:[%s2060_s4 + $0x190] sm:$0xff] %vm963_vm1, %v949_v11  ;;  %v656_v16 = vadd.f32 %v1542_v10, %v655_v12  ;;  %v784_v17 = vadd.f32 %v1542_v10, %v783_v14  ;;  %v860_v9 = vld [vmem:[%s2059_s3 + $0xc8] sm:$0xff] }
 0x133   :  { %v657_v18 = vpop.f32.mrf.mxu0  ;;  %v785_v19 = vpop.f32.mrf.mxu1  ;;  %v892_v12 = vld [vmem:[%s2059_s3 + $0x1c8] sm:$0xff] }
 0x134   :  { %v918_v20 = vadd.f32 %v854_v13, %v656_v16  ;;  %v950_v21 = vadd.f32 %v886_v15, %v784_v17 }
 0x135   :  { %v660_v22 = vpop.f32.mrf.mxu0  ;;  %v788_v24 = vpop.f32.mrf.mxu1 }
 0x136   :  { %983 = vst.msk [vmem:[%s2060_s4 + $0x98] sm:$0xff] %vm963_vm1, %v918_v20  ;;  %1015 = vst.msk [vmem:[%s2060_s4 + $0x198] sm:$0xff] %vm963_vm1, %v950_v21  ;;  %v661_v26 = vadd.f32 %v1542_v10, %v660_v22  ;;  %v789_v27 = vadd.f32 %v1542_v10, %v788_v24  ;;  %v861_v20 = vld [vmem:[%s2059_s3 + $0xd0] sm:$0xff] }
 0x137   :  { %v662_v28 = vpop.f32.mrf.mxu0  ;;  %v790_v29 = vpop.f32.mrf.mxu1  ;;  %v893_v22 = vld [vmem:[%s2059_s3 + $0x1d0] sm:$0xff] }
 0x138   :  { %v919_v30 = vadd.f32 %v855_v23, %v661_v26  ;;  %v951_v31 = vadd.f32 %v887_v25, %v789_v27 }
 0x139   :  { %v663_v32 = vpop.f32.mrf.mxu0  ;;  %v791_v34 = vpop.f32.mrf.mxu1 }
 0x13a   :  { %984 = vst.msk [vmem:[%s2060_s4 + $0xa0] sm:$0xff] %vm963_vm1, %v919_v30  ;;  %1016 = vst.msk [vmem:[%s2060_s4 + $0x1a0] sm:$0xff] %vm963_vm1, %v951_v31  ;;  %v664_v36 = vadd.f32 %v1542_v10, %v663_v32  ;;  %v792_v37 = vadd.f32 %v1542_v10, %v791_v34  ;;  %v862_v30 = vld [vmem:[%s2059_s3 + $0xd8] sm:$0xff] }
 0x13b   :  { %v665_v38 = vpop.f32.mrf.mxu0  ;;  %v793_v39 = vpop.f32.mrf.mxu1  ;;  %v894_v32 = vld [vmem:[%s2059_s3 + $0x1d8] sm:$0xff] }
 0x13c   :  { %v920_v40 = vadd.f32 %v856_v33, %v664_v36  ;;  %v952_v41 = vadd.f32 %v888_v35, %v792_v37 }
 0x13d   :  { %v668_v42 = vpop.f32.mrf.mxu0  ;;  %v796_v44 = vpop.f32.mrf.mxu1 }
 0x13e   :  { %985 = vst.msk [vmem:[%s2060_s4 + $0xa8] sm:$0xff] %vm963_vm1, %v920_v40  ;;  %1017 = vst.msk [vmem:[%s2060_s4 + $0x1a8] sm:$0xff] %vm963_vm1, %v952_v41  ;;  %v669_v46 = vadd.f32 %v1542_v10, %v668_v42  ;;  %v797_v47 = vadd.f32 %v1542_v10, %v796_v44  ;;  %v863_v40 = vld [vmem:[%s2059_s3 + $0xe0] sm:$0xff] }
 0x13f   :  { %v670_v48 = vpop.f32.mrf.mxu0  ;;  %v798_v49 = vpop.f32.mrf.mxu1  ;;  %v895_v42 = vld [vmem:[%s2059_s3 + $0x1e0] sm:$0xff] }
 0x140   :  { %v921_v50 = vadd.f32 %v857_v43, %v669_v46  ;;  %v953_v51 = vadd.f32 %v889_v45, %v797_v47 }
 0x141   :  { %v671_v52 = vpop.f32.mrf.mxu0  ;;  %v799_v54 = vpop.f32.mrf.mxu1 }
 0x142   :  { %986 = vst.msk [vmem:[%s2060_s4 + $0xb0] sm:$0xff] %vm963_vm1, %v921_v50  ;;  %1018 = vst.msk [vmem:[%s2060_s4 + $0x1b0] sm:$0xff] %vm963_vm1, %v953_v51  ;;  %v672_v56 = vadd.f32 %v1542_v10, %v671_v52  ;;  %v800_v57 = vadd.f32 %v1542_v10, %v799_v54  ;;  %v864_v50 = vld [vmem:[%s2059_s3 + $0xe8] sm:$0xff] }
 0x143   :  { %v673_v58 = vpop.f32.mrf.mxu0  ;;  %v801_v59 = vpop.f32.mrf.mxu1  ;;  %v896_v52 = vld [vmem:[%s2059_s3 + $0x1e8] sm:$0xff] }
 0x144   :  { %v922_v60 = vadd.f32 %v858_v53, %v672_v56  ;;  %v954_v61 = vadd.f32 %v890_v55, %v800_v57 }
 0x145   :  { %v676_v62 = vpop.f32.mrf.mxu0  ;;  %v804_v0 = vpop.f32.mrf.mxu1 }
 0x146   :  { %987 = vst.msk [vmem:[%s2060_s4 + $0xb8] sm:$0xff] %vm963_vm1, %v922_v60  ;;  %1019 = vst.msk [vmem:[%s2060_s4 + $0x1b8] sm:$0xff] %vm963_vm1, %v954_v61  ;;  %v677_v2 = vadd.f32 %v1542_v10, %v676_v62  ;;  %v805_v3 = vadd.f32 %v1542_v10, %v804_v0  ;;  %v865_v60 = vld [vmem:[%s2059_s3 + $0xf0] sm:$0xff] }
 0x147   :  { %v678_v4 = vpop.f32.mrf.mxu0  ;;  %v806_v5 = vpop.f32.mrf.mxu1  ;;  %v897_v62 = vld [vmem:[%s2059_s3 + $0x1f0] sm:$0xff] }
 0x148   :  { %v923_v6 = vadd.f32 %v859_v63, %v677_v2  ;;  %v955_v7 = vadd.f32 %v891_v1, %v805_v3 }
 0x149   :  { %v679_v8 = vpop.f32.mrf.mxu0  ;;  %v807_v11 = vpop.f32.mrf.mxu1 }
 0x14a   :  { %988 = vst.msk [vmem:[%s2060_s4 + $0xc0] sm:$0xff] %vm963_vm1, %v923_v6  ;;  %1020 = vst.msk [vmem:[%s2060_s4 + $0x1c0] sm:$0xff] %vm963_vm1, %v955_v7  ;;  %v680_v13 = vadd.f32 %v1542_v10, %v679_v8  ;;  %v808_v14 = vadd.f32 %v1542_v10, %v807_v11  ;;  %v866_v6 = vld [vmem:[%s2059_s3 + $0xf8] sm:$0xff] }
 0x14b   :  { %v681_v15 = vpop.f32.mrf.mxu0  ;;  %v809_v16 = vpop.f32.mrf.mxu1  ;;  %v898_v8 = vld [vmem:[%s2059_s3 + $0x1f8] sm:$0xff] }
 0x14c   :  { %v924_v17 = vadd.f32 %v860_v9, %v680_v13  ;;  %v956_v18 = vadd.f32 %v892_v12, %v808_v14 }
 0x14d   :  { %v684_v19 = vpop.f32.mrf.mxu0  ;;  %v812_v21 = vpop.f32.mrf.mxu1 }
 0x14e   :  { %989 = vst.msk [vmem:[%s2060_s4 + $0xc8] sm:$0xff] %vm963_vm1, %v924_v17  ;;  %1021 = vst.msk [vmem:[%s2060_s4 + $0x1c8] sm:$0xff] %vm963_vm1, %v956_v18  ;;  %v685_v23 = vadd.f32 %v1542_v10, %v684_v19  ;;  %v813_v24 = vadd.f32 %v1542_v10, %v812_v21 }
 0x14f   :  { %v686_v25 = vpop.f32.mrf.mxu0  ;;  %v814_v26 = vpop.f32.mrf.mxu1 }
 0x150   :  { %v925_v27 = vadd.f32 %v861_v20, %v685_v23  ;;  %v957_v28 = vadd.f32 %v893_v22, %v813_v24 }
 0x151   :  { %v687_v29 = vpop.f32.mrf.mxu0  ;;  %v815_v31 = vpop.f32.mrf.mxu1 }
 0x152   :  { %990 = vst.msk [vmem:[%s2060_s4 + $0xd0] sm:$0xff] %vm963_vm1, %v925_v27  ;;  %1022 = vst.msk [vmem:[%s2060_s4 + $0x1d0] sm:$0xff] %vm963_vm1, %v957_v28  ;;  %v688_v33 = vadd.f32 %v1542_v10, %v687_v29  ;;  %v816_v34 = vadd.f32 %v1542_v10, %v815_v31 }
 0x153   :  { %v689_v35 = vpop.f32.mrf.mxu0  ;;  %v817_v36 = vpop.f32.mrf.mxu1 }
 0x154   :  { %v926_v37 = vadd.f32 %v862_v30, %v688_v33  ;;  %v958_v38 = vadd.f32 %v894_v32, %v816_v34 }
 0x155   :  { %v692_v39 = vpop.f32.mrf.mxu0  ;;  %v820_v41 = vpop.f32.mrf.mxu1 }
 0x156   :  { %991 = vst.msk [vmem:[%s2060_s4 + $0xd8] sm:$0xff] %vm963_vm1, %v926_v37  ;;  %1023 = vst.msk [vmem:[%s2060_s4 + $0x1d8] sm:$0xff] %vm963_vm1, %v958_v38  ;;  %v693_v43 = vadd.f32 %v1542_v10, %v692_v39  ;;  %v821_v44 = vadd.f32 %v1542_v10, %v820_v41 }
 0x157   :  { %v694_v45 = vpop.f32.mrf.mxu0  ;;  %v822_v46 = vpop.f32.mrf.mxu1 }
 0x158   :  { %v927_v47 = vadd.f32 %v863_v40, %v693_v43  ;;  %v959_v48 = vadd.f32 %v895_v42, %v821_v44 }
 0x159   :  { %v695_v49 = vpop.f32.mrf.mxu0  ;;  %v823_v51 = vpop.f32.mrf.mxu1 }
 0x15a   :  { %992 = vst.msk [vmem:[%s2060_s4 + $0xe0] sm:$0xff] %vm963_vm1, %v927_v47  ;;  %1024 = vst.msk [vmem:[%s2060_s4 + $0x1e0] sm:$0xff] %vm963_vm1, %v959_v48  ;;  %v696_v53 = vadd.f32 %v1542_v10, %v695_v49  ;;  %v824_v54 = vadd.f32 %v1542_v10, %v823_v51 }
 0x15b   :  { %v697_v55 = vpop.f32.mrf.mxu0  ;;  %v825_v56 = vpop.f32.mrf.mxu1 }
 0x15c   :  { %v928_v57 = vadd.f32 %v864_v50, %v696_v53  ;;  %v960_v58 = vadd.f32 %v896_v52, %v824_v54 }
 0x15d   :  { %v700_v59 = vpop.f32.mrf.mxu0  ;;  %v828_v61 = vpop.f32.mrf.mxu1 }
 0x15e   :  { %993 = vst.msk [vmem:[%s2060_s4 + $0xe8] sm:$0xff] %vm963_vm1, %v928_v57  ;;  %1025 = vst.msk [vmem:[%s2060_s4 + $0x1e8] sm:$0xff] %vm963_vm1, %v960_v58  ;;  %v701_v63 = vadd.f32 %v1542_v10, %v700_v59  ;;  %v829_v0 = vadd.f32 %v1542_v10, %v828_v61 }
 0x15f   :  { %v702_v1 = vpop.f32.mrf.mxu0  ;;  %v830_v2 = vpop.f32.mrf.mxu1 }
 0x160   :  { %v929_v3 = vadd.f32 %v865_v60, %v701_v63  ;;  %v961_v4 = vadd.f32 %v897_v62, %v829_v0 }
 0x161   :  { %v703_v5 = vpop.f32.mrf.mxu0  ;;  %v831_v7 = vpop.f32.mrf.mxu1 }
 0x162   :  { %994 = vst.msk [vmem:[%s2060_s4 + $0xf0] sm:$0xff] %vm963_vm1, %v929_v3  ;;  %1026 = vst.msk [vmem:[%s2060_s4 + $0x1f0] sm:$0xff] %vm963_vm1, %v961_v4  ;;  %v704_v9 = vadd.f32 %v1542_v10, %v703_v5  ;;  %v832_v11 = vadd.f32 %v1542_v10, %v831_v7 }
 0x163   :  { %v705_v12 = vpop.f32.mrf.mxu0  ;;  %v833_v13 = vpop.f32.mrf.mxu1 }
 0x164   :  { %v930_v14 = vadd.f32 %v866_v6, %v704_v9  ;;  %v962_v15 = vadd.f32 %v898_v8, %v832_v11 }
 0x166   :  { %995 = vst.msk [vmem:[%s2060_s4 + $0xf8] sm:$0xff] %vm963_vm1, %v930_v14  ;;  %1027 = vst.msk [vmem:[%s2060_s4 + $0x1f8] sm:$0xff] %vm963_vm1, %v962_v15 }

// kernel: deq_forward.24
= control target key start
LH: loop header
LB: loop body
LE: loop exit
PB: predicated region body
PF: predicated region fallthrough
CT: control target
= control target key end

     0   :  { %s494_s0 = inlined_call_operand.vmem [shape: f32[4,4,128], index: 0, kind: input, shape index: {}]   ;;  %s495_s1 = inlined_call_operand.vmem [shape: f32[4,4,128], index: 1, kind: input, shape index: {}]   ;;  %s496_s2 = inlined_call_operand.vmem [shape: f32[4,4,128], index: 2, kind: input, shape index: {}]   ;;  %s497_s3 = inlined_call_operand.vmem [shape: f32[4,4,128], index: 3, kind: input, shape index: {}]   ;;  %s498_s4 = inlined_call_operand.vmem [shape: f32[4,128], index: 4, kind: input, shape index: {}]   ;;  %s499_s5 = inlined_call_operand.vmem [shape: f32[4,128], index: 5, kind: input, shape index: {}]   ;;  %s500_s6 = inlined_call_operand.vmem [shape: f32[4,128], index: 6, kind: input, shape index: {}]   ;;  %s501_s7 = inlined_call_operand.vmem [shape: f32[4,128], index: 7, kind: input, shape index: {}]   ;;  %s502_s8 = inlined_call_operand.vmem [shape: f32[4,128], index: 8, kind: input, shape index: {}]   ;;  %s503_s9 = inlined_call_operand.vmem [shape: f32[4,128], index: 9, kind: input, shape index: {}]   ;;  %s504_s10 = inlined_call_operand.vmem [shape: f32[4,128], index: 10, kind: output, shape index: {0}]   ;;  %s505_s11 = inlined_call_operand.vmem [shape: f32[4,128], index: 11, kind: output, shape index: {1}]   ;;  %s506_s12 = inlined_call_operand.vmem [shape: f32[4,128], index: 12, kind: output, shape index: {2}]   ;;  %s507_s13 = inlined_call_operand.vmem [shape: f32[4,128], index: 13, kind: output, shape index: {3}]   ;;  %s508_s14 = inlined_call_operand.vmem [shape: f32[4,4,128], index: 14, kind: output, shape index: {4}]   ;;  %s509_s15 = inlined_call_operand.vmem [shape: f32[4,4,128], index: 15, kind: output, shape index: {5}]   ;;  %s510_s16 = inlined_call_operand.hbm [shape: f32[1,1], index: 16, kind: output, shape index: {6}]  }
   0x1   :  { %512 = sst [smem:[#allocation5_spill]] %s494_s0 }
   0x2   :  { %v43_v0 = vld [vmem:[%s496_s2] sm:$0xf]  ;;  %s513_s27 = sld [smem:[#allocation5_spill]]  ;;  %v226_v6 = vld [vmem:[%s496_s2 + $0x4] sm:$0xf] }
   0x3   :  { %v44_v1 = vld [vmem:[%s497_s3] sm:$0xf]  ;;  %v227_v7 = vld [vmem:[%s497_s3 + $0x4] sm:$0xf]  ;;  %v230_v14 = vld [vmem:[%s496_s2 + $0x8] sm:$0xf] }
   0x4   :  { %v46_v3 = vld [vmem:[%s495_s1] sm:$0xf]  ;;  %v229_v11 = vld [vmem:[%s495_s1 + $0x4] sm:$0xf]  ;;  %v233_v16 = vld [vmem:[%s495_s1 + $0x8] sm:$0xf] }
   0x5   :  { %v48_v8 = vmul.f32 %v46_v3, %v44_v1  ;;  %v50_v9 = vmul.f32 %v46_v3, %v43_v0  ;;  %v65_v13 = vmul.f32 %v229_v11, %v226_v6  ;;  %v63_v19 = vmul.f32 %v229_v11, %v227_v7  ;;  %v231_v21 = vld [vmem:[%s497_s3 + $0x8] sm:$0xf]  ;;  %v234_v26 = vld [vmem:[%s496_s2 + $0xc] sm:$0xf] }
   0x6   :  { %v81_v25 = vmul.f32 %v233_v16, %v230_v14  ;;  %v237_v28 = vld [vmem:[%s495_s1 + $0xc] sm:$0xf]  ;;  %v79_v31 = vmul.f32 %v233_v16, %v231_v21 }
   0x7   :  { %v235_v33 = vld [vmem:[%s497_s3 + $0xc] sm:$0xf]  ;;  %v97_v37 = vmul.f32 %v237_v28, %v234_v26 }
   0x8   :  { %v45_v2 = vld [vmem:[%s513_s27] sm:$0xf]  ;;  %v228_v10 = vld [vmem:[%s513_s27 + $0x4] sm:$0xf]  ;;  %v232_v15 = vld [vmem:[%s513_s27 + $0x8] sm:$0xf] }
   0x9   :  { %v47_v4 = vmul.f32 %v45_v2, %v43_v0  ;;  %v51_v5 = vmul.f32 %v45_v2, %v44_v1  ;;  %v61_v12 = vmul.f32 %v228_v10, %v226_v6  ;;  %v67_v20 = vmul.f32 %v228_v10, %v227_v7  ;;  %v236_v27 = vld [vmem:[%s513_s27 + $0xc] sm:$0xf] }
   0xa   :  { %v77_v24 = vmul.f32 %v232_v15, %v230_v14  ;;  %v83_v32 = vmul.f32 %v232_v15, %v231_v21  ;;  %v93_v36 = vmul.f32 %v236_v27, %v234_v26 }
   0xb   :  { %v49_v17 = vadd.f32 %v48_v8, %v47_v4  ;;  %v52_v18 = vsub.f32 %v50_v9, %v51_v5 }
   0xd   :  { %v62_v22 = vadd.f32 %v61_v12, %v49_v17  ;;  %v66_v23 = vadd.f32 %v65_v13, %v52_v18 }
   0xf   :  { %v64_v29 = vadd.f32 %v63_v19, %v62_v22  ;;  %v68_v30 = vsub.f32 %v66_v23, %v67_v20 }
  0x11   :  { %v78_v34 = vadd.f32 %v77_v24, %v64_v29  ;;  %v82_v35 = vadd.f32 %v81_v25, %v68_v30 }
  0x12   :  { %22 = vsyncpa [#allocation3], 0  ;;  %v95_v40 = vmul.f32 %v237_v28, %v235_v33  ;;  %v99_v41 = vmul.f32 %v236_v27, %v235_v33  ;;  %v101_v42 = vld [vmem:[%s500_s6] sm:$0xf]  ;;  %v238_v60 = vld [vmem:[%s496_s2 + $0x4] sm:$0xf] }
  0x13   :  { %v80_v38 = vadd.f32 %v79_v31, %v78_v34  ;;  %v84_v39 = vsub.f32 %v82_v35, %v83_v32  ;;  %v102_v43 = vld [vmem:[%s502_s8] sm:$0xf]  ;;  %v239_v61 = vld [vmem:[%s497_s3 + $0x4] sm:$0xf]  ;;  %v242_v62 = vld [vmem:[%s496_s2 + $0x8] sm:$0xf] }
  0x14   :  { %v107_v44 = vld [vmem:[%s501_s7] sm:$0xf]  ;;  %v103_v52 = vadd.f32 %v102_v43, %v101_v42  ;;  %v243_v63 = vld [vmem:[%s497_s3 + $0x8] sm:$0xf]  ;;  %v246_v8 = vld [vmem:[%s496_s2 + $0xc] sm:$0xf] }
  0x15   :  { %v108_v45 = vld [vmem:[%s503_s9] sm:$0xf]  ;;  %v94_v46 = vadd.f32 %v93_v36, %v80_v38  ;;  %v98_v47 = vadd.f32 %v97_v37, %v84_v39  ;;  %v247_v9 = vld [vmem:[%s497_s3 + $0xc] sm:$0xf]  ;;  %vm166_vm0 = vcmask 1043456   ;;  %vm182_vm1 = vcmask 0  }
  0x16   :  { %v104_v48 = vld [vmem:[%s498_s4] sm:$0xf]  ;;  %v109_v53 = vadd.f32 %v108_v45, %v107_v44  ;;  %v276_v30 = vmov 0.0  }
  0x17   :  { %v110_v49 = vld [vmem:[%s499_s5] sm:$0xf]  ;;  %v96_v50 = vadd.f32 %v95_v40, %v94_v46  ;;  %v100_v51 = vsub.f32 %v98_v47, %v99_v41  ;;  %183 = vst.msk [vmem:[#allocation2] sm:$0x1] %vm182_vm1, %v276_v30 }
  0x18   :  { %v117_v56 = vld [vmem:[%s496_s2] sm:$0xf] }
  0x19   :  { %v105_v54 = vadd.f32 %v104_v48, %v96_v50  ;;  %v111_v55 = vadd.f32 %v110_v49, %v100_v51  ;;  %v118_v57 = vld [vmem:[%s497_s3] sm:$0xf] }
  0x1b   :  { %v106_v58 = vsub.f32 %v103_v52, %v105_v54  ;;  %v112_v59 = vsub.f32 %v109_v53, %v111_v55 }
  0x1d   :  { %113 = vst [vmem:[%s504_s10] sm:$0xf] %v106_v58  ;;  %114 = vst [vmem:[%s505_s11] sm:$0xf] %v112_v59  ;;  %v119_v0 = vmul.f32 %v117_v56, %v106_v58  ;;  %v120_v1 = vmul.f32 %v118_v57, %v112_v59  ;;  %v123_v2 = vmul.f32 %v117_v56, %v112_v59 }
  0x1e   :  { %115 = vst [vmem:[%s506_s12] sm:$0xf] %v106_v58  ;;  %116 = vst [vmem:[%s507_s13] sm:$0xf] %v112_v59  ;;  %v124_v3 = vmul.f32 %v118_v57, %v106_v58  ;;  %v129_v4 = vmul.f32 %v238_v60, %v106_v58  ;;  %v130_v5 = vmul.f32 %v239_v61, %v112_v59  ;;  %v184_v38 = vld [vmem:[#allocation2] sm:$0x1] }
  0x1f   :  { %v134_v6 = vmul.f32 %v238_v60, %v112_v59  ;;  %v135_v7 = vmul.f32 %v239_v61, %v106_v58  ;;  %v121_v10 = vsub.f32 %v119_v0, %v120_v1  ;;  %v141_v12 = vmul.f32 %v242_v62, %v106_v58 }
  0x20   :  { %v125_v11 = vadd.f32 %v124_v3, %v123_v2  ;;  %v142_v13 = vmul.f32 %v243_v63, %v112_v59  ;;  %v131_v14 = vsub.f32 %v129_v4, %v130_v5  ;;  %v146_v16 = vmul.f32 %v242_v62, %v112_v59 }
  0x21   :  { %v136_v15 = vadd.f32 %v135_v7, %v134_v6  ;;  %v147_v17 = vmul.f32 %v243_v63, %v106_v58  ;;  %122 = vst [vmem:[%s508_s14] sm:$0xf] %v121_v10  ;;  %v153_v19 = vmul.f32 %v246_v8, %v106_v58  ;;  %v154_v20 = vmul.f32 %v247_v9, %v112_v59 }
  0x22   :  { %126 = vst [vmem:[%s509_s15] sm:$0xf] %v125_v11  ;;  %v143_v18 = vsub.f32 %v141_v12, %v142_v13  ;;  %v158_v21 = vmul.f32 %v246_v8, %v112_v59  ;;  %240 = vst [vmem:[%s508_s14 + $0x4] sm:$0xf] %v131_v14  ;;  %v159_v23 = vmul.f32 %v247_v9, %v106_v58 }
  0x23   :  { %241 = vst [vmem:[%s509_s15 + $0x4] sm:$0xf] %v136_v15  ;;  %v148_v22 = vadd.f32 %v147_v17, %v146_v16  ;;  %v163_v24 = vmul.f32 %v106_v58, %v106_v58  ;;  %v164_v25 = vmul.f32 %v112_v59, %v112_v59  ;;  %v155_v26 = vsub.f32 %v153_v19, %v154_v20 }
  0x24   :  { %244 = vst [vmem:[%s508_s14 + $0x8] sm:$0xf] %v143_v18  ;;  %v160_v27 = vadd.f32 %v159_v23, %v158_v21 }
  0x25   :  { %245 = vst [vmem:[%s509_s15 + $0x8] sm:$0xf] %v148_v22  ;;  %v165_v28 = vadd.f32 %v164_v25, %v163_v24  ;;  %248 = vst [vmem:[%s508_s14 + $0xc] sm:$0xf] %v155_v26  ;;  %s277_s14 = smov [#allocation2]  }
  0x26   :  { %249 = vst [vmem:[%s509_s15 + $0xc] sm:$0xf] %v160_v27  ;;  %s206_s1 = sshll.u32 %s277_s14, 4  ;;  %s207_s1 = int_to_ptr.vmem [resolvable:$true] %s206_s1 }
  0x27   :  { %v167_v29 = vsel %vm166_vm0, %v165_v28, 0.0  ;;  %s254_s15 = scalar_lea.vmem %s207_s1, 16  ;;  %s258_s28 = scalar_lea.vmem %s207_s1, 32 }
  0x28   :  { %168 = vadd.xlane.f32.xlu0 %v167_v29  ;;  %p255_p0 = scmp.ne.s32.totalorder %s207_s1, %s254_s15  ;;  %p259_p1 = scmp.lt.s32.totalorder %s207_s1, %s207_s1 }
  0x29   :  { %p260_p2 = scmp.lt.s32.totalorder %s258_s28, %s254_s15 }
  0x2b   :  { %p261_p3 = por %p260_p2, %p259_p1 }
  0x2d   :  { %p262_p4 = pnand %p261_p3, %p255_p0 }
  0xb1   :  { %v169_v31 = vpop.xlane.xlu0 %168 }
  0xb2   :  { %v170_v32 = vrot.slane %v169_v31, 4 }
  0xb4   :  { %v171_v33 = vadd.f32 %v170_v32, %v169_v31 }
  0xb6   :  { %v172_v34 = vrot.slane %v171_v33, 2 }
  0xb8   :  { %v173_v35 = vadd.f32 %v172_v34, %v171_v33 }
  0xba   :  { %v174_v36 = vrot.slane %v173_v35, 1 }
  0xbc   :  { %v175_v37 = vadd.f32 %v174_v36, %v173_v35 }
  0xbe   :  { %250 = vpush %v175_v37 }
  0xef   :  { %s251_s26 = spop %250 }
  0xf0   :  { %v177_v39 = vstv %s251_s26 }
  0xf1   :  { %v185_v40 = vadd.f32 %v184_v38, %v177_v39 }
  0xf3   :  { %187 = vst.msk [vmem:[#allocation2] sm:$0x1] %vm182_vm1, %v185_v40 }
  0xf4   :  { %265 = shalt.err (!%p262_p4)
}
  0xf5   :  { %209 = dma.vmem_to_hbm [thread:$0]  %s207_s1, 16, %s510_s16, [#allocation3]  }
  0xf6   :  { %274 = dma.done.wait [#allocation3], 16  }
  0xf7   :  { %275 = vsyncadd [#allocation3], 4294967280 }
  0xf8   :  { %225 = vsyncpa [#allocation3], 1 }

// kernel: closed_call.243
= control target key start
LH: loop header
LB: loop body
LE: loop exit
PB: predicated region body
PF: predicated region fallthrough
CT: control target
= control target key end

     0   :  { %s288_s0 = inlined_call_operand.vmem [shape: f32[4,4,128], index: 0, kind: input, shape index: {}]   ;;  %s289_s1 = inlined_call_operand.vmem [shape: f32[4,4,128], index: 1, kind: input, shape index: {}]   ;;  %s290_s2 = inlined_call_operand.vmem [shape: f32[4,4,128], index: 2, kind: input, shape index: {}]   ;;  %s291_s3 = inlined_call_operand.vmem [shape: f32[4,4,128], index: 3, kind: input, shape index: {}]   ;;  %s292_s4 = inlined_call_operand.vmem [shape: f32[4,128], index: 4, kind: input, shape index: {}]   ;;  %s293_s5 = inlined_call_operand.vmem [shape: f32[4,128], index: 5, kind: input, shape index: {}]   ;;  %s294_s6 = inlined_call_operand.vmem [shape: f32[4,128], index: 6, kind: output, shape index: {0}]   ;;  %s295_s7 = inlined_call_operand.vmem [shape: f32[4,128], index: 7, kind: output, shape index: {1}]   ;;  %s296_s8 = inlined_call_operand.hbm [shape: f32[1,1], index: 8, kind: output, shape index: {2}]  }
   0x1   :  { %v29_v0 = vld [vmem:[%s290_s2] sm:$0xf]  ;;  %v138_v8 = vld [vmem:[%s290_s2 + $0x4] sm:$0xf]  ;;  %v142_v14 = vld [vmem:[%s290_s2 + $0x8] sm:$0xf] }
   0x2   :  { %v30_v1 = vld [vmem:[%s291_s3] sm:$0xf]  ;;  %v139_v9 = vld [vmem:[%s291_s3 + $0x4] sm:$0xf]  ;;  %v144_v19 = vld [vmem:[%s288_s0 + $0x8] sm:$0xf] }
   0x3   :  { %v31_v2 = vld [vmem:[%s288_s0] sm:$0xf]  ;;  %v140_v10 = vld [vmem:[%s288_s0 + $0x4] sm:$0xf]  ;;  %v145_v20 = vld [vmem:[%s289_s1 + $0x8] sm:$0xf]  ;;  %v63_v24 = vmul.f32 %v144_v19, %v142_v14 }
   0x4   :  { %v32_v3 = vld [vmem:[%s289_s1] sm:$0xf]  ;;  %v33_v4 = vmul.f32 %v31_v2, %v29_v0  ;;  %v37_v7 = vmul.f32 %v31_v2, %v30_v1  ;;  %v141_v11 = vld [vmem:[%s289_s1 + $0x4] sm:$0xf]  ;;  %v47_v12 = vmul.f32 %v140_v10, %v138_v8  ;;  %v53_v13 = vmul.f32 %v140_v10, %v139_v9  ;;  %v143_v21 = vld [vmem:[%s291_s3 + $0x8] sm:$0xf] }
   0x5   :  { %v34_v5 = vmul.f32 %v32_v3, %v30_v1  ;;  %v36_v6 = vmul.f32 %v32_v3, %v29_v0  ;;  %v49_v17 = vmul.f32 %v141_v11, %v139_v9  ;;  %v51_v18 = vmul.f32 %v141_v11, %v138_v8 }
   0x6   :  { %v67_v25 = vmul.f32 %v145_v20, %v142_v14 }
   0x7   :  { %v35_v15 = vadd.f32 %v34_v5, %v33_v4  ;;  %v38_v16 = vsub.f32 %v36_v6, %v37_v7 }
   0x9   :  { %v48_v22 = vadd.f32 %v47_v12, %v35_v15  ;;  %v52_v23 = vadd.f32 %v51_v18, %v38_v16 }
   0xa   :  { %14 = vsyncpa [#allocation3], 0  ;;  %v146_v26 = vld [vmem:[%s290_s2 + $0xc] sm:$0xf]  ;;  %v65_v31 = vmul.f32 %v145_v20, %v143_v21  ;;  %v69_v32 = vmul.f32 %v144_v19, %v143_v21  ;;  %v27_v44 = vld [vmem:[%s292_s4] sm:$0xf] }
   0xb   :  { %v148_v27 = vld [vmem:[%s288_s0 + $0xc] sm:$0xf]  ;;  %v50_v29 = vadd.f32 %v49_v17, %v48_v22  ;;  %v54_v30 = vsub.f32 %v52_v23, %v53_v13  ;;  %v28_v45 = vld [vmem:[%s293_s5] sm:$0xf]  ;;  %vm94_vm0 = vcmask 1043456   ;;  %vm110_vm1 = vcmask 0  }
   0xc   :  { %v149_v28 = vld [vmem:[%s289_s1 + $0xc] sm:$0xf]  ;;  %v79_v36 = vmul.f32 %v148_v27, %v146_v26  ;;  %v176_v54 = vmov 0.0   ;;  %s177_s4 = smov [#allocation2]  }
   0xd   :  { %v147_v33 = vld [vmem:[%s291_s3 + $0xc] sm:$0xf]  ;;  %v64_v34 = vadd.f32 %v63_v24, %v50_v29  ;;  %v68_v35 = vadd.f32 %v67_v25, %v54_v30  ;;  %v83_v37 = vmul.f32 %v149_v28, %v146_v26  ;;  %111 = vst.msk [vmem:[#allocation2] sm:$0x1] %vm110_vm1, %v176_v54  ;;  %s126_s5 = sshll.u32 %s177_s4, 4  ;;  %s127_s5 = int_to_ptr.vmem [resolvable:$true] %s126_s5 }
   0xe   :  { %v81_v40 = vmul.f32 %v149_v28, %v147_v33  ;;  %v85_v41 = vmul.f32 %v148_v27, %v147_v33  ;;  %s158_s19 = scalar_lea.vmem %s127_s5, 32  ;;  %p159_p1 = scmp.lt.s32.totalorder %s127_s5, %s127_s5 }
   0xf   :  { %v66_v38 = vadd.f32 %v65_v31, %v64_v34  ;;  %v70_v39 = vsub.f32 %v68_v35, %v69_v32 }
  0x11   :  { %v80_v42 = vadd.f32 %v79_v36, %v66_v38  ;;  %v84_v43 = vadd.f32 %v83_v37, %v70_v39 }
  0x13   :  { %v82_v46 = vadd.f32 %v81_v40, %v80_v42  ;;  %v86_v47 = vsub.f32 %v84_v43, %v85_v41 }
  0x14   :  { %v112_v62 = vld [vmem:[#allocation2] sm:$0x1] }
  0x15   :  { %v87_v48 = vadd.f32 %v82_v46, %v27_v44  ;;  %v88_v49 = vadd.f32 %v86_v47, %v28_v45 }
  0x17   :  { %89 = vst [vmem:[%s294_s6] sm:$0xf] %v87_v48  ;;  %90 = vst [vmem:[%s295_s7] sm:$0xf] %v88_v49  ;;  %v91_v50 = vmul.f32 %v87_v48, %v27_v44  ;;  %v92_v51 = vmul.f32 %v88_v49, %v28_v45  ;;  %s154_s7 = scalar_lea.vmem %s127_s5, 16 }
  0x18   :  { %p155_p0 = scmp.ne.s32.totalorder %s127_s5, %s154_s7  ;;  %p160_p2 = scmp.lt.s32.totalorder %s158_s19, %s154_s7 }
  0x19   :  { %v93_v52 = vadd.f32 %v92_v51, %v91_v50 }
  0x1a   :  { %p161_p3 = por %p160_p2, %p159_p1 }
  0x1b   :  { %v95_v53 = vsel %vm94_vm0, %v93_v52, 0.0 }
  0x1c   :  { %96 = vadd.xlane.f32.xlu0 %v95_v53  ;;  %p162_p4 = pnand %p161_p3, %p155_p0 }
  0xa5   :  { %v97_v55 = vpop.xlane.xlu0 %96 }
  0xa6   :  { %v98_v56 = vrot.slane %v97_v55, 4 }
  0xa8   :  { %v99_v57 = vadd.f32 %v98_v56, %v97_v55 }
  0xaa   :  { %v100_v58 = vrot.slane %v99_v57, 2 }
  0xac   :  { %v101_v59 = vadd.f32 %v100_v58, %v99_v57 }
  0xae   :  { %v102_v60 = vrot.slane %v101_v59, 1 }
  0xb0   :  { %v103_v61 = vadd.f32 %v102_v60, %v101_v59 }
  0xb2   :  { %150 = vpush %v103_v61 }
  0xe3   :  { %s151_s6 = spop %150 }
  0xe4   :  { %v105_v63 = vstv %s151_s6 }
  0xe5   :  { %v113_v0 = vadd.f32 %v112_v62, %v105_v63 }
  0xe7   :  { %115 = vst.msk [vmem:[#allocation2] sm:$0x1] %vm110_vm1, %v113_v0 }
  0xe8   :  { %165 = shalt.err (!%p162_p4)
}
  0xe9   :  { %129 = dma.vmem_to_hbm [thread:$0]  %s127_s5, 16, %s296_s8, [#allocation3]  }
  0xea   :  { %174 = dma.done.wait [#allocation3], 16  }
  0xeb   :  { %175 = vsyncadd [#allocation3], 4294967280 }
  0xec   :  { %137 = vsyncpa [#allocation3], 1 }

// kernel: deq_forward.37
= control target key start
LH: loop header
LB: loop body
LE: loop exit
PB: predicated region body
PF: predicated region fallthrough
CT: control target
= control target key end

     0   :  { %11 = vsyncpa [#allocation3], 0  ;;  %s204_s0 = inlined_call_operand.vmem [shape: f32[4,128], index: 0, kind: input, shape index: {}]   ;;  %s205_s1 = inlined_call_operand.vmem [shape: f32[4,128], index: 1, kind: input, shape index: {}]   ;;  %s206_s2 = inlined_call_operand.vmem [shape: f32[4,128], index: 2, kind: input, shape index: {}]   ;;  %s207_s3 = inlined_call_operand.vmem [shape: f32[4,128], index: 3, kind: input, shape index: {}]   ;;  %s208_s4 = inlined_call_operand.hbm [shape: f32[1,1], index: 4, kind: output, shape index: {0}]   ;;  %s209_s5 = inlined_call_operand.hbm [shape: f32[1,1], index: 5, kind: output, shape index: {1}]  }
   0x1   :  { %v21_v0 = vld [vmem:[%s204_s0] sm:$0xf] }
   0x2   :  { %v22_v1 = vld [vmem:[%s206_s2] sm:$0xf] }
   0x3   :  { %v24_v2 = vld [vmem:[%s205_s1] sm:$0xf]  ;;  %v23_v3 = vsub.f32 %v21_v0, %v22_v1 }
   0x4   :  { %v25_v4 = vld [vmem:[%s207_s3] sm:$0xf] }
   0x5   :  { %12 = vsyncpa [#allocation5], 0  ;;  %v26_v5 = vsub.f32 %v24_v2, %v25_v4  ;;  %v42_v6 = vmul.f32 %v22_v1, %v22_v1  ;;  %v43_v7 = vmul.f32 %v25_v4, %v25_v4  ;;  %v27_v8 = vmul.f32 %v23_v3, %v23_v3  ;;  %s150_s0 = smov [#allocation2]   ;;  %s151_s3 = smov [#allocation4]  }
   0x6   :  { %vm30_vm0 = vcmask 1043456   ;;  %vm60_vm1 = vcmask 0   ;;  %v149_v14 = vmov 0.0   ;;  %s76_s1 = sshll.u32 %s150_s0, 4  ;;  %s86_s26 = sshll.u32 %s151_s3, 4  ;;  %s77_s1 = int_to_ptr.vmem [resolvable:$true] %s76_s1  ;;  %s87_s26 = int_to_ptr.vmem [resolvable:$true] %s86_s26 }
   0x7   :  { %v28_v9 = vmul.f32 %v26_v5, %v26_v5  ;;  %v44_v11 = vadd.f32 %v43_v7, %v42_v6  ;;  %61 = vst.msk [vmem:[#allocation2] sm:$0x1] %vm60_vm1, %v149_v14  ;;  %62 = vst.msk [vmem:[#allocation4] sm:$0x1] %vm60_vm1, %v149_v14  ;;  %s105_s28 = scalar_lea.vmem %s77_s1, 16  ;;  %s109_s29 = scalar_lea.vmem %s77_s1, 32 }
   0x8   :  { %p106_p0 = scmp.ne.s32.totalorder %s77_s1, %s105_s28  ;;  %p110_p1 = scmp.lt.s32.totalorder %s77_s1, %s77_s1 }
   0x9   :  { %v29_v10 = vadd.f32 %v28_v9, %v27_v8  ;;  %v45_v13 = vsel %vm30_vm0, %v44_v11, 0.0  ;;  %p111_p2 = scmp.lt.s32.totalorder %s109_s29, %s105_s28 }
   0xb   :  { %v31_v12 = vsel %vm30_vm0, %v29_v10, 0.0  ;;  %p112_p3 = por %p111_p2, %p110_p1 }
   0xc   :  { %32 = vadd.xlane.f32.xlu0 %v31_v12 }
   0xd   :  { %p113_p4 = pnand %p112_p3, %p106_p0 }
   0xe   :  { %v63_v29 = vld [vmem:[#allocation2] sm:$0x1]  ;;  %v67_v32 = vld [vmem:[#allocation4] sm:$0x1] }
  0x10   :  { %46 = vadd.xlane.f32.xlu0 %v45_v13 }
  0x95   :  { %v33_v15 = vpop.xlane.xlu0 %32 }
  0x96   :  { %v34_v16 = vrot.slane %v33_v15, 4 }
  0x98   :  { %v35_v17 = vadd.f32 %v34_v16, %v33_v15 }
  0x99   :  { %v47_v18 = vpop.xlane.xlu0 %46 }
  0x9a   :  { %v36_v19 = vrot.slane %v35_v17, 2  ;;  %v48_v20 = vrot.slane %v47_v18, 4 }
  0x9c   :  { %v49_v21 = vadd.f32 %v48_v20, %v47_v18  ;;  %v37_v22 = vadd.f32 %v36_v19, %v35_v17 }
  0x9e   :  { %v50_v23 = vrot.slane %v49_v21, 2  ;;  %v38_v24 = vrot.slane %v37_v22, 1 }
  0xa0   :  { %v51_v25 = vadd.f32 %v50_v23, %v49_v21  ;;  %v39_v26 = vadd.f32 %v38_v24, %v37_v22 }
  0xa2   :  { %98 = vpush %v39_v26  ;;  %v52_v27 = vrot.slane %v51_v25, 1 }
  0xa4   :  { %v53_v28 = vadd.f32 %v52_v27, %v51_v25 }
  0xa6   :  { %100 = vpush %v53_v28 }
  0xd3   :  { %s99_s2 = spop %98 }
  0xd4   :  { %v41_v30 = vstv %s99_s2 }
  0xd5   :  { %v64_v31 = vadd.f32 %v63_v29, %v41_v30 }
  0xd7   :  { %66 = vst.msk [vmem:[#allocation2] sm:$0x1] %vm60_vm1, %v64_v31  ;;  %s101_s27 = spop %100 }
  0xd8   :  { %v55_v33 = vstv %s101_s27 }
  0xd9   :  { %116 = shalt.err (!%p113_p4)
}
  0xda   :  { %79 = dma.vmem_to_hbm [thread:$0]  %s77_s1, 16, %s208_s4, [#allocation3]   ;;  %v68_v34 = vadd.f32 %v67_v32, %v55_v33 }
  0xdb   :  { %s125_s7 = scalar_lea.vmem %s87_s26, 16  ;;  %s129_s8 = scalar_lea.vmem %s87_s26, 32 }
  0xdc   :  { %69 = vst.msk [vmem:[#allocation4] sm:$0x1] %vm60_vm1, %v68_v34  ;;  %p126_p5 = scmp.ne.s32.totalorder %s87_s26, %s125_s7  ;;  %p130_p6 = scmp.lt.s32.totalorder %s87_s26, %s87_s26 }
  0xdd   :  { %p131_p7 = scmp.lt.s32.totalorder %s129_s8, %s125_s7 }
  0xdf   :  { %p132_p8 = por %p131_p7, %p130_p6 }
  0xe1   :  { %p133_p9 = pnand %p132_p8, %p126_p5 }
  0xe3   :  { %136 = shalt.err (!%p133_p9)
}
  0xe4   :  { %89 = dma.vmem_to_hbm [thread:$0]  %s87_s26, 16, %s209_s5, [#allocation5]  }
  0xe5   :  { %145 = dma.done.wait [#allocation3], 16  }
  0xe6   :  { %146 = vsyncadd [#allocation3], 4294967280 }
  0xe7   :  { %147 = dma.done.wait [#allocation5], 16  }
  0xe8   :  { %148 = vsyncadd [#allocation5], 4294967280 }
  0xe9   :  { %96 = vsyncpa [#allocation3], 1 }
  0xea   :  { %97 = vsyncpa [#allocation5], 1 }

</bundles_post_ra>
